<compile_context>
chip_gen: v7x
topology: tpu7x:2x2x1
jax: 0.10.0
libtpu: 0.0.40
codegen_flags: <defaults>
</compile_context>

<pallas_src>
import functools
import math

import numpy as np
import jax
import jax.numpy as jnp
from jax.experimental import pallas as pl
from jax.experimental.pallas import tpu as pltpu


def _gaussian_1d(window_size, sigma=1.5):
    """Matches gaussian(window_size, 1.5): normalized 1D gaussian."""
    g = np.array(
        [math.exp(-((x - window_size // 2) ** 2) / (2.0 * sigma ** 2))
         for x in range(window_size)],
        dtype=np.float64,
    )
    g = g / g.sum()
    return g.astype(np.float32)


def _toeplitz_matrices(h, w, k, g1d):
    """Banded matrices implementing the separable VALID gaussian blur.

    rowblur[h, o] = sum_kx x[h, o+kx] * g[kx]  ==  (X @ Tw)[h, o]
    blur[o, w]    = sum_ky rowblur[o+ky, w]*g[ky] == (Th @ rowblur)[o, w]
    """
    out_h, out_w = h - k + 1, w - k + 1
    tw = np.zeros((w, out_w), np.float32)
    for o in range(out_w):
        tw[o:o + k, o] = g1d
    th = np.zeros((out_h, h), np.float32)
    for o in range(out_h):
        th[o, o:o + k] = g1d
    return tw, th


def _ssim_kernel(c12_ref, x1_ref, x2_ref, tw_ref, th_ref, out_ref, *, inv_n):
    i = pl.program_id(0)

    x1 = x1_ref[...].astype(jnp.float32)   # (G, H, W)
    x2 = x2_ref[...].astype(jnp.float32)   # (G, H, W)
    tw = tw_ref[...]                        # (W, OW)
    th = th_ref[...]                        # (OH, H)

    c1 = c12_ref[0]
    c2 = c12_ref[1]

    g, h, w = x1.shape
    ow = tw.shape[1]
    oh = th.shape[0]

    # Hoisted broadcast of the H-pass matrix (batched matmul RHS).
    th_b = jnp.broadcast_to(th, (g, oh, h))

    def blur(p):
        # W pass on the MXU: (G*H, W) @ (W, OW) -> (G, H, OW)
        t = jnp.dot(
            p.reshape(g * h, w), tw,
            precision=jax.lax.Precision.HIGHEST,
            preferred_element_type=jnp.float32,
        ).reshape(g, h, ow)
        # H pass on the MXU (batched): (G, OH, H) x (G, H, OW) -> (G, OH, OW)
        return jnp.einsum(
            'goh,ghw->gow', th_b, t,
            precision=jax.lax.Precision.HIGHEST,
            preferred_element_type=jnp.float32,
        )

    mu1 = blur(x1)
    mu2 = blur(x2)
    s11 = blur(x1 * x1)
    s22 = blur(x2 * x2)
    s12 = blur(x1 * x2)

    mu1_sq = mu1 * mu1
    mu2_sq = mu2 * mu2
    mu1_mu2 = mu1 * mu2
    sigma1_sq = s11 - mu1_sq
    sigma2_sq = s22 - mu2_sq
    sigma12 = s12 - mu1_mu2

    v1 = 2.0 * sigma12 + c2
    v2 = sigma1_sq + sigma2_sq + c2
    ssim_map = (2.0 * mu1_mu2 + c1) * v1 / ((mu1_sq + mu2_sq + c1) * v2)

    # Accumulate the global sum in the resident (1,1) output block.
    @pl.when(i == 0)
    def _():
        out_ref[...] = jnp.zeros_like(out_ref)

    out_ref[...] += jnp.sum(ssim_map)

    @pl.when(i == pl.num_programs(0) - 1)
    def _():
        out_ref[...] = out_ref[...] * inv_n


def ssim_pallas(img1, img2, window_size=11):
    """Equivalent of SSIM(window_size=11, size_average=True)(img1, img2)."""
    b, c, h, w = img1.shape
    # The nn.Module always passes an explicit window, so ssim() uses the full
    # window_size (no min(window_size, H, W) clamp on that code path).
    k = window_size
    assert h >= k and w >= k, "spatial dims must be >= window_size"
    oh, ow = h - k + 1, w - k + 1
    bc = b * c

    g1d = _gaussian_1d(k)
    tw_np, th_np = _toeplitz_matrices(h, w, k, g1d)

    # val_range is None in the module -> L derived from img1's GLOBAL range.
    # Hoisted out of the (tiled) kernel; passed via scalar prefetch.
    max_val = jnp.where(jnp.max(img1) > 128.0, 255.0, 1.0)
    min_val = jnp.where(jnp.min(img1) < -0.5, -1.0, 0.0)
    L = max_val - min_val
    c12 = jnp.stack([(0.01 * L) ** 2, (0.03 * L) ** 2]).astype(jnp.float32)

    # Planes per grid step: keep each input block <= ~512 KiB so that the
    # double-buffered inputs plus the f32 intermediates stay well under the
    # 32 MiB scoped VMEM default (and v7x's 64 MiB physical VMEM).
    plane_bytes = h * w * jnp.dtype(img1.dtype).itemsize
    g = max(1, min(bc, (512 * 1024) // max(1, plane_bytes)))
    while bc % g:
        g -= 1
    n_steps = bc // g

    x1 = img1.reshape(bc, h, w)
    x2 = img2.reshape(bc, h, w)
    tw = jnp.asarray(tw_np)   # (W, OW)
    th = jnp.asarray(th_np)   # (OH, H)

    inv_n = 1.0 / float(bc * oh * ow)
    kernel = functools.partial(_ssim_kernel, inv_n=inv_n)

    out = pl.pallas_call(
        kernel,
        out_shape=jax.ShapeDtypeStruct((1, 1), jnp.float32),
        grid_spec=pltpu.PrefetchScalarGridSpec(
            num_scalar_prefetch=1,           # c12 -> SMEM
            grid=(n_steps,),
            in_specs=[
                pl.BlockSpec((g, h, w), lambda i, c12_ref: (i, 0, 0)),
                pl.BlockSpec((g, h, w), lambda i, c12_ref: (i, 0, 0)),
                pl.BlockSpec((w, ow), lambda i, c12_ref: (0, 0)),
                pl.BlockSpec((oh, h), lambda i, c12_ref: (0, 0)),
            ],
            out_specs=pl.BlockSpec((1, 1), lambda i, c12_ref: (0, 0)),
        ),
        compiler_params=pltpu.CompilerParams(
            # Single grid axis is the mean-reduction axis -> "arbitrary".
            dimension_semantics=("arbitrary",)),
    )(c12, x1, x2, tw, th)
    return out[0, 0]


def _ssim_reference(img1, img2, window_size=11):
    """Pure-JAX reference mirroring the PyTorch ssim() for verification."""
    _, c, _, _ = img1.shape
    g1d = jnp.asarray(_gaussian_1d(window_size))
    w2d = jnp.outer(g1d, g1d)
    wfull = jnp.broadcast_to(w2d, (c, 1, window_size, window_size))

    def conv(x):
        return jax.lax.conv_general_dilated(
            x, wfull, window_strides=(1, 1), padding="VALID",
            feature_group_count=c,
            dimension_numbers=("NCHW", "OIHW", "NCHW"),
            precision=jax.lax.Precision.HIGHEST,
        )

    max_val = jnp.where(jnp.max(img1) > 128.0, 255.0, 1.0)
    min_val = jnp.where(jnp.min(img1) < -0.5, -1.0, 0.0)
    L = max_val - min_val
    c1 = (0.01 * L) ** 2
    c2 = (0.03 * L) ** 2

    mu1, mu2 = conv(img1), conv(img2)
    mu1_sq, mu2_sq, mu1_mu2 = mu1 * mu1, mu2 * mu2, mu1 * mu2
    sigma1_sq = conv(img1 * img1) - mu1_sq
    sigma2_sq = conv(img2 * img2) - mu2_sq
    sigma12 = conv(img1 * img2) - mu1_mu2
    v1 = 2.0 * sigma12 + c2
    v2 = sigma1_sq + sigma2_sq + c2
    ssim_map = (2.0 * mu1_mu2 + c1) * v1 / ((mu1_sq + mu2_sq + c1) * v2)
    return jnp.mean(ssim_map)


if __name__ == "__main__":
    key = jax.random.PRNGKey(0)
    k1, k2 = jax.random.split(key)
    B, C, H, W = 2, 4, 16, 16
    img1 = jax.random.normal(k1, (B, C, H, W), dtype=jnp.float32)
    # Make img2 a noisy version of img1 so SSIM is non-trivial.
    img2 = img1 + 0.1 * jax.random.normal(k2, (B, C, H, W), dtype=jnp.float32)

    out = ssim_pallas(img1, img2, window_size=11)
    out = jax.block_until_ready(out)

    ref = jax.block_until_ready(_ssim_reference(img1, img2, window_size=11))
    np.testing.assert_allclose(np.asarray(out), np.asarray(ref),
                               rtol=1e-3, atol=1e-4)
    print("KERNEL_OK")
</pallas_src>

<mosaic_0001>
module attributes {stable_mosaic.version = 11 : i64} {
  func.func @_ssim_kernel(%arg0: i32, %arg1: memref<2xf32, #tpu.memory_space<smem>>, %arg2: memref<8x16x16xf32, #tpu.memory_space<vmem>>, %arg3: memref<8x16x16xf32, #tpu.memory_space<vmem>>, %arg4: memref<16x6xf32, #tpu.memory_space<vmem>>, %arg5: memref<6x16xf32, #tpu.memory_space<vmem>>, %arg6: memref<1x1xf32, #tpu.memory_space<vmem>>) attributes {dimension_semantics = [#tpu.dimension_semantics<arbitrary>], iteration_bounds = array<i64: 1>, scalar_prefetch = 1 : i64, scratch_operands = 0 : i64, tpu.core_type = #tpu.core_type<tc>, window_params = [{transform_indices = @transform_0, window_bounds = array<i64: 8, 16, 16>}, {transform_indices = @transform_1, window_bounds = array<i64: 8, 16, 16>}, {pipeline_mode = #tpu.pipeline_mode<synchronous>, transform_indices = @transform_2, window_bounds = array<i64: 16, 6>}, {pipeline_mode = #tpu.pipeline_mode<synchronous>, transform_indices = @transform_3, window_bounds = array<i64: 6, 16>}, {pipeline_mode = #tpu.pipeline_mode<synchronous>, transform_indices = @transform_4, window_bounds = array<i64: 1, 1>}]} {
    %c0 = arith.constant 0 : index
    %c0_0 = arith.constant 0 : index
    %c0_1 = arith.constant 0 : index
    %0 = vector.load %arg2[%c0, %c0_0, %c0_1] : memref<8x16x16xf32, #tpu.memory_space<vmem>>, vector<8x16x16xf32>
    %c0_2 = arith.constant 0 : index
    %c0_3 = arith.constant 0 : index
    %c0_4 = arith.constant 0 : index
    %1 = vector.load %arg3[%c0_2, %c0_3, %c0_4] : memref<8x16x16xf32, #tpu.memory_space<vmem>>, vector<8x16x16xf32>
    %c0_5 = arith.constant 0 : index
    %c0_6 = arith.constant 0 : index
    %2 = vector.load %arg4[%c0_5, %c0_6] : memref<16x6xf32, #tpu.memory_space<vmem>>, vector<16x6xf32>
    %c0_7 = arith.constant 0 : index
    %c0_8 = arith.constant 0 : index
    %3 = vector.load %arg5[%c0_7, %c0_8] : memref<6x16xf32, #tpu.memory_space<vmem>>, vector<6x16xf32>
    %c0_9 = arith.constant 0 : index
    %4 = memref.load %arg1[%c0_9] : memref<2xf32, #tpu.memory_space<smem>>
    %c1 = arith.constant 1 : index
    %5 = memref.load %arg1[%c1] : memref<2xf32, #tpu.memory_space<smem>>
    %6 = vector.shape_cast %3 : vector<6x16xf32> to vector<1x6x16xf32>
    %7 = vector.broadcast %6 : vector<1x6x16xf32> to vector<8x6x16xf32>
    %8 = vector.shape_cast %0 : vector<8x16x16xf32> to vector<128x16xf32>
    %cst = arith.constant dense<0.000000e+00> : vector<128x6xf32>
    %9 = tpu.matmul %8, %2, %cst {dimension_numbers = #tpu.dot_dimension_numbers<[1], [0], [0], [1], [0, 0, 1, 1], [], []>, precision = #tpu.contract_precision<fp32>} : vector<128x16xf32>, vector<16x6xf32>, vector<128x6xf32> -> vector<128x6xf32>
    %10 = vector.shape_cast %9 : vector<128x6xf32> to vector<8x16x6xf32>
    "tpu.trace_start"() <{level = 10 : i32, message = "goh,ghw->gow"}> : () -> ()
    %cst_10 = arith.constant dense<0.000000e+00> : vector<8x6x6xf32>
    %11 = tpu.matmul %7, %10, %cst_10 {dimension_numbers = #tpu.dot_dimension_numbers<[2], [1], [1], [2], [0, 0, 0, 1, 1, 2], [0], [0]>, precision = #tpu.contract_precision<fp32>} : vector<8x6x16xf32>, vector<8x16x6xf32>, vector<8x6x6xf32> -> vector<8x6x6xf32>
    "tpu.trace_stop"() : () -> ()
    %12 = vector.shape_cast %1 : vector<8x16x16xf32> to vector<128x16xf32>
    %cst_11 = arith.constant dense<0.000000e+00> : vector<128x6xf32>
    %13 = tpu.matmul %12, %2, %cst_11 {dimension_numbers = #tpu.dot_dimension_numbers<[1], [0], [0], [1], [0, 0, 1, 1], [], []>, precision = #tpu.contract_precision<fp32>} : vector<128x16xf32>, vector<16x6xf32>, vector<128x6xf32> -> vector<128x6xf32>
    %14 = vector.shape_cast %13 : vector<128x6xf32> to vector<8x16x6xf32>
    "tpu.trace_start"() <{level = 10 : i32, message = "goh,ghw->gow"}> : () -> ()
    %cst_12 = arith.constant dense<0.000000e+00> : vector<8x6x6xf32>
    %15 = tpu.matmul %7, %14, %cst_12 {dimension_numbers = #tpu.dot_dimension_numbers<[2], [1], [1], [2], [0, 0, 0, 1, 1, 2], [0], [0]>, precision = #tpu.contract_precision<fp32>} : vector<8x6x16xf32>, vector<8x16x6xf32>, vector<8x6x6xf32> -> vector<8x6x6xf32>
    "tpu.trace_stop"() : () -> ()
    %16 = arith.mulf %0, %0 : vector<8x16x16xf32>
    %17 = vector.shape_cast %16 : vector<8x16x16xf32> to vector<128x16xf32>
    %cst_13 = arith.constant dense<0.000000e+00> : vector<128x6xf32>
    %18 = tpu.matmul %17, %2, %cst_13 {dimension_numbers = #tpu.dot_dimension_numbers<[1], [0], [0], [1], [0, 0, 1, 1], [], []>, precision = #tpu.contract_precision<fp32>} : vector<128x16xf32>, vector<16x6xf32>, vector<128x6xf32> -> vector<128x6xf32>
    %19 = vector.shape_cast %18 : vector<128x6xf32> to vector<8x16x6xf32>
    "tpu.trace_start"() <{level = 10 : i32, message = "goh,ghw->gow"}> : () -> ()
    %cst_14 = arith.constant dense<0.000000e+00> : vector<8x6x6xf32>
    %20 = tpu.matmul %7, %19, %cst_14 {dimension_numbers = #tpu.dot_dimension_numbers<[2], [1], [1], [2], [0, 0, 0, 1, 1, 2], [0], [0]>, precision = #tpu.contract_precision<fp32>} : vector<8x6x16xf32>, vector<8x16x6xf32>, vector<8x6x6xf32> -> vector<8x6x6xf32>
    "tpu.trace_stop"() : () -> ()
    %21 = arith.mulf %1, %1 : vector<8x16x16xf32>
    %22 = vector.shape_cast %21 : vector<8x16x16xf32> to vector<128x16xf32>
    %cst_15 = arith.constant dense<0.000000e+00> : vector<128x6xf32>
    %23 = tpu.matmul %22, %2, %cst_15 {dimension_numbers = #tpu.dot_dimension_numbers<[1], [0], [0], [1], [0, 0, 1, 1], [], []>, precision = #tpu.contract_precision<fp32>} : vector<128x16xf32>, vector<16x6xf32>, vector<128x6xf32> -> vector<128x6xf32>
    %24 = vector.shape_cast %23 : vector<128x6xf32> to vector<8x16x6xf32>
    "tpu.trace_start"() <{level = 10 : i32, message = "goh,ghw->gow"}> : () -> ()
    %cst_16 = arith.constant dense<0.000000e+00> : vector<8x6x6xf32>
    %25 = tpu.matmul %7, %24, %cst_16 {dimension_numbers = #tpu.dot_dimension_numbers<[2], [1], [1], [2], [0, 0, 0, 1, 1, 2], [0], [0]>, precision = #tpu.contract_precision<fp32>} : vector<8x6x16xf32>, vector<8x16x6xf32>, vector<8x6x6xf32> -> vector<8x6x6xf32>
    "tpu.trace_stop"() : () -> ()
    %26 = arith.mulf %0, %1 : vector<8x16x16xf32>
    %27 = vector.shape_cast %26 : vector<8x16x16xf32> to vector<128x16xf32>
    %cst_17 = arith.constant dense<0.000000e+00> : vector<128x6xf32>
    %28 = tpu.matmul %27, %2, %cst_17 {dimension_numbers = #tpu.dot_dimension_numbers<[1], [0], [0], [1], [0, 0, 1, 1], [], []>, precision = #tpu.contract_precision<fp32>} : vector<128x16xf32>, vector<16x6xf32>, vector<128x6xf32> -> vector<128x6xf32>
    %29 = vector.shape_cast %28 : vector<128x6xf32> to vector<8x16x6xf32>
    "tpu.trace_start"() <{level = 10 : i32, message = "goh,ghw->gow"}> : () -> ()
    %cst_18 = arith.constant dense<0.000000e+00> : vector<8x6x6xf32>
    %30 = tpu.matmul %7, %29, %cst_18 {dimension_numbers = #tpu.dot_dimension_numbers<[2], [1], [1], [2], [0, 0, 0, 1, 1, 2], [0], [0]>, precision = #tpu.contract_precision<fp32>} : vector<8x6x16xf32>, vector<8x16x6xf32>, vector<8x6x6xf32> -> vector<8x6x6xf32>
    "tpu.trace_stop"() : () -> ()
    %31 = arith.mulf %11, %11 : vector<8x6x6xf32>
    %32 = arith.mulf %15, %15 : vector<8x6x6xf32>
    %33 = arith.mulf %11, %15 : vector<8x6x6xf32>
    %34 = arith.subf %20, %31 : vector<8x6x6xf32>
    %35 = arith.subf %25, %32 : vector<8x6x6xf32>
    %36 = arith.subf %30, %33 : vector<8x6x6xf32>
    %cst_19 = arith.constant 2.000000e+00 : f32
    %37 = vector.broadcast %cst_19 : f32 to vector<8x6x6xf32>
    %38 = arith.mulf %37, %36 : vector<8x6x6xf32>
    %39 = vector.broadcast %5 : f32 to vector<8x6x6xf32>
    %40 = arith.addf %38, %39 : vector<8x6x6xf32>
    %41 = arith.addf %34, %35 : vector<8x6x6xf32>
    %42 = vector.broadcast %5 : f32 to vector<8x6x6xf32>
    %43 = arith.addf %41, %42 : vector<8x6x6xf32>
    %cst_20 = arith.constant 2.000000e+00 : f32
    %44 = vector.broadcast %cst_20 : f32 to vector<8x6x6xf32>
    %45 = arith.mulf %44, %33 : vector<8x6x6xf32>
    %46 = vector.broadcast %4 : f32 to vector<8x6x6xf32>
    %47 = arith.addf %45, %46 : vector<8x6x6xf32>
    %48 = arith.mulf %47, %40 : vector<8x6x6xf32>
    %49 = arith.addf %31, %32 : vector<8x6x6xf32>
    %50 = vector.broadcast %4 : f32 to vector<8x6x6xf32>
    %51 = arith.addf %49, %50 : vector<8x6x6xf32>
    %52 = arith.mulf %51, %43 : vector<8x6x6xf32>
    %53 = arith.divf %48, %52 : vector<8x6x6xf32>
    %c0_i32 = arith.constant 0 : i32
    %54 = arith.cmpi eq, %arg0, %c0_i32 : i32
    %55 = arith.extui %54 : i1 to i32
    %c0_i32_21 = arith.constant 0 : i32
    %56 = arith.cmpi ne, %55, %c0_i32_21 : i32
    scf.if %56 {
      %cst_29 = arith.constant 0.000000e+00 : f32
      %68 = vector.broadcast %cst_29 : f32 to vector<1x1xf32>
      %c0_30 = arith.constant 0 : index
      %c0_31 = arith.constant 0 : index
      %69 = vector.load %arg6[%c0_30, %c0_31] : memref<1x1xf32, #tpu.memory_space<vmem>>, vector<1x1xf32>
      tpu.vector_store %arg6[%c0_30, %c0_31], %68 {strides = array<i32>} : memref<1x1xf32, #tpu.memory_space<vmem>>, vector<1x1xf32>,
    } else {
    }
    %c0_22 = arith.constant 0 : index
    %c0_23 = arith.constant 0 : index
    %57 = vector.load %arg6[%c0_22, %c0_23] : memref<1x1xf32, #tpu.memory_space<vmem>>, vector<1x1xf32>
    %58 = vector.shape_cast %53 : vector<8x6x6xf32> to vector<1x8x6x6xf32>
    %cst_24 = arith.constant dense<0.000000e+00> : vector<1xf32>
    %59 = vector.multi_reduction <add>, %58, %cst_24 [1, 2, 3] : vector<1x8x6x6xf32> to vector<1xf32>
    %60 = vector.shape_cast %59 : vector<1xf32> to vector<1x1x1x1xf32>
    %61 = vector.extract %60[0, 0, 0, 0] : f32 from vector<1x1x1x1xf32>
    %62 = vector.broadcast %61 : f32 to vector<1x1xf32>
    %63 = arith.addf %57, %62 : vector<1x1xf32>
    %c0_25 = arith.constant 0 : index
    %c0_26 = arith.constant 0 : index
    %64 = vector.load %arg6[%c0_25, %c0_26] : memref<1x1xf32, #tpu.memory_space<vmem>>, vector<1x1xf32>
    tpu.vector_store %arg6[%c0_25, %c0_26], %63 {strides = array<i32>} : memref<1x1xf32, #tpu.memory_space<vmem>>, vector<1x1xf32>,
    %c0_i32_27 = arith.constant 0 : i32
    %65 = arith.cmpi eq, %arg0, %c0_i32_27 : i32
    %66 = arith.extui %65 : i1 to i32
    %c0_i32_28 = arith.constant 0 : i32
    %67 = arith.cmpi ne, %66, %c0_i32_28 : i32
    scf.if %67 {
      %c0_29 = arith.constant 0 : index
      %c0_30 = arith.constant 0 : index
      %68 = vector.load %arg6[%c0_29, %c0_30] : memref<1x1xf32, #tpu.memory_space<vmem>>, vector<1x1xf32>
      %cst_31 = arith.constant 0.00347222225 : f32
      %69 = vector.broadcast %cst_31 : f32 to vector<1x1xf32>
      %70 = arith.mulf %68, %69 : vector<1x1xf32>
      %c0_32 = arith.constant 0 : index
      %c0_33 = arith.constant 0 : index
      %71 = vector.load %arg6[%c0_32, %c0_33] : memref<1x1xf32, #tpu.memory_space<vmem>>, vector<1x1xf32>
      tpu.vector_store %arg6[%c0_32, %c0_33], %70 {strides = array<i32>} : memref<1x1xf32, #tpu.memory_space<vmem>>, vector<1x1xf32>,
    } else {
    }
    return
  }
  func.func @transform_0(%arg0: i32, %arg1: memref<2xf32, #tpu.memory_space<smem>>) -> (i32, i32, i32) {
    %c0_i32 = arith.constant 0 : i32
    %c0_i32_0 = arith.constant 0 : i32
    %c0_i32_1 = arith.constant 0 : i32
    return %arg0, %c0_i32, %c0_i32_0 : i32, i32, i32
  }
  func.func @transform_1(%arg0: i32, %arg1: memref<2xf32, #tpu.memory_space<smem>>) -> (i32, i32, i32) {
    %c0_i32 = arith.constant 0 : i32
    %c0_i32_0 = arith.constant 0 : i32
    %c0_i32_1 = arith.constant 0 : i32
    return %arg0, %c0_i32, %c0_i32_0 : i32, i32, i32
  }
  func.func @transform_2(%arg0: i32, %arg1: memref<2xf32, #tpu.memory_space<smem>>) -> (i32, i32) {
    %c0_i32 = arith.constant 0 : i32
    %c0_i32_0 = arith.constant 0 : i32
    %c0_i32_1 = arith.constant 0 : i32
    return %c0_i32, %c0_i32_0 : i32, i32
  }
  func.func @transform_3(%arg0: i32, %arg1: memref<2xf32, #tpu.memory_space<smem>>) -> (i32, i32) {
    %c0_i32 = arith.constant 0 : i32
    %c0_i32_0 = arith.constant 0 : i32
    %c0_i32_1 = arith.constant 0 : i32
    return %c0_i32, %c0_i32_0 : i32, i32
  }
  func.func @transform_4(%arg0: i32, %arg1: memref<2xf32, #tpu.memory_space<smem>>) -> (i32, i32) {
    %c0_i32 = arith.constant 0 : i32
    %c0_i32_0 = arith.constant 0 : i32
    %c0_i32_1 = arith.constant 0 : i32
    return %c0_i32, %c0_i32_0 : i32, i32
  }
}

</mosaic_0001>

<bundles_post_ra>
// kernel: tpu_custom_call.1
= control target key start
LH: loop header
LB: loop body
LE: loop exit
PB: predicated region body
PF: predicated region fallthrough
CT: control target
= control target key end

     0   :  { %s33778_s0 = inlined_call_operand.vmem [shape: f32[2], index: 0, kind: input, shape index: {}]   ;;  %s33779_s1 = inlined_call_operand.hbm [shape: f32[8,16,16], index: 1, kind: input, shape index: {}]   ;;  %s33780_s2 = inlined_call_operand.hbm [shape: f32[8,16,16], index: 2, kind: input, shape index: {}]   ;;  %s33781_s3 = inlined_call_operand.vmem [shape: f32[16,6], index: 3, kind: input, shape index: {}]   ;;  %s33782_s4 = inlined_call_operand.vmem [shape: f32[6,16], index: 4, kind: input, shape index: {}]   ;;  %s33783_s5 = inlined_call_operand.hbm [shape: f32[1,1], index: 5, kind: output, shape index: {}]  }
   0x1   :  { %s10_s20 = sshll.u32 %s33778_s0, 4  ;;  %s11_s20 = int_to_ptr.vmem [resolvable:$true] %s10_s20 }
   0x2   :  { %s29976_s21 = scalar_lea.vmem %s11_s20, 16  ;;  %p29981_p1 = scmp.lt.s32.totalorder %s11_s20, %s11_s20 }
   0x3   :  { %p29977_p0 = scmp.ne.s32.totalorder %s11_s20, %s29976_s21  ;;  %p29982_p2 = scmp.lt.s32.totalorder %s29976_s21, %s29976_s21 }
   0x5   :  { %p29983_p3 = por %p29982_p2, %p29981_p1 }
   0x7   :  { %p29984_p4 = pnand %p29983_p3, %p29977_p0 }
   0x9   :  { %29987 = shalt.err (!%p29984_p4)  }
   0xa   :  { %s30062_s22 = smov [#allocation3]  }
   0xb   :  { %13 = dma.vmem_to_smem %s11_s20, 16, %s30062_s22, [#allocation2] }
   0xc   :  { %30054 = dma.done.wait [#allocation2], 16 }
   0xd   :  { %30055 = vsyncadd [#allocation2], 4294967280 }
   0xe   :  { %15 = sfence }
   0xf   :  { %16 = vsyncpa [#allocation5], 0 }
  0x10   :  { %17 = vsyncpa [#allocation8], 0 }
  0x11   :  { %18 = vsyncpa [#allocation6], 0  ;;  %s30063_s23 = smov [#allocation4]   ;;  %s29988_s26 = scalar_lea.hbm %s33779_s1, 2048 }
  0x12   :  { %s24_s24 = sshll.u32 %s30063_s23, 4  ;;  %p29989_p5 = scmp.ne.s32.totalorder %s33779_s1, %s29988_s26  ;;  %s25_s24 = int_to_ptr.vmem [resolvable:$true] %s24_s24 }
  0x13   :  { %p29992_p6 = scmp.lt.u32.totalorder %s29988_s26, %s33779_s1 }
  0x15   :  { %p29994_p7 = pnand %p29992_p6, %p29989_p5 }
  0x17   :  { %29997 = shalt.err (!%p29994_p7)
}
  0x18   :  { %s29998_s6 = scalar_lea.vmem %s25_s24, 2048  ;;  %p30003_p9 = scmp.lt.s32.totalorder %s25_s24, %s25_s24 }
  0x19   :  { %p29999_p8 = scmp.ne.s32.totalorder %s25_s24, %s29998_s6  ;;  %p30004_p10 = scmp.lt.s32.totalorder %s29998_s6, %s29998_s6 }
  0x1b   :  { %p30005_p11 = por %p30004_p10, %p30003_p9 }
  0x1d   :  { %p30006_p12 = pnand %p30005_p11, %p29999_p8 }
  0x1f   :  { %30009 = shalt.err (!%p30006_p12)
}
  0x20   :  { %s30064_s7 = smov 128   ;;  %s30065_s8 = smov 8  }
  0x21   :  { %30 = dma.hbm_to_vmem [thread:$0]  %s33779_s1, 2048, %s25_s24, [#allocation5], %s30064_s7, %s30064_s7, %s30065_s8  }
  0x22   :  { %s30066_s11 = smov [#allocation7]   ;;  %s30010_s15 = scalar_lea.hbm %s33780_s2, 2048 }
  0x23   :  { %s36_s12 = sshll.u32 %s30066_s11, 4  ;;  %p30011_p13 = scmp.ne.s32.totalorder %s33780_s2, %s30010_s15  ;;  %s37_s12 = int_to_ptr.vmem [resolvable:$true] %s36_s12 }
  0x24   :  { %p30014_p0 = scmp.lt.u32.totalorder %s30010_s15, %s33780_s2 }
  0x26   :  { %p30016_p1 = pnand %p30014_p0, %p30011_p13 }
  0x28   :  { %30019 = shalt.err (!%p30016_p1)
}
  0x29   :  { %s30020_s20 = scalar_lea.vmem %s37_s12, 2048  ;;  %p30025_p3 = scmp.lt.s32.totalorder %s37_s12, %s37_s12 }
  0x2a   :  { %p30021_p2 = scmp.ne.s32.totalorder %s37_s12, %s30020_s20  ;;  %p30026_p4 = scmp.lt.s32.totalorder %s30020_s20, %s30020_s20 }
  0x2c   :  { %p30027_p5 = por %p30026_p4, %p30025_p3 }
  0x2e   :  { %p30028_p6 = pnand %p30027_p5, %p30021_p2 }
  0x30   :  { %30031 = shalt.err (!%p30028_p6)
}
  0x31   :  { %42 = dma.hbm_to_vmem [thread:$0]  %s33780_s2, 2048, %s37_s12, [#allocation8], %s30064_s7, %s30064_s7, %s30065_s8  }
  0x32   :  { %30056 = dma.done.wait [#allocation5], 2048  }
  0x33   :  { %30057 = vsyncadd [#allocation5], 4294965248 }
  0x34   :  { %30058 = dma.done.wait [#allocation8], 2048  }
  0x35   :  { %30059 = vsyncadd [#allocation8], 4294965248  ;;  %vm90_vm0 = vcmask 130048   ;;  %v85_v0 = vld [vmem:[%s33781_s3] sm:$0xff]  ;;  %v86_v1 = vld [vmem:[%s33781_s3 + $0x8] sm:$0xff]  ;;  %vm30068_vm1 = vmmov 0  }
  0x36   :  { %v53_v2 = vld [vmem:[#allocation4] sm:$0xff]  ;;  %v140_v3 = vand.u32 4294901760, %v85_v0  ;;  %v143_v4 = vand.u32 4294901760, %v86_v1  ;;  %v54_v6 = vld [vmem:[#allocation4 + $0x8] sm:$0xff]  ;;  %v55_v10 = vld [vmem:[#allocation4 + $0x10] sm:$0xff]  ;;  %s24466_s25 = sld [smem:[#allocation3 + $0x1]] }
  0x37   :  { %v92_v5 = vsel %vm90_vm0, %v53_v2, 0  ;;  %v30137_v8 = vld [vmem:[#allocation7 + $0x8] sm:$0xff]  ;;  %v95_v9 = vsel %vm90_vm0, %v54_v6, 0  ;;  %v56_v11 = vld [vmem:[#allocation4 + $0x18] sm:$0xff]  ;;  %v98_v16 = vsel %vm90_vm0, %v55_v10, 0  ;;  %v57_v18 = vld [vmem:[#allocation4 + $0x20] sm:$0xff] }
  0x38   :  { %v30135_v7 = vand.u32 4294901760, %v92_v5  ;;  %v30140_v12 = vpack.c.bf16 %v143_v4, %v140_v3  ;;  %v30142_v13 = vand.u32 4294901760, %v95_v9  ;;  %v30145_v14 = vmul.f32 %v30137_v8, %v54_v6  ;;  %v58_v24 = vld [vmem:[#allocation4 + $0x28] sm:$0xff]  ;;  %v59_v37 = vld [vmem:[#allocation4 + $0x30] sm:$0xff]  ;;  %v60_v46 = vld [vmem:[#allocation4 + $0x38] sm:$0xff]  ;;  %s30070_s27 = smov [#allocation9]  }
  0x39   :  { %v101_v17 = vsel %vm90_vm0, %v56_v11, 0  ;;  %v30156_v20 = vand.u32 4294901760, %v98_v16  ;;  %v30162_v23 = vsub.f32 %v85_v0, %v140_v3  ;;  %v30168_v27 = vsub.f32 %v86_v1, %v143_v4  ;;  %v61_v47 = vld [vmem:[#allocation4 + $0x40] sm:$0xff]  ;;  %v62_v56 = vld [vmem:[#allocation4 + $0x48] sm:$0xff]  ;;  %v63_v57 = vld [vmem:[#allocation4 + $0x50] sm:$0xff]  ;;  %s24456_s28 = sshll.u32 %s30070_s27, 4  ;;  %s24457_s28 = int_to_ptr.vmem [resolvable:$true] %s24456_s28 }
  0x3a   :  { %34011 = vst [vmem:[#allocation14_spill] sm:$0xff] %v30145_v14  ;;  %v30148_v15 = vsub.f32 %v92_v5, %v30135_v7  ;;  %28248 = vmatprep.subr.bf16.mxu0 %v30140_v12  ;;  %v30154_v19 = vsub.f32 %v95_v9, %v30142_v13  ;;  %v30160_v22 = vand.u32 4294901760, %v101_v17  ;;  %v104_v28 = vsel %vm90_vm0, %v57_v18, 0  ;;  %v64_v2 = vld [vmem:[#allocation4 + $0x58] sm:$0xff]  ;;  %v65_v3 = vld [vmem:[#allocation4 + $0x60] sm:$0xff]  ;;  %s30032_s29 = scalar_lea.vmem %s24457_s28, 16  ;;  %p30037_p8 = scmp.lt.s32.totalorder %s24457_s28, %s24457_s28 }
  0x3b   :  { %28250 = vmatpush3.bf16.msra.mxu0 %v30140_v12  ;;  %v30166_v26 = vsub.f32 %v98_v16, %v30156_v20  ;;  %v369_v31 = vand.u32 4294901760, %v30162_v23  ;;  %v30178_v32 = vand.u32 4294901760, %v104_v28  ;;  %v376_v35 = vand.u32 4294901760, %v30168_v27  ;;  %p30033_p7 = scmp.ne.s32.totalorder %s24457_s28, %s30032_s29  ;;  %s30036_s30 = scalar_lea.vmem %s24457_s28, 32 }
  0x3c   :  { %v208_v21 = vand.u32 4294901760, %v30148_v15  ;;  %v218_v25 = vand.u32 4294901760, %v30154_v19  ;;  %v30175_v30 = vsub.f32 %v101_v17, %v30160_v22  ;;  %v107_v36 = vsel %vm90_vm0, %v58_v24, 0  ;;  %p30038_p9 = scmp.lt.s32.totalorder %s30036_s30, %s30032_s29 }
  0x3d   :  { %v228_v34 = vand.u32 4294901760, %v30166_v26  ;;  %v370_v40 = vsub.f32 %v30162_v23, %v369_v31  ;;  %v30191_v41 = vsub.f32 %v104_v28, %v30178_v32  ;;  %v377_v44 = vsub.f32 %v30168_v27, %v376_v35 }
  0x3e   :  { %v209_v29 = vsub.f32 %v30148_v15, %v208_v21  ;;  %v219_v33 = vsub.f32 %v30154_v19, %v218_v25  ;;  %v238_v39 = vand.u32 4294901760, %v30175_v30  ;;  %v30199_v45 = vand.u32 4294901760, %v107_v36  ;;  %p30039_p10 = por %p30038_p9, %p30037_p8 }
  0x3f   :  { %v229_v43 = vsub.f32 %v30166_v26, %v228_v34  ;;  %v371_v49 = vand.u32 4294901760, %v370_v40  ;;  %v248_v50 = vand.u32 4294901760, %v30191_v41  ;;  %v110_v51 = vsel %vm90_vm0, %v59_v37, 0 }
  0x40   :  { %v210_v38 = vand.u32 4294901760, %v209_v29  ;;  %v220_v42 = vand.u32 4294901760, %v219_v33  ;;  %v239_v48 = vsub.f32 %v30175_v30, %v238_v39  ;;  %v378_v53 = vand.u32 4294901760, %v377_v44  ;;  %v66_v33 = vld [vmem:[#allocation4 + $0x68] sm:$0xff]  ;;  %p30040_p11 = pnand %p30039_p10, %p30033_p7 }
  0x41   :  { %v230_v52 = vand.u32 4294901760, %v229_v43  ;;  %v30207_v54 = vsub.f32 %v107_v36, %v30199_v45  ;;  %v30209_v55 = vand.u32 4294901760, %v110_v51  ;;  %v249_v59 = vsub.f32 %v30191_v41, %v248_v50 }
  0x42   :  { %25731 = vmatprep.mubr.f32.mxu0 %v210_v38  ;;  %v240_v58 = vand.u32 4294901760, %v239_v48  ;;  %v113_v60 = vsel %vm90_vm0, %v60_v46, 0  ;;  %v116_v61 = vsel %vm90_vm0, %v61_v47, 0  ;;  %v30216_v62 = vpack.c.bf16 %v378_v53, %v371_v49  ;;  %v67_v47 = vld [vmem:[#allocation4 + $0x70] sm:$0xff] }
  0x43   :  { %25732 = vmatmul.mubr.f32.vlgmr.msra.gmra.mrb[0].mxu0 %v220_v42  ;;  %v258_v63 = vand.u32 4294901760, %v30207_v54  ;;  %v30220_v0 = vsub.f32 %v110_v51, %v30209_v55  ;;  %v30222_v1 = vand.u32 4294901760, %v113_v60  ;;  %v250_v4 = vand.u32 4294901760, %v249_v59  ;;  %v68_v59 = vld [vmem:[#allocation4 + $0x78] sm:$0xff] }
  0x44   :  { %25734 = vmatprep.mubr.f32.mxu0 %v230_v52  ;;  %34012 = vst [vmem:[#allocation15_spill] sm:$0xff] %v30216_v62  ;;  %v30224_v5 = vand.u32 4294901760, %v116_v61  ;;  %v119_v6 = vsel %vm90_vm0, %v62_v56, 0  ;;  %v122_v9 = vsel %vm90_vm0, %v63_v57, 0  ;;  %28252 = vmatprep.subr.bf16.mxu0 %v30216_v62  ;;  %v125_v28 = vsel %vm90_vm0, %v64_v2, 0 }
  0x45   :  { %v259_v10 = vsub.f32 %v30207_v54, %v258_v63  ;;  %v268_v11 = vand.u32 4294901760, %v30220_v0  ;;  %v30234_v16 = vsub.f32 %v113_v60, %v30222_v1  ;;  %v30236_v17 = vand.u32 4294901760, %v119_v6  ;;  %28254 = vmatpush3.bf16.msra.mxu0 %v30216_v62 }
  0x46   :  { %v30240_v18 = vsub.f32 %v116_v61, %v30224_v5  ;;  %v30242_v24 = vand.u32 4294901760, %v122_v9  ;;  %v128_v29 = vsel %vm90_vm0, %v65_v3, 0  ;;  %v30257_v44 = vand.u32 4294901760, %v125_v28 }
  0x47   :  { %25735 = vmatmul.mubr.f32.gmra.mrb[2].mxu0 %v240_v58  ;;  %v260_v36 = vand.u32 4294901760, %v259_v10  ;;  %v269_v37 = vsub.f32 %v30220_v0, %v268_v11  ;;  %v278_v38 = vand.u32 4294901760, %v30234_v16  ;;  %v30251_v40 = vsub.f32 %v119_v6, %v30236_v17 }
  0x48   :  { %25737 = vmatprep.mubr.f32.mxu0 %v250_v4  ;;  %v288_v42 = vand.u32 4294901760, %v30240_v18  ;;  %v30255_v43 = vsub.f32 %v122_v9, %v30242_v24  ;;  %v30259_v46 = vand.u32 4294901760, %v128_v29  ;;  %v131_v52 = vsel %vm90_vm0, %v66_v33, 0 }
  0x49   :  { %v270_v48 = vand.u32 4294901760, %v269_v37  ;;  %v279_v49 = vsub.f32 %v30234_v16, %v278_v38  ;;  %v298_v51 = vand.u32 4294901760, %v30251_v40  ;;  %v30271_v57 = vsub.f32 %v125_v28, %v30257_v44 }
  0x4a   :  { %v289_v53 = vsub.f32 %v30240_v18, %v288_v42  ;;  %v308_v56 = vand.u32 4294901760, %v30255_v43  ;;  %v30274_v58 = vsub.f32 %v128_v29, %v30259_v46  ;;  %v30279_v2 = vand.u32 4294901760, %v131_v52 }
  0x4b   :  { %25738 = vmatmul.mubr.f32.gmra.mrb[4].mxu0 %v260_v36  ;;  %v280_v60 = vand.u32 4294901760, %v279_v49  ;;  %v299_v61 = vsub.f32 %v30251_v40, %v298_v51  ;;  %v134_v3 = vsel %vm90_vm0, %v67_v47, 0  ;;  %v318_v9 = vand.u32 4294901760, %v30271_v57 }
  0x4c   :  { %25740 = vmatprep.mubr.f32.mxu0 %v270_v48  ;;  %v290_v4 = vand.u32 4294901760, %v289_v53  ;;  %v309_v6 = vsub.f32 %v30255_v43, %v308_v56  ;;  %v33784_v10 = vand.u32 4294901760, %v30274_v58  ;;  %v30288_v29 = vsub.f32 %v131_v52, %v30279_v2 }
  0x4d   :  { %v300_v28 = vand.u32 4294901760, %v299_v61  ;;  %v30290_v33 = vand.u32 4294901760, %v134_v3  ;;  %v137_v36 = vsel %vm90_vm0, %v68_v59, 0  ;;  %v319_v47 = vsub.f32 %v30271_v57, %v318_v9 }
  0x4e   :  { %v310_v37 = vand.u32 4294901760, %v309_v6  ;;  %v329_v48 = vsub.f32 %v30274_v58, %v33784_v10  ;;  %v30299_v49 = vand.u32 4294901760, %v137_v36  ;;  %v338_v53 = vand.u32 4294901760, %v30288_v29 }
  0x4f   :  { %25741 = vmatmul.mubr.f32.gmra.mrb[6].mxu0 %v280_v60  ;;  %v30303_v52 = vsub.f32 %v134_v3, %v30290_v33  ;;  %v30307_v59 = vpack.c.bf16 %v30168_v27, %v30162_v23  ;;  %v30313_v60 = vpack.c.bf16 %v376_v35, %v369_v31  ;;  %vm24415_vm2 = vcmask 46080  }
  0x50   :  { %25743 = vmatprep.mubr.f32.mxu0 %v290_v4  ;;  %v30316_v61 = vsub.f32 %v137_v36, %v30299_v49  ;;  %v320_v4 = vand.u32 4294901760, %v319_v47  ;;  %v339_v3 = vsub.f32 %v30288_v29, %v338_v53  ;;  %v330_v10 = vand.u32 4294901760, %v329_v48 }
  0x51   :  { %34013 = vst [vmem:[#allocation16_spill] sm:$0xff] %v30313_v60  ;;  %v348_v6 = vand.u32 4294901760, %v30303_v52  ;;  %28256 = vmatprep.subr.bf16.mxu0 %v30307_v59  ;;  %vm24412_vm3 = vcmask 0  }
  0x52   :  { %v358_v23 = vand.u32 4294901760, %v30316_v61  ;;  %v340_v31 = vand.u32 4294901760, %v339_v3 }
  0x53   :  { %25744 = vmatmul.mubr.f32.gmra.mrb[8].mxu0 %v300_v28  ;;  %v349_v27 = vsub.f32 %v30303_v52, %v348_v6 }
  0x54   :  { %25746 = vmatprep.mubr.f32.mxu0 %v310_v37  ;;  %v359_v35 = vsub.f32 %v30316_v61, %v358_v23 }
  0x55   :  { %v350_v28 = vand.u32 4294901760, %v349_v27 }
  0x56   :  { %v360_v36 = vand.u32 4294901760, %v359_v35 }
  0x57   :  { %25747 = vmatmul.mubr.f32.gmra.mrb[10].mxu0 %v320_v4 }
  0x58   :  { %25749 = vmatprep.mubr.f32.mxu0 %v330_v10 }
  0x5b   :  { %25750 = vmatmul.mubr.f32.gmra.mrb[12].mxu0 %v340_v31 }
  0x5c   :  { %25752 = vmatprep.mubr.f32.mxu0 %v350_v28 }
  0x5f   :  { %25753 = vmatmul.mubr.f32.gmra.mrb[14].mxu0 %v360_v36 }
  0x60   :  { %25759 = vmatprep.mubr.f32.mxu0 %v30135_v7 }
  0x63   :  { %25760 = vmatmul.mubr.f32.vlgmr.msra.gmra.mrb[0].mxu0 %v30142_v13 }
  0x64   :  { %25762 = vmatprep.mubr.f32.mxu0 %v30156_v20  ;;  %28258 = vmatpush3.bf16.msra.mxu0 %v30307_v59 }
  0x65   :  { %28260 = vmatprep.subr.bf16.mxu0 %v30140_v12 }
  0x67   :  { %25763 = vmatmul.mubr.f32.gmra.mrb[2].mxu0 %v30160_v22 }
  0x68   :  { %25765 = vmatprep.mubr.f32.mxu0 %v30178_v32 }
  0x6b   :  { %25766 = vmatmul.mubr.f32.gmra.mrb[4].mxu0 %v30199_v45 }
  0x6c   :  { %25768 = vmatprep.mubr.f32.mxu0 %v30209_v55 }
  0x6f   :  { %25769 = vmatmul.mubr.f32.gmra.mrb[6].mxu0 %v30222_v1 }
  0x70   :  { %25771 = vmatprep.mubr.f32.mxu0 %v30224_v5 }
  0x73   :  { %25772 = vmatmul.mubr.f32.gmra.mrb[8].mxu0 %v30236_v17 }
  0x74   :  { %25774 = vmatprep.mubr.f32.mxu0 %v30242_v24 }
  0x77   :  { %25775 = vmatmul.mubr.f32.gmra.mrb[10].mxu0 %v30257_v44 }
  0x78   :  { %25777 = vmatprep.mubr.f32.mxu0 %v30259_v46 }
  0x7b   :  { %25778 = vmatmul.mubr.f32.gmra.mrb[12].mxu0 %v30279_v2 }
  0x7c   :  { %25780 = vmatprep.mubr.f32.mxu0 %v30290_v33 }
  0x7f   :  { %25781 = vmatmul.mubr.f32.gmra.mrb[14].mxu0 %v30299_v49 }
  0x80   :  { %25787 = vmatprep.mubr.f32.mxu0 %v30148_v15  ;;  %v34014_v15 = vand.u32 4294901760, %v30274_v58 }
  0x83   :  { %25788 = vmatmul.mubr.f32.vlgmr.msra.gmra.mrb[0].mxu0 %v30154_v19  ;;  %v69_v19 = vld [vmem:[#allocation7] sm:$0xff] }
  0x84   :  { %25790 = vmatprep.mubr.f32.mxu0 %v30166_v26  ;;  %28262 = vmatpush3.bf16.msra.mxu0 %v30140_v12  ;;  %v72_v26 = vld [vmem:[#allocation7 + $0x18] sm:$0xff] }
  0x85   :  { %28264 = vmatprep.subr.bf16.mxu0 %v30313_v60 }
  0x87   :  { %25791 = vmatmul.mubr.f32.gmra.mrb[2].mxu0 %v30175_v30  ;;  %v73_v30 = vld [vmem:[#allocation7 + $0x20] sm:$0xff] }
  0x88   :  { %25793 = vmatprep.mubr.f32.mxu0 %v30191_v41  ;;  %v74_v41 = vld [vmem:[#allocation7 + $0x28] sm:$0xff] }
  0x8b   :  { %25794 = vmatmul.mubr.f32.gmra.mrb[4].mxu0 %v30207_v54 }
  0x8c   :  { %25796 = vmatprep.mubr.f32.mxu0 %v30220_v0 }
  0x8f   :  { %25797 = vmatmul.mubr.f32.gmra.mrb[6].mxu0 %v30234_v16  ;;  %v77_v16 = vld [vmem:[#allocation7 + $0x40] sm:$0xff] }
  0x90   :  { %25799 = vmatprep.mubr.f32.mxu0 %v30240_v18 }
  0x93   :  { %25800 = vmatmul.mubr.f32.gmra.mrb[8].mxu0 %v30251_v40 }
  0x94   :  { %25802 = vmatprep.mubr.f32.mxu0 %v30255_v43 }
  0x97   :  { %25803 = vmatmul.mubr.f32.gmra.mrb[10].mxu0 %v30271_v57 }
  0x98   :  { %25805 = vmatprep.mubr.f32.mxu0 %v30274_v58 }
  0x9b   :  { %25806 = vmatmul.mubr.f32.gmra.mrb[12].mxu0 %v30288_v29 }
  0x9c   :  { %25808 = vmatprep.mubr.f32.mxu0 %v30303_v52 }
  0x9f   :  { %25809 = vmatmul.mubr.f32.gmra.mrb[14].mxu0 %v30316_v61  ;;  %v80_v61 = vld [vmem:[#allocation7 + $0x58] sm:$0xff] }
  0xa0   :  { %25815 = vmatprep.mubr.f32.mxu0 %v208_v21  ;;  %v4919_v21 = vsel %vm90_vm0, %v69_v19, 0 }
  0xa3   :  { %25816 = vmatmul.mubr.f32.vlgmr.msra.gmra.mrb[0].mxu0 %v218_v25  ;;  %v71_v25 = vld [vmem:[#allocation7 + $0x10] sm:$0xff] }
  0xa4   :  { %25818 = vmatprep.mubr.f32.mxu0 %v228_v34  ;;  %28266 = vmatpush3.bf16.msra.mxu0 %v30313_v60 }
  0xa5   :  { %28268 = vmatprep.subr.bf16.mxu0 %v30140_v12 }
  0xa7   :  { %25819 = vmatmul.mubr.f32.gmra.mrb[2].mxu0 %v238_v39  ;;  %v4928_v39 = vsel %vm90_vm0, %v72_v26, 0  ;;  %v83_v26 = vld [vmem:[#allocation7 + $0x70] sm:$0xff] }
  0xa8   :  { %25821 = vmatprep.mubr.f32.mxu0 %v248_v50  ;;  %v30448_v54 = vand.u32 4294901760, %v4928_v39 }
  0xaa   :  { %v30466_v40 = vsub.f32 %v4928_v39, %v30448_v54 }
  0xab   :  { %25822 = vmatmul.mubr.f32.gmra.mrb[4].mxu0 %v258_v63 }
  0xac   :  { %25824 = vmatprep.mubr.f32.mxu0 %v268_v11  ;;  %v76_v11 = vld [vmem:[#allocation7 + $0x38] sm:$0xff]  ;;  %v5065_v29 = vand.u32 4294901760, %v30466_v40 }
  0xae   :  { %v5066_v27 = vsub.f32 %v30466_v40, %v5065_v29 }
  0xaf   :  { %25825 = vmatmul.mubr.f32.gmra.mrb[6].mxu0 %v278_v38 }
  0xb0   :  { %25827 = vmatprep.mubr.f32.mxu0 %v288_v42 }
  0xb3   :  { %25828 = vmatmul.mubr.f32.gmra.mrb[8].mxu0 %v298_v51 }
  0xb4   :  { %25830 = vmatprep.mubr.f32.mxu0 %v308_v56  ;;  %v78_v56 = vld [vmem:[#allocation7 + $0x48] sm:$0xff] }
  0xb5   :  { %v4946_v52 = vsel %vm90_vm0, %v78_v56, 0 }
  0xb6   :  { %v30512_v35 = vand.u32 4294901760, %v4946_v52 }
  0xb7   :  { %25831 = vmatmul.mubr.f32.gmra.mrb[10].mxu0 %v318_v9 }
  0xb8   :  { %25833 = vmatprep.mubr.f32.mxu0 %v34014_v15 }
  0xbb   :  { %25834 = vmatmul.mubr.f32.gmra.mrb[12].mxu0 %v338_v53 }
  0xbc   :  { %25836 = vmatprep.mubr.f32.mxu0 %v348_v6 }
  0xbf   :  { %25837 = vmatmul.mubr.f32.gmra.mrb[14].mxu0 %v358_v23 }
  0xc0   :  { %25843 = vmatprep.mubr.f32.mxu0 %v30135_v7 }
  0xc3   :  { %25844 = vmatmul.mubr.f32.vlgmr.msra.gmra.mrb[0].mxu0 %v30142_v13 }
  0xc4   :  { %25846 = vmatprep.mubr.f32.mxu0 %v30156_v20  ;;  %28270 = vmatpush3.bf16.msra.mxu0 %v30140_v12 }
  0xc5   :  { %28416 = vmatprep.subr.bf16.mxu0 %v30140_v12 }
  0xc7   :  { %25847 = vmatmul.mubr.f32.gmra.mrb[2].mxu0 %v30160_v22 }
  0xc8   :  { %25849 = vmatprep.mubr.f32.mxu0 %v30178_v32 }
  0xcb   :  { %25850 = vmatmul.mubr.f32.gmra.mrb[4].mxu0 %v30199_v45 }
  0xcc   :  { %25852 = vmatprep.mubr.f32.mxu0 %v30209_v55 }
  0xcf   :  { %25853 = vmatmul.mubr.f32.gmra.mrb[6].mxu0 %v30222_v1 }
  0xd0   :  { %25855 = vmatprep.mubr.f32.mxu0 %v30224_v5 }
  0xd3   :  { %25856 = vmatmul.mubr.f32.gmra.mrb[8].mxu0 %v30236_v17 }
  0xd4   :  { %25858 = vmatprep.mubr.f32.mxu0 %v30242_v24 }
  0xd7   :  { %25859 = vmatmul.mubr.f32.gmra.mrb[10].mxu0 %v30257_v44 }
  0xd8   :  { %25861 = vmatprep.mubr.f32.mxu0 %v30259_v46 }
  0xdb   :  { %25862 = vmatmul.mubr.f32.gmra.mrb[12].mxu0 %v30279_v2 }
  0xdc   :  { %25864 = vmatprep.mubr.f32.mxu0 %v30290_v33 }
  0xdf   :  { %25865 = vmatmul.mubr.f32.gmra.mrb[14].mxu0 %v30299_v49 }
  0xe0   :  { %25871 = vmatprep.mubr.f32.mxu0 %v30135_v7  ;;  %v30428_v7 = vand.u32 4294901760, %v4919_v21 }
  0xe3   :  { %25872 = vmatmul.mubr.f32.vlgmr.msra.gmra.mrb[0].mxu0 %v30142_v13  ;;  %v4922_v13 = vsel %vm90_vm0, %v30137_v8, 0  ;;  %v4931_v8 = vsel %vm90_vm0, %v73_v30, 0  ;;  %v5067_v30 = vand.u32 4294901760, %v5066_v27 }
  0xe4   :  { %25874 = vmatprep.mubr.f32.mxu0 %v30156_v20  ;;  %28418 = vmatpush3.bf16.msra.mxu0 %v30140_v12  ;;  %v4925_v20 = vsel %vm90_vm0, %v71_v25, 0 }
  0xe5   :  { %28420 = vmatprep.subr.bf16.mxu0 %v30216_v62  ;;  %v30440_v34 = vand.u32 4294901760, %v4925_v20 }
  0xe7   :  { %25875 = vmatmul.mubr.f32.gmra.mrb[2].mxu0 %v30160_v22  ;;  %v30434_v22 = vand.u32 4294901760, %v4922_v13 }
  0xe8   :  { %25877 = vmatprep.mubr.f32.mxu0 %v30178_v32  ;;  %v30438_v32 = vsub.f32 %v4919_v21, %v30428_v7  ;;  %v82_v21 = vld [vmem:[#allocation7 + $0x68] sm:$0xff] }
  0xe9   :  { %v30446_v50 = vsub.f32 %v4922_v13, %v30434_v22 }
  0xea   :  { %v5035_v0 = vand.u32 4294901760, %v30438_v32 }
  0xeb   :  { %25878 = vmatmul.mubr.f32.gmra.mrb[4].mxu0 %v30199_v45  ;;  %v75_v45 = vld [vmem:[#allocation7 + $0x30] sm:$0xff]  ;;  %v5045_v38 = vand.u32 4294901760, %v30446_v50 }
  0xec   :  { %25880 = vmatprep.mubr.f32.mxu0 %v30209_v55  ;;  %v4934_v55 = vsel %vm90_vm0, %v74_v41, 0  ;;  %v4937_v63 = vsel %vm90_vm0, %v75_v45, 0  ;;  %v5036_v42 = vsub.f32 %v30438_v32, %v5035_v0  ;;  %v30530_v41 = vsub.f32 %v4946_v52, %v30512_v35 }
  0xed   :  { %v30461_v18 = vand.u32 4294901760, %v4937_v63  ;;  %v5046_v10 = vsub.f32 %v30446_v50, %v5045_v38 }
  0xee   :  { %v5037_v47 = vand.u32 4294901760, %v5036_v42 }
  0xef   :  { %25881 = vmatmul.mubr.f32.gmra.mrb[6].mxu0 %v30222_v1  ;;  %v30455_v1 = vsub.f32 %v4925_v20, %v30440_v34  ;;  %v30482_v58 = vsub.f32 %v4937_v63, %v30461_v18  ;;  %v5047_v23 = vand.u32 4294901760, %v5046_v10  ;;  %v5125_v10 = vand.u32 4294901760, %v30530_v41 }
  0xf0   :  { %25883 = vmatprep.mubr.f32.mxu0 %v30224_v5  ;;  %v30457_v5 = vand.u32 4294901760, %v4931_v8 }
  0xf1   :  { %v5055_v43 = vand.u32 4294901760, %v30455_v1  ;;  %v5095_v3 = vand.u32 4294901760, %v30482_v58  ;;  %v5126_v27 = vsub.f32 %v30530_v41, %v5125_v10 }
  0xf2   :  { %v30475_v51 = vsub.f32 %v4931_v8, %v30457_v5 }
  0xf3   :  { %25884 = vmatmul.mubr.f32.gmra.mrb[8].mxu0 %v30236_v17  ;;  %v30459_v17 = vand.u32 4294901760, %v4934_v55  ;;  %v5056_v48 = vsub.f32 %v30455_v1, %v5055_v43  ;;  %v5096_v13 = vsub.f32 %v30482_v58, %v5095_v3 }
  0xf4   :  { %25886 = vmatprep.mubr.f32.mxu0 %v30242_v24  ;;  %v4940_v24 = vsel %vm90_vm0, %v76_v11, 0  ;;  %v5075_v53 = vand.u32 4294901760, %v30475_v51  ;;  %v4958_v11 = vsel %vm90_vm0, %v82_v21, 0 }
  0xf5   :  { %v30479_v57 = vsub.f32 %v4934_v55, %v30459_v17  ;;  %v30484_v9 = vand.u32 4294901760, %v4940_v24  ;;  %v5057_v28 = vand.u32 4294901760, %v5056_v48  ;;  %v30553_v48 = vand.u32 4294901760, %v4958_v11 }
  0xf6   :  { %v5076_v36 = vsub.f32 %v30475_v51, %v5075_v53 }
  0xf7   :  { %25887 = vmatmul.mubr.f32.gmra.mrb[10].mxu0 %v30257_v44  ;;  %v4943_v44 = vsel %vm90_vm0, %v77_v16, 0  ;;  %v5085_v4 = vand.u32 4294901760, %v30479_v57  ;;  %v30503_v6 = vsub.f32 %v4940_v24, %v30484_v9  ;;  %v4961_v16 = vsel %vm90_vm0, %v83_v26, 0  ;;  %v84_v24 = vld [vmem:[#allocation7 + $0x78] sm:$0xff] }
  0xf8   :  { %25889 = vmatprep.mubr.f32.mxu0 %v30259_v46  ;;  %v79_v46 = vld [vmem:[#allocation7 + $0x50] sm:$0xff]  ;;  %v30491_v37 = vand.u32 4294901760, %v4943_v44  ;;  %v5077_v8 = vand.u32 4294901760, %v5076_v36  ;;  %v30567_v36 = vsub.f32 %v4958_v11, %v30553_v48  ;;  %v5127_v26 = vand.u32 4294901760, %v5126_v27 }
  0xf9   :  { %v5086_v25 = vsub.f32 %v30479_v57, %v5085_v4  ;;  %v5105_v20 = vand.u32 4294901760, %v30503_v6 }
  0xfa   :  { %v30510_v31 = vsub.f32 %v4943_v44, %v30491_v37  ;;  %v5097_v44 = vand.u32 4294901760, %v5096_v13 }
  0xfb   :  { %25890 = vmatmul.mubr.f32.gmra.mrb[12].mxu0 %v30279_v2  ;;  %v4949_v2 = vsel %vm90_vm0, %v79_v46, 0  ;;  %v5087_v42 = vand.u32 4294901760, %v5086_v25  ;;  %v5106_v56 = vsub.f32 %v30503_v6, %v5105_v20 }
  0xfc   :  { %25892 = vmatprep.mubr.f32.mxu0 %v30290_v33  ;;  %v81_v33 = vld [vmem:[#allocation7 + $0x60] sm:$0xff]  ;;  %v30517_v15 = vand.u32 4294901760, %v4949_v2  ;;  %v5115_v39 = vand.u32 4294901760, %v30510_v31 }
  0xfd   :  { %v4955_v19 = vsel %vm90_vm0, %v81_v33, 0  ;;  %v4964_v33 = vsel %vm90_vm0, %v84_v24, 0 }
  0xfe   :  { %v30535_v55 = vsub.f32 %v4949_v2, %v30517_v15  ;;  %v30537_v63 = vand.u32 4294901760, %v4955_v19  ;;  %v5116_v46 = vsub.f32 %v30510_v31, %v5115_v39 }
  0xff   :  { %25893 = vmatmul.mubr.f32.gmra.mrb[14].mxu0 %v30299_v49  ;;  %v4952_v49 = vsel %vm90_vm0, %v80_v61, 0  ;;  %v30559_v61 = vand.u32 4294901760, %v4961_v16 }
 0x100   :  { %26235 = vmatprep.mubr.f32.mxu0 %v5037_v47  ;;  %v30532_v45 = vand.u32 4294901760, %v4952_v49  ;;  %v5135_v52 = vand.u32 4294901760, %v30535_v55  ;;  %v30557_v2 = vsub.f32 %v4955_v19, %v30537_v63  ;;  %v5117_v19 = vand.u32 4294901760, %v5116_v46 }
 0x101   :  { %v30576_v13 = vsub.f32 %v4961_v16, %v30559_v61 }
 0x102   :  { %v30551_v47 = vsub.f32 %v4952_v49, %v30532_v45  ;;  %v30569_v49 = vand.u32 4294901760, %v4964_v33  ;;  %v5136_v21 = vsub.f32 %v30535_v55, %v5135_v52  ;;  %v5155_v25 = vand.u32 4294901760, %v30557_v2 }
 0x103   :  { %26236 = vmatmul.mubr.f32.vlgmr.msra.gmra.mrb[16].mxu0 %v5047_v23  ;;  %v5107_v23 = vand.u32 4294901760, %v5106_v56  ;;  %v5175_v16 = vand.u32 4294901760, %v30576_v13 }
 0x104   :  { %26238 = vmatprep.mubr.f32.mxu0 %v5057_v28  ;;  %28422 = vmatpush3.bf16.msra.mxu0 %v30216_v62  ;;  %v5145_v28 = vand.u32 4294901760, %v30551_v47  ;;  %v30583_v11 = vsub.f32 %v4964_v33, %v30569_v49  ;;  %v5137_v24 = vand.u32 4294901760, %v5136_v21 }
 0x105   :  { %28424 = vmatprep.subr.bf16.mxu0 %v30307_v59  ;;  %v5176_v33 = vsub.f32 %v30576_v13, %v5175_v16 }
 0x106   :  { %v5185_v46 = vand.u32 4294901760, %v30583_v11 }
 0x107   :  { %26239 = vmatmul.mubr.f32.gmra.mrb[18].mxu0 %v5067_v30  ;;  %v5146_v30 = vsub.f32 %v30551_v47, %v5145_v28  ;;  %v5177_v21 = vand.u32 4294901760, %v5176_v33 }
 0x108   :  { %26241 = vmatprep.mubr.f32.mxu0 %v5077_v8  ;;  %v5165_v8 = vand.u32 4294901760, %v30567_v36 }
 0x10a   :  { %v5166_v56 = vsub.f32 %v30567_v36, %v5165_v8 }
 0x10b   :  { %26242 = vmatmul.mubr.f32.gmra.mrb[20].mxu0 %v5087_v42  ;;  %v5156_v42 = vsub.f32 %v30557_v2, %v5155_v25 }
 0x10c   :  { %26244 = vmatprep.mubr.f32.mxu0 %v5097_v44  ;;  %v5147_v44 = vand.u32 4294901760, %v5146_v30  ;;  %v5167_v27 = vand.u32 4294901760, %v5166_v56  ;;  %v33789_v30 = vmov 0.0|0.0  }
 0x10d   :  { %28271 = vmatprep.subr.bf16.mxu1 %v33789_v30 }
 0x10f   :  { %26245 = vmatmul.mubr.f32.gmra.mrb[22].mxu0 %v5107_v23  ;;  %v5157_v23 = vand.u32 4294901760, %v5156_v42 }
 0x110   :  { %26247 = vmatprep.mubr.f32.mxu0 %v5117_v19  ;;  %v5186_v19 = vsub.f32 %v30583_v11, %v5185_v46 }
 0x113   :  { %26248 = vmatmul.mubr.f32.gmra.mrb[24].mxu0 %v5127_v26  ;;  %v5187_v26 = vand.u32 4294901760, %v5186_v19 }
 0x114   :  { %26250 = vmatprep.mubr.f32.mxu0 %v5137_v24  ;;  %v33792_v24 = vmov 0.0  }
 0x115   :  { %25899 = vmatprep.mubr.msk.f32.mxu1 %vm30068_vm1, %v33792_v24 }
 0x117   :  { %26251 = vmatmul.mubr.f32.gmra.mrb[26].mxu0 %v5147_v44 }
 0x118   :  { %26253 = vmatprep.mubr.f32.mxu0 %v5157_v23 }
 0x11b   :  { %26254 = vmatmul.mubr.f32.gmra.mrb[28].mxu0 %v5167_v27 }
 0x11c   :  { %26256 = vmatprep.mubr.f32.mxu0 %v5177_v21 }
 0x11f   :  { %26257 = vmatmul.mubr.f32.gmra.mrb[30].mxu0 %v5187_v26 }
 0x120   :  { %26263 = vmatprep.mubr.f32.mxu0 %v30428_v7 }
 0x123   :  { %26264 = vmatmul.mubr.f32.vlgmr.msra.gmra.mrb[16].mxu0 %v30434_v22 }
 0x124   :  { %26266 = vmatprep.mubr.f32.mxu0 %v30440_v34  ;;  %28426 = vmatpush3.bf16.msra.mxu0 %v30307_v59 }
 0x125   :  { %28428 = vmatprep.subr.bf16.mxu0 %v30140_v12 }
 0x127   :  { %26267 = vmatmul.mubr.f32.gmra.mrb[18].mxu0 %v30448_v54 }
 0x128   :  { %26269 = vmatprep.mubr.f32.mxu0 %v30457_v5 }
 0x12b   :  { %26270 = vmatmul.mubr.f32.gmra.mrb[20].mxu0 %v30459_v17 }
 0x12c   :  { %26272 = vmatprep.mubr.f32.mxu0 %v30461_v18 }
 0x12f   :  { %26273 = vmatmul.mubr.f32.gmra.mrb[22].mxu0 %v30484_v9 }
 0x130   :  { %26275 = vmatprep.mubr.f32.mxu0 %v30491_v37 }
 0x133   :  { %26276 = vmatmul.mubr.f32.gmra.mrb[24].mxu0 %v30512_v35 }
 0x134   :  { %26278 = vmatprep.mubr.f32.mxu0 %v30517_v15 }
 0x137   :  { %26279 = vmatmul.mubr.f32.gmra.mrb[26].mxu0 %v30532_v45 }
 0x138   :  { %26281 = vmatprep.mubr.f32.mxu0 %v30537_v63 }
 0x13b   :  { %26282 = vmatmul.mubr.f32.gmra.mrb[28].mxu0 %v30553_v48 }
 0x13c   :  { %26284 = vmatprep.mubr.f32.mxu0 %v30559_v61 }
 0x13f   :  { %26285 = vmatmul.mubr.f32.gmra.mrb[30].mxu0 %v30569_v49 }
 0x140   :  { %26291 = vmatprep.mubr.f32.mxu0 %v30438_v32  ;;  %v87_v32 = vld [vmem:[%s33782_s4] sm:$0x3f]  ;;  %s88_s4 = sld [smem:[#allocation3]] }
 0x143   :  { %26292 = vmatmul.mubr.f32.vlgmr.msra.gmra.mrb[16].mxu0 %v30446_v50  ;;  %v1244_v50 = vsel %vm90_vm0, %v87_v32, 0 }
 0x144   :  { %26294 = vmatprep.mubr.f32.mxu0 %v30455_v1  ;;  %28430 = vmatpush3.bf16.msra.mxu0 %v30140_v12 }
 0x145   :  { %28432 = vmatprep.subr.bf16.mxu0 %v30313_v60 }
 0x147   :  { %26295 = vmatmul.mubr.f32.gmra.mrb[18].mxu0 %v30466_v40 }
 0x148   :  { %26297 = vmatprep.mubr.f32.mxu0 %v30475_v51 }
 0x14b   :  { %26298 = vmatmul.mubr.f32.gmra.mrb[20].mxu0 %v30479_v57 }
 0x14c   :  { %26300 = vmatprep.mubr.f32.mxu0 %v30482_v58 }
 0x14f   :  { %26301 = vmatmul.mubr.f32.gmra.mrb[22].mxu0 %v30503_v6 }
 0x150   :  { %26303 = vmatprep.mubr.f32.mxu0 %v30510_v31 }
 0x153   :  { %26304 = vmatmul.mubr.f32.gmra.mrb[24].mxu0 %v30530_v41 }
 0x154   :  { %26306 = vmatprep.mubr.f32.mxu0 %v30535_v55 }
 0x157   :  { %26307 = vmatmul.mubr.f32.gmra.mrb[26].mxu0 %v30551_v47  ;;  %v29919_v47 = vld [vmem:[#allocation4 + $0x28] sm:$0xff] }
 0x158   :  { %26309 = vmatprep.mubr.f32.mxu0 %v30557_v2 }
 0x15b   :  { %26310 = vmatmul.mubr.f32.gmra.mrb[28].mxu0 %v30567_v36 }
 0x15c   :  { %26312 = vmatprep.mubr.f32.mxu0 %v30576_v13 }
 0x15f   :  { %26313 = vmatmul.mubr.f32.gmra.mrb[30].mxu0 %v30583_v11 }
 0x160   :  { %26319 = vmatprep.mubr.f32.mxu0 %v5035_v0 }
 0x163   :  { %26320 = vmatmul.mubr.f32.vlgmr.msra.gmra.mrb[16].mxu0 %v5045_v38 }
 0x164   :  { %26322 = vmatprep.mubr.f32.mxu0 %v5055_v43  ;;  %28434 = vmatpush3.bf16.msra.mxu0 %v30313_v60 }
 0x165   :  { %28436 = vmatprep.subr.bf16.mxu0 %v30140_v12 }
 0x167   :  { %26323 = vmatmul.mubr.f32.gmra.mrb[18].mxu0 %v5065_v29 }
 0x168   :  { %26325 = vmatprep.mubr.f32.mxu0 %v5075_v53 }
 0x16b   :  { %26326 = vmatmul.mubr.f32.gmra.mrb[20].mxu0 %v5085_v4 }
 0x16c   :  { %26328 = vmatprep.mubr.f32.mxu0 %v5095_v3 }
 0x16f   :  { %26329 = vmatmul.mubr.f32.gmra.mrb[22].mxu0 %v5105_v20 }
 0x170   :  { %26331 = vmatprep.mubr.f32.mxu0 %v5115_v39 }
 0x173   :  { %26332 = vmatmul.mubr.f32.gmra.mrb[24].mxu0 %v5125_v10 }
 0x174   :  { %26334 = vmatprep.mubr.f32.mxu0 %v5135_v52 }
 0x177   :  { %26335 = vmatmul.mubr.f32.gmra.mrb[26].mxu0 %v5145_v28 }
 0x178   :  { %26337 = vmatprep.mubr.f32.mxu0 %v5155_v25 }
 0x17b   :  { %26338 = vmatmul.mubr.f32.gmra.mrb[28].mxu0 %v5165_v8 }
 0x17c   :  { %26340 = vmatprep.mubr.f32.mxu0 %v5175_v16 }
 0x17f   :  { %26341 = vmatmul.mubr.f32.gmra.mrb[30].mxu0 %v5185_v46 }
 0x180   :  { %26347 = vmatprep.mubr.f32.mxu0 %v30428_v7 }
 0x183   :  { %26348 = vmatmul.mubr.f32.vlgmr.msra.gmra.mrb[16].mxu0 %v30434_v22 }
 0x184   :  { %26350 = vmatprep.mubr.f32.mxu0 %v30440_v34  ;;  %28438 = vmatpush3.bf16.msra.mxu0 %v30140_v12 }
 0x185   :  { %28584 = vmatprep.subr.bf16.mxu0 %v30140_v12 }
 0x187   :  { %26351 = vmatmul.mubr.f32.gmra.mrb[18].mxu0 %v30448_v54 }
 0x188   :  { %26353 = vmatprep.mubr.f32.mxu0 %v30457_v5 }
 0x18b   :  { %26354 = vmatmul.mubr.f32.gmra.mrb[20].mxu0 %v30459_v17 }
 0x18c   :  { %26356 = vmatprep.mubr.f32.mxu0 %v30461_v18 }
 0x18f   :  { %26357 = vmatmul.mubr.f32.gmra.mrb[22].mxu0 %v30484_v9 }
 0x190   :  { %26359 = vmatprep.mubr.f32.mxu0 %v30491_v37 }
 0x193   :  { %26360 = vmatmul.mubr.f32.gmra.mrb[24].mxu0 %v30512_v35 }
 0x194   :  { %26362 = vmatprep.mubr.f32.mxu0 %v30517_v15 }
 0x197   :  { %26363 = vmatmul.mubr.f32.gmra.mrb[26].mxu0 %v30532_v45 }
 0x198   :  { %26365 = vmatprep.mubr.f32.mxu0 %v30537_v63 }
 0x19b   :  { %26366 = vmatmul.mubr.f32.gmra.mrb[28].mxu0 %v30553_v48 }
 0x19c   :  { %26368 = vmatprep.mubr.f32.mxu0 %v30559_v61 }
 0x19f   :  { %26369 = vmatmul.mubr.f32.gmra.mrb[30].mxu0 %v30569_v49 }
 0x1a0   :  { %26375 = vmatprep.mubr.f32.mxu0 %v30428_v7  ;;  %v30702_v7 = vand.u32 4294901760, %v1244_v50 }
 0x1a3   :  { %26376 = vmatmul.mubr.f32.vlgmr.msra.gmra.mrb[16].mxu0 %v30434_v22  ;;  %v30707_v22 = vsub.f32 %v1244_v50, %v30702_v7 }
 0x1a4   :  { %26378 = vmatprep.mubr.f32.mxu0 %v30440_v34  ;;  %28586 = vmatpush3.bf16.msra.mxu0 %v30140_v12 }
 0x1a5   :  { %28588 = vmatprep.subr.bf16.mxu0 %v30216_v62  ;;  %v30712_v34 = vand.u32 4294901760, %v30707_v22 }
 0x1a7   :  { %26379 = vmatmul.mubr.f32.gmra.mrb[18].mxu0 %v30448_v54 }
 0x1a8   :  { %26381 = vmatprep.mubr.f32.mxu0 %v30457_v5  ;;  %v1316_v5 = vsub.f32 %v30707_v22, %v30712_v34 }
 0x1ab   :  { %26382 = vmatmul.mubr.f32.gmra.mrb[20].mxu0 %v30459_v17 }
 0x1ac   :  { %26384 = vmatprep.mubr.f32.mxu0 %v30461_v18 }
 0x1af   :  { %26385 = vmatmul.mubr.f32.gmra.mrb[22].mxu0 %v30484_v9  ;;  %v30727_v9 = vand.u32 4294901760, %v1316_v5 }
 0x1b0   :  { %26387 = vmatprep.mubr.f32.mxu0 %v30491_v37 }
 0x1b3   :  { %26388 = vmatmul.mubr.f32.gmra.mrb[24].mxu0 %v30512_v35 }
 0x1b4   :  { %26390 = vmatprep.mubr.f32.mxu0 %v30517_v15 }
 0x1b6   :  { %v25873_v54 = vpop.f32.mrb[0].mxu0 }
 0x1b7   :  { %v1250_v0 = vand.u32 4294901760, %v25873_v54  ;;  %v1149_v1 = vpop.f32.mrb[1].mxu0  ;;  %26391 = vmatmul.mubr.f32.gmra.mrb[26].mxu0 %v30532_v45 }
 0x1b8   :  { %v1247_v17 = vand.u32 4294901760, %v1149_v1  ;;  %26393 = vmatprep.mubr.f32.mxu0 %v30537_v63 }
 0x1b9   :  { %v30719_v18 = vsub.f32 %v25873_v54, %v1250_v0 }
 0x1ba   :  { %v30721_v38 = vpack.c.bf16 %v1250_v0, %v1247_v17  ;;  %v30723_v40 = vsub.f32 %v1149_v1, %v1247_v17  ;;  %v25876_v43 = vpop.f32.mrb[2].mxu0 }
 0x1bb   :  { %v1333_v51 = vand.u32 4294901760, %v30719_v18  ;;  %v1709_v57 = vand.u32 4294901760, %v25876_v43  ;;  %v1161_v58 = vpop.f32.mrb[3].mxu0  ;;  %26394 = vmatmul.mubr.f32.gmra.mrb[28].mxu0 %v30553_v48 }
 0x1bc   :  { %v1326_v29 = vand.u32 4294901760, %v30723_v40  ;;  %v28278_v37 = vpack.c.bf16 %v30719_v18, %v30723_v40  ;;  %v1706_v53 = vand.u32 4294901760, %v1161_v58  ;;  %28273 = vmatpush3.bf16.msra.mxu1 %v30721_v38  ;;  %26396 = vmatprep.mubr.f32.mxu0 %v30559_v61 }
 0x1bd   :  { %v1334_v4 = vsub.f32 %v30719_v18, %v1333_v51  ;;  %v30735_v3 = vsub.f32 %v25876_v43, %v1709_v57  ;;  %28274 = vmatprep.subr.bf16.mxu1 %v33789_v30 }
 0x1be   :  { %v1327_v6 = vsub.f32 %v30723_v40, %v1326_v29  ;;  %v30739_v31 = vpack.c.bf16 %v1709_v57, %v1706_v53  ;;  %v30741_v35 = vsub.f32 %v1161_v58, %v1706_v53  ;;  %v25879_v15 = vpop.f32.mrb[4].mxu0  ;;  %v30743_v20 = vpack.c.bf16 %v1333_v51, %v1326_v29  ;;  %v29914_v57 = vld [vmem:[#allocation4 + $0x8] sm:$0xff] }
 0x1bf   :  { %v1335_v39 = vand.u32 4294901760, %v1334_v4  ;;  %v1792_v41 = vand.u32 4294901760, %v30735_v3  ;;  %v2168_v45 = vand.u32 4294901760, %v25879_v15  ;;  %v1173_v55 = vpop.f32.mrb[5].mxu0  ;;  %25900 = vmatmul.mubr.f32.vlgmr.msra.gmra.mrb[0].mxu1 %v30727_v9  ;;  %26397 = vmatmul.mubr.f32.gmra.mrb[30].mxu0 %v30569_v49  ;;  %v9743_v58 = vmul.f32 %v29914_v57, %v29914_v57 }
 0x1c0   :  { %v1328_v63 = vand.u32 4294901760, %v1327_v6  ;;  %v1785_v10 = vand.u32 4294901760, %v30741_v35  ;;  %v2165_v48 = vand.u32 4294901760, %v1173_v55  ;;  %25906 = vmatprep.mubr.msk.f32.mxu1 %vm30068_vm1, %v33792_v24 }
 0x1c1   :  { %v1793_v52 = vsub.f32 %v30735_v3, %v1792_v41  ;;  %v30754_v2 = vsub.f32 %v25879_v15, %v2168_v45 }
 0x1c2   :  { %v1786_v61 = vsub.f32 %v30741_v35, %v1785_v10  ;;  %v30757_v28 = vpack.c.bf16 %v2168_v45, %v2165_v48  ;;  %v30759_v36 = vsub.f32 %v1173_v55, %v2165_v48  ;;  %v25882_v49 = vpop.f32.mrb[6].mxu0  ;;  %v28275_v25 = vpack.c.bf16 %v1335_v39, %v1328_v63 }
 0x1c3   :  { %v1794_v13 = vand.u32 4294901760, %v1793_v52  ;;  %v2251_v8 = vand.u32 4294901760, %v30754_v2  ;;  %v2627_v11 = vand.u32 4294901760, %v25882_v49  ;;  %v1185_v42 = vpop.f32.mrb[7].mxu0  ;;  %v30762_v16 = vpack.c.bf16 %v1792_v41, %v1785_v10 }
 0x1c4   :  { %v1787_v44 = vand.u32 4294901760, %v1786_v61  ;;  %v2244_v56 = vand.u32 4294901760, %v30759_v36  ;;  %v2624_v23 = vand.u32 4294901760, %v1185_v42  ;;  %28276 = vmatpush3.bf16.msra.mxu1 %v28275_v25  ;;  %v29915_v25 = vld [vmem:[#allocation4] sm:$0xff] }
 0x1c5   :  { %v2252_v33 = vsub.f32 %v30754_v2, %v2251_v8  ;;  %v30768_v27 = vsub.f32 %v25882_v49, %v2627_v11  ;;  %28277 = vmatprep.subr.bf16.mxu1 %v33789_v30 }
 0x1c6   :  { %v2245_v19 = vsub.f32 %v30759_v36, %v2244_v56  ;;  %v30772_v21 = vpack.c.bf16 %v2627_v11, %v2624_v23  ;;  %v30774_v26 = vsub.f32 %v1185_v42, %v2624_v23  ;;  %v25885_v32 = vpop.f32.mrb[8].mxu0  ;;  %v30776_v50 = vpack.c.bf16 %v1794_v13, %v1787_v44 }
 0x1c7   :  { %34015 = vst [vmem:[#allocation17_spill] sm:$0xff] %v30768_v27  ;;  %v2253_v54 = vand.u32 4294901760, %v2252_v33  ;;  %v2710_v0 = vand.u32 4294901760, %v30768_v27  ;;  %v3086_v1 = vand.u32 4294901760, %v25885_v32  ;;  %v1197_v5 = vpop.f32.mrb[9].mxu0  ;;  %25907 = vmatmul.mubr.f32.vlgmr.msra.gmra.mrb[0].mxu1 %v30702_v7  ;;  %v30780_v17 = vpack.c.bf16 %v2251_v8, %v2244_v56 }
 0x1c8   :  { %34016 = vst [vmem:[#allocation18_spill] sm:$0xff] %v30772_v21  ;;  %34017 = vst [vmem:[#allocation19_spill] sm:$0xff] %v30774_v26  ;;  %v2246_v18 = vand.u32 4294901760, %v2245_v19  ;;  %v2703_v40 = vand.u32 4294901760, %v30774_v26  ;;  %v3083_v51 = vand.u32 4294901760, %v1197_v5  ;;  %28279 = vmatpush3.bf16.msra.mxu1 %v28278_v37  ;;  %25913 = vmatprep.mubr.msk.f32.mxu1 %vm30068_vm1, %v33792_v24  ;;  %v9742_v13 = vmul.f32 %v29915_v25, %v29915_v25 }
 0x1c9   :  { %34018 = vst [vmem:[#allocation20_spill] sm:$0xff] %v30780_v17  ;;  %v2711_v29 = vsub.f32 %v30768_v27, %v2710_v0  ;;  %v30788_v53 = vsub.f32 %v25885_v32, %v3086_v1  ;;  %28280 = vmatprep.subr.bf16.mxu1 %v33789_v30  ;;  %v9762_v8 = vsel %vm90_vm0, %v9743_v58, 0  ;;  %v29925_v27 = vld [vmem:[#allocation4 + $0x58] sm:$0xff] }
 0x1ca   :  { %v2704_v4 = vsub.f32 %v30774_v26, %v2703_v40  ;;  %v30792_v6 = vpack.c.bf16 %v3086_v1, %v3083_v51  ;;  %v30794_v15 = vsub.f32 %v1197_v5, %v3083_v51  ;;  %v25888_v39 = vpop.f32.mrb[10].mxu0  ;;  %v30796_v41 = vpack.c.bf16 %v2253_v54, %v2246_v18  ;;  %v29917_v51 = vld [vmem:[#allocation4 + $0x18] sm:$0xff] }
 0x1cb   :  { %34019 = vst [vmem:[#allocation21_spill] sm:$0xff] %v30788_v53  ;;  %v2712_v37 = vand.u32 4294901760, %v2711_v29  ;;  %v3169_v45 = vand.u32 4294901760, %v30788_v53  ;;  %v3545_v55 = vand.u32 4294901760, %v25888_v39  ;;  %v1209_v63 = vpop.f32.mrb[11].mxu0  ;;  %v30799_v10 = vpack.c.bf16 %v2710_v0, %v2703_v40 }
 0x1cc   :  { %34020 = vst [vmem:[#allocation22_spill] sm:$0xff] %v30792_v6  ;;  %34021 = vst [vmem:[#allocation23_spill] sm:$0xff] %v30794_v15  ;;  %v2705_v48 = vand.u32 4294901760, %v2704_v4  ;;  %v3162_v52 = vand.u32 4294901760, %v30794_v15  ;;  %v3542_v49 = vand.u32 4294901760, %v1209_v63  ;;  %v9745_v61 = vmul.f32 %v29917_v51, %v29917_v51 }
 0x1cd   :  { %34022 = vst [vmem:[#allocation24_spill] sm:$0xff] %v30799_v10  ;;  %v3170_v11 = vsub.f32 %v30788_v53, %v3169_v45  ;;  %v30806_v42 = vsub.f32 %v25888_v39, %v3545_v55  ;;  %v29923_v53 = vld [vmem:[#allocation4 + $0x48] sm:$0xff] }
 0x1ce   :  { %v3163_v44 = vsub.f32 %v30794_v15, %v3162_v52  ;;  %v30809_v56 = vpack.c.bf16 %v3545_v55, %v3542_v49  ;;  %v30811_v23 = vsub.f32 %v1209_v63, %v3542_v49  ;;  %v25891_v33 = vpop.f32.mrb[12].mxu0  ;;  %v30813_v19 = vpack.c.bf16 %v2712_v37, %v2705_v48 }
 0x1cf   :  { %34023 = vst [vmem:[#allocation25_spill] sm:$0xff] %v30806_v42  ;;  %v3171_v32 = vand.u32 4294901760, %v3170_v11  ;;  %v33786_v54 = vand.u32 4294901760, %v30806_v42  ;;  %v4004_v0 = vand.u32 4294901760, %v25891_v33  ;;  %v1221_v1 = vpop.f32.mrb[13].mxu0  ;;  %25914 = vmatmul.mubr.f32.vlgmr.msra.gmra.mrb[0].mxu1 %v30707_v22  ;;  %v30817_v5 = vpack.c.bf16 %v3169_v45, %v3162_v52 }
 0x1d0   :  { %34024 = vst [vmem:[#allocation26_spill] sm:$0xff] %v30809_v56  ;;  %34025 = vst [vmem:[#allocation27_spill] sm:$0xff] %v30811_v23  ;;  %v3164_v18 = vand.u32 4294901760, %v3163_v44  ;;  %v33787_v40 = vand.u32 4294901760, %v30811_v23  ;;  %v4001_v57 = vand.u32 4294901760, %v1221_v1  ;;  %28282 = vmatpush3.bf16.msra.mxu1 %v30721_v38  ;;  %25920 = vmatprep.mubr.msk.f32.mxu1 %vm30068_vm1, %v33792_v24  ;;  %v30834_v45 = vand.u32 4294901760, %v9762_v8 }
 0x1d1   :  { %34026 = vst [vmem:[#allocation28_spill] sm:$0xff] %v30813_v19  ;;  %34027 = vst [vmem:[#allocation29_spill] sm:$0xff] %v30817_v5  ;;  %v30825_v58 = vsub.f32 %v25891_v33, %v4004_v0  ;;  %28283 = vmatprep.subr.bf16.mxu1 %v33789_v30  ;;  %v30839_v55 = vsub.f32 %v30806_v42, %v33786_v54  ;;  %v9759_v52 = vsel %vm90_vm0, %v9742_v13, 0  ;;  %v29921_v56 = vld [vmem:[#allocation4 + $0x38] sm:$0xff] }
 0x1d2   :  { %v30828_v29 = vpack.c.bf16 %v4004_v0, %v4001_v57  ;;  %v30830_v4 = vsub.f32 %v1221_v1, %v4001_v57  ;;  %v25894_v39 = vpop.f32.mrb[14].mxu0  ;;  %v30832_v37 = vpack.c.bf16 %v3171_v32, %v3164_v18  ;;  %v3622_v49 = vsub.f32 %v30811_v23, %v33787_v40  ;;  %v29916_v0 = vld [vmem:[#allocation4 + $0x10] sm:$0xff] }
 0x1d3   :  { %v4463_v63 = vand.u32 4294901760, %v25894_v39  ;;  %v1233_v48 = vpop.f32.mrb[15].mxu0  ;;  %v33785_v44 = vand.u32 4294901760, %v30825_v58  ;;  %v30850_v32 = vand.u32 4294901760, %v9759_v52  ;;  %v9744_v1 = vmul.f32 %v29916_v0, %v29916_v0 }
 0x1d4   :  { %34028 = vst [vmem:[#allocation30_spill] sm:$0xff] %v30828_v29  ;;  %34029 = vst [vmem:[#allocation31_spill] sm:$0xff] %v30830_v4  ;;  %v4460_v11 = vand.u32 4294901760, %v1233_v48  ;;  %v33788_v18 = vand.u32 4294901760, %v30830_v4  ;;  %v3630_v43 = vand.u32 4294901760, %v30839_v55  ;;  %v30864_v46 = vsub.f32 %v9762_v8, %v30834_v45  ;;  %v29920_v29 = vld [vmem:[#allocation4 + $0x30] sm:$0xff] }
 0x1d5   :  { %34030 = vst [vmem:[#allocation32_spill] sm:$0xff] %v30832_v37  ;;  %v30848_v33 = vsub.f32 %v25894_v39, %v4463_v63  ;;  %v30861_v39 = vsub.f32 %v9759_v52, %v30850_v32  ;;  %v3623_v0 = vand.u32 4294901760, %v3622_v49  ;;  %v9765_v51 = vsel %vm90_vm0, %v9744_v1, 0  ;;  %v29918_v1 = vld [vmem:[#allocation4 + $0x20] sm:$0xff] }
 0x1d6   :  { %v30853_v57 = vpack.c.bf16 %v4463_v63, %v4460_v11  ;;  %v30855_v13 = vsub.f32 %v1233_v48, %v4460_v11  ;;  %v30876_v55 = vsub.f32 %v30825_v58, %v33785_v44  ;;  %v33796_v52 = vand.u32 4294901760, %v30864_v46 }
 0x1d7   :  { %v33791_v25 = vand.u32 4294901760, %v30848_v33  ;;  %25921 = vmatmul.mubr.f32.vlgmr.msra.gmra.mrb[0].mxu1 %v30712_v34  ;;  %v33794_v8 = vand.u32 4294901760, %v30861_v39  ;;  %v30881_v49 = vand.u32 4294901760, %v9765_v51  ;;  %v9768_v11 = vsel %vm90_vm0, %v9745_v61, 0 }
 0x1d8   :  { %34031 = vst [vmem:[#allocation33_spill] sm:$0xff] %v30853_v57  ;;  %v33798_v63 = vand.u32 4294901760, %v30855_v13  ;;  %28285 = vmatpush3.bf16.msra.mxu1 %v30743_v20  ;;  %25927 = vmatprep.mubr.msk.f32.mxu1 %vm30068_vm1, %v33792_v24  ;;  %v30886_v20 = vsub.f32 %v30830_v4, %v33788_v18  ;;  %v9746_v48 = vmul.f32 %v29918_v1, %v29918_v1  ;;  %v30908_v61 = vand.u32 4294901760, %v9768_v11 }
 0x1d9   :  { %28286 = vmatprep.subr.bf16.mxu1 %v33789_v30  ;;  %v9747_v44 = vmul.f32 %v29919_v47, %v29919_v47  ;;  %v30892_v54 = vsub.f32 %v30848_v33, %v33791_v25  ;;  %v9876_v40 = vsub.f32 %v30861_v39, %v33794_v8  ;;  %v9886_v18 = vsub.f32 %v30864_v46, %v33796_v52 }
 0x1da   :  { %v30901_v30 = vsub.f32 %v9765_v51, %v30881_v49  ;;  %v30906_v47 = vsub.f32 %v30855_v13, %v33798_v63  ;;  %v9771_v1 = vsel %vm90_vm0, %v9746_v48, 0  ;;  %v30916_v51 = vsub.f32 %v9768_v11, %v30908_v61 }
 0x1db   :  { %v9774_v25 = vsel %vm90_vm0, %v9747_v44, 0  ;;  %v9877_v24 = vand.u32 4294901760, %v9876_v40  ;;  %v9887_v8 = vand.u32 4294901760, %v9886_v18  ;;  %v30913_v57 = vand.u32 4294901760, %v9771_v1 }
 0x1dc   :  { %v33801_v14 = vand.u32 4294901760, %v30901_v30  ;;  %v30918_v52 = vand.u32 4294901760, %v9774_v25  ;;  %v9748_v63 = vmul.f32 %v29920_v29, %v29920_v29  ;;  %v9749_v5 = vmul.f32 %v29921_v56, %v29921_v56 }
 0x1dd   :  { %26739 = vmatprep.mubr.f32.mxu0 %v9877_v24  ;;  %v30926_v44 = vsub.f32 %v9771_v1, %v30913_v57  ;;  %v30928_v18 = vpack.c.bf16 %v3630_v43, %v3623_v0  ;;  %v34033_v48 = vmov 0.0   ;;  %v33803_v56 = vand.u32 4294901760, %v30916_v51 }
 0x1de   :  { %v9896_v40 = vsub.f32 %v30901_v30, %v33801_v14  ;;  %v30935_v29 = vsub.f32 %v9774_v25, %v30918_v52  ;;  %v9777_v24 = vsel %vm90_vm0, %v9748_v63, 0  ;;  %v9780_v11 = vsel %vm90_vm0, %v9749_v5, 0  ;;  %26740 = vmatmul.mubr.f32.vlgmr.msra.gmra.mrb[32].mxu0 %v9887_v8  ;;  %24413 = vst.msk [vmem:[#allocation9] sm:$0x1] %vm24412_vm3, %v34033_v48 }
 0x1df   :  { %25928 = vmatmul.mubr.f32.vlgmr.msra.gmra.mrb[0].mxu1 %v30702_v7  ;;  %34032 = vst [vmem:[#allocation34_spill] sm:$0xff] %v30928_v18  ;;  %v34034_v14 = vmov 0.0|0.0   ;;  %v33806_v43 = vand.u32 4294901760, %v30926_v44  ;;  %v30941_v0 = vand.u32 4294901760, %v9777_v24  ;;  %v9906_v15 = vsub.f32 %v30916_v51, %v33803_v56  ;;  %v29922_v18 = vld [vmem:[#allocation4 + $0x40] sm:$0xff]  ;;  %28590 = vmatpush3.bf16.msra.mxu0 %v30216_v62 }
 0x1e0   :  { %28288 = vmatpush3.bf16.msra.mxu1 %v30721_v38  ;;  %25934 = vmatprep.mubr.msk.f32.mxu1 %vm30068_vm1, %v34033_v48  ;;  %v9897_v1 = vand.u32 4294901760, %v9896_v40  ;;  %v30943_v38 = vand.u32 4294901760, %v9780_v11  ;;  %v33810_v25 = vand.u32 4294901760, %v30935_v29  ;;  %v9750_v63 = vmul.f32 %v29922_v18, %v29922_v18 }
 0x1e1   :  { %28289 = vmatprep.subr.bf16.mxu1 %v34034_v14  ;;  %v9751_v5 = vmul.f32 %v29923_v53, %v29923_v53  ;;  %v4082_v8 = vand.u32 4294901760, %v30886_v20  ;;  %v9916_v40 = vsub.f32 %v30926_v44, %v33806_v43  ;;  %v30955_v37 = vsub.f32 %v9777_v24, %v30941_v0  ;;  %28592 = vmatprep.subr.bf16.mxu0 %v30307_v59 }
 0x1e2   :  { %26742 = vmatprep.mubr.f32.mxu0 %v9897_v1  ;;  %v30958_v56 = vsub.f32 %v9780_v11, %v30943_v38  ;;  %v9907_v18 = vand.u32 4294901760, %v9906_v15  ;;  %v9926_v53 = vsub.f32 %v30935_v29, %v33810_v25  ;;  %v9783_v20 = vsel %vm90_vm0, %v9750_v63, 0  ;;  %v29924_v15 = vld [vmem:[#allocation4 + $0x50] sm:$0xff] }
 0x1e3   :  { %v9786_v1 = vsel %vm90_vm0, %v9751_v5, 0  ;;  %v9917_v62 = vand.u32 4294901760, %v9916_v40  ;;  %v33812_v43 = vand.u32 4294901760, %v30955_v37  ;;  %v30968_v6 = vand.u32 4294901760, %v9783_v20 }
 0x1e4   :  { %34035 = vst [vmem:[#allocation35_spill] sm:$0xff] %v30958_v56  ;;  %v33811_v24 = vand.u32 4294901760, %v30958_v56  ;;  %26743 = vmatmul.mubr.f32.gmra.mrb[34].mxu0 %v9907_v18  ;;  %v9927_v11 = vand.u32 4294901760, %v9926_v53  ;;  %v30970_v10 = vand.u32 4294901760, %v9786_v1  ;;  %v9752_v26 = vmul.f32 %v29924_v15, %v29924_v15 }
 0x1e5   :  { %v9753_v19 = vmul.f32 %v29925_v27, %v29925_v27  ;;  %v4548_v25 = vand.u32 4294901760, %v30892_v54  ;;  %26745 = vmatprep.mubr.f32.mxu0 %v9917_v62  ;;  %v9936_v63 = vsub.f32 %v30955_v37, %v33812_v43  ;;  %v30981_v40 = vsub.f32 %v9783_v20, %v30968_v6 }
 0x1e6   :  { %v9946_v5 = vsub.f32 %v30958_v56, %v33811_v24  ;;  %v30987_v27 = vsub.f32 %v9786_v1, %v30970_v10  ;;  %v9789_v62 = vsel %vm90_vm0, %v9752_v26, 0  ;;  %v34036_v18 = vand.u32 4294901760, %v30811_v23  ;;  %v29927_v23 = vld [vmem:[#allocation4 + $0x68] sm:$0xff] }
 0x1e7   :  { %25935 = vmatmul.mubr.f32.vlgmr.msra.gmra.mrb[0].mxu1 %v30702_v7  ;;  %v9792_v54 = vsel %vm90_vm0, %v9753_v19, 0  ;;  %v34037_v53 = vand.u32 4294901760, %v30806_v42  ;;  %v9937_v20 = vand.u32 4294901760, %v9936_v63  ;;  %v33818_v43 = vand.u32 4294901760, %v30981_v40  ;;  %v29926_v19 = vld [vmem:[#allocation4 + $0x60] sm:$0xff] }
 0x1e8   :  { %28291 = vmatpush3.bf16.msra.mxu1 %v30739_v31  ;;  %25941 = vmatprep.mubr.msk.f32.mxu1 %vm30068_vm1, %v34033_v48  ;;  %v9947_v24 = vand.u32 4294901760, %v9946_v5  ;;  %v30999_v21 = vand.u32 4294901760, %v9789_v62  ;;  %v33817_v1 = vand.u32 4294901760, %v30987_v27  ;;  %v31002_v26 = vand.u32 4294901760, %v9792_v54 }
 0x1e9   :  { %v30995_v15 = vpack.c.bf16 %v34037_v53, %v34036_v18  ;;  %28292 = vmatprep.subr.bf16.mxu1 %v34034_v14  ;;  %26746 = vmatmul.mubr.f32.gmra.mrb[36].mxu0 %v9927_v11  ;;  %v9754_v17 = vmul.f32 %v29926_v19, %v29926_v19  ;;  %v9755_v56 = vmul.f32 %v29927_v23, %v29927_v23  ;;  %v4541_v18 = vand.u32 4294901760, %v30906_v47 }
 0x1ea   :  { %26748 = vmatprep.mubr.f32.mxu0 %v9937_v20  ;;  %v9956_v63 = vsub.f32 %v30981_v40, %v33818_v43  ;;  %v31010_v5 = vsub.f32 %v9789_v62, %v30999_v21  ;;  %v34040_v11 = vand.u32 4294901760, %v30876_v55  ;;  %v9966_v23 = vsub.f32 %v30987_v27, %v33817_v1  ;;  %v29928_v43 = vld [vmem:[#allocation4 + $0x70] sm:$0xff] }
 0x1eb   :  { %34038 = vst [vmem:[#allocation36_spill] sm:$0xff] %v30995_v15  ;;  %25942 = vmatmul.mubr.f32.vlgmr.msra.gmra.mrb[2].mxu1 %v30727_v9  ;;  %v31023_v47 = vsub.f32 %v9792_v54, %v31002_v26  ;;  %v9795_v20 = vsel %vm90_vm0, %v9754_v17, 0  ;;  %v9798_v62 = vsel %vm90_vm0, %v9755_v56, 0  ;;  %v9756_v54 = vmul.f32 %v29928_v43, %v29928_v43 }
 0x1ec   :  { %34039 = vst [vmem:[#allocation37_spill] sm:$0xff] %v31010_v5  ;;  %v31014_v53 = vpack.c.bf16 %v34040_v11, %v4082_v8  ;;  %28294 = vmatpush3.bf16.msra.mxu1 %v30776_v50  ;;  %25948 = vmatprep.mubr.msk.f32.mxu1 %vm30068_vm1, %v34033_v48  ;;  %v9957_v55 = vand.u32 4294901760, %v9956_v63  ;;  %v33819_v8 = vand.u32 4294901760, %v31010_v5  ;;  %v31029_v50 = vand.u32 4294901760, %v9795_v20 }
 0x1ed   :  { %28295 = vmatprep.subr.bf16.mxu1 %v34034_v14  ;;  %v31031_v19 = vand.u32 4294901760, %v9798_v62  ;;  %26749 = vmatmul.mubr.f32.gmra.mrb[38].mxu0 %v9947_v24  ;;  %v9967_v11 = vand.u32 4294901760, %v9966_v23  ;;  %v34042_v24 = vand.u32 4294901760, %v30830_v4  ;;  %v34043_v23 = vand.u32 4294901760, %v30825_v58 }
 0x1ee   :  { %34041 = vst [vmem:[#allocation38_spill] sm:$0xff] %v31014_v53  ;;  %v29929_v53 = vld [vmem:[#allocation4 + $0x78] sm:$0xff]  ;;  %26751 = vmatprep.mubr.f32.mxu0 %v9957_v55  ;;  %v9976_v17 = vsub.f32 %v31010_v5, %v33819_v8  ;;  %v31038_v56 = vsub.f32 %v9795_v20, %v31029_v50  ;;  %v34045_v43 = vand.u32 4294901760, %v31023_v47  ;;  %v9801_v55 = vsel %vm90_vm0, %v9756_v54, 0 }
 0x1ef   :  { %v9757_v15 = vmul.f32 %v29929_v53, %v29929_v53  ;;  %v31041_v63 = vsub.f32 %v9798_v62, %v31031_v19  ;;  %v31047_v1 = vpack.c.bf16 %v34043_v23, %v34042_v24  ;;  %v31054_v42 = vpack.c.bf16 %v4548_v25, %v4541_v18 }
 0x1f0   :  { %v9986_v53 = vsub.f32 %v31023_v47, %v34045_v43  ;;  %v9977_v20 = vand.u32 4294901760, %v9976_v17  ;;  %v9995_v62 = vand.u32 4294901760, %v31038_v56  ;;  %v31058_v4 = vand.u32 4294901760, %v9801_v55 }
 0x1f1   :  { %34044 = vst [vmem:[#allocation39_spill] sm:$0xff] %v31047_v1  ;;  %v9804_v8 = vsel %vm90_vm0, %v9757_v15, 0  ;;  %v10005_v5 = vand.u32 4294901760, %v31041_v63  ;;  %26752 = vmatmul.mubr.f32.gmra.mrb[40].mxu0 %v9967_v11  ;;  %v34046_v1 = vand.u32 4294901760, %v30855_v13  ;;  %v34047_v43 = vand.u32 4294901760, %v30848_v33 }
 0x1f2   :  { %v9987_v24 = vand.u32 4294901760, %v9986_v53  ;;  %v31060_v23 = vand.u32 4294901760, %v9804_v8  ;;  %26754 = vmatprep.mubr.f32.mxu0 %v9977_v20  ;;  %v9996_v25 = vsub.f32 %v31038_v56, %v9995_v62  ;;  %v31076_v18 = vsub.f32 %v9801_v55, %v31058_v4 }
 0x1f3   :  { %v31066_v54 = vpack.c.bf16 %v34047_v43, %v34046_v1  ;;  %25949 = vmatmul.mubr.f32.vlgmr.msra.gmra.mrb[2].mxu1 %v30702_v7  ;;  %v10006_v15 = vsub.f32 %v31041_v63, %v10005_v5  ;;  %v34048_v11 = vpack.c.bf16 %v30735_v3, %v30741_v35 }
 0x1f4   :  { %25955 = vmatprep.mubr.msk.f32.mxu1 %vm30068_vm1, %v34033_v48  ;;  %v31084_v1 = vsub.f32 %v9804_v8, %v31060_v23  ;;  %v9997_v17 = vand.u32 4294901760, %v9996_v25  ;;  %v10015_v53 = vand.u32 4294901760, %v31076_v18  ;;  %v34056_v25 = vand.u32 4294901760, %v30901_v30 }
 0x1f5   :  { %28297 = vmatpush3.bf16.msra.mxu1 %v34048_v11  ;;  %26755 = vmatmul.mubr.f32.gmra.mrb[42].mxu0 %v9987_v24  ;;  %v10007_v20 = vand.u32 4294901760, %v10006_v15  ;;  %v34054_v24 = vld [vmem:[#allocation18_spill] sm:$0xff]  ;;  %v34057_v15 = vld [vmem:[#allocation28_spill] sm:$0xff]  ;;  %v34061_v11 = vand.u32 4294901760, %v30955_v37 }
 0x1f6   :  { %28298 = vmatprep.subr.bf16.mxu1 %v34034_v14  ;;  %v10025_v55 = vand.u32 4294901760, %v31084_v1  ;;  %26757 = vmatprep.mubr.f32.mxu0 %v9997_v17  ;;  %v10016_v3 = vsub.f32 %v31076_v18, %v10015_v53  ;;  %v34062_v17 = vld [vmem:[#allocation17_spill] sm:$0xff] }
 0x1f8   :  { %v10026_v35 = vsub.f32 %v31084_v1, %v10025_v55  ;;  %v10017_v8 = vand.u32 4294901760, %v10016_v3 }
 0x1f9   :  { %26758 = vmatmul.mubr.f32.gmra.mrb[44].mxu0 %v10007_v20  ;;  %v34063_v20 = vld [vmem:[#allocation19_spill] sm:$0xff] }
 0x1fa   :  { %v10027_v43 = vand.u32 4294901760, %v10026_v35  ;;  %26760 = vmatprep.mubr.f32.mxu0 %v10017_v8  ;;  %v34064_v3 = vpack.c.bf16 %v34062_v17, %v34063_v20  ;;  %v34069_v35 = vand.u32 4294901760, %v31023_v47 }
 0x1fb   :  { %25956 = vmatmul.mubr.f32.vlgmr.msra.gmra.mrb[2].mxu1 %v30707_v22 }
 0x1fc   :  { %28300 = vmatpush3.bf16.msra.mxu1 %v30739_v31  ;;  %25962 = vmatprep.mubr.msk.f32.mxu1 %vm30068_vm1, %v34033_v48 }
 0x1fd   :  { %28301 = vmatprep.subr.bf16.mxu1 %v34034_v14  ;;  %26761 = vmatmul.mubr.f32.gmra.mrb[46].mxu0 %v10027_v43 }
 0x1fe   :  { %26767 = vmatprep.mubr.f32.mxu0 %v30850_v32 }
 0x201   :  { %26768 = vmatmul.mubr.f32.vlgmr.msra.gmra.mrb[32].mxu0 %v30834_v45 }
 0x202   :  { %26770 = vmatprep.mubr.f32.mxu0 %v30881_v49  ;;  %28594 = vmatpush3.bf16.msra.mxu0 %v30307_v59 }
 0x203   :  { %25963 = vmatmul.mubr.f32.vlgmr.msra.gmra.mrb[2].mxu1 %v30712_v34  ;;  %28596 = vmatprep.subr.bf16.mxu0 %v30140_v12 }
 0x204   :  { %28303 = vmatpush3.bf16.msra.mxu1 %v30762_v16  ;;  %25969 = vmatprep.mubr.msk.f32.mxu1 %vm30068_vm1, %v34033_v48  ;;  %v34052_v16 = vld [vmem:[#allocation37_spill] sm:$0xff] }
 0x205   :  { %28304 = vmatprep.subr.bf16.mxu1 %v34034_v14  ;;  %26771 = vmatmul.mubr.f32.gmra.mrb[34].mxu0 %v30908_v61 }
 0x206   :  { %26773 = vmatprep.mubr.f32.mxu0 %v30913_v57 }
 0x209   :  { %26774 = vmatmul.mubr.f32.gmra.mrb[36].mxu0 %v30918_v52 }
 0x20a   :  { %26776 = vmatprep.mubr.f32.mxu0 %v30941_v0 }
 0x20b   :  { %25970 = vmatmul.mubr.f32.vlgmr.msra.gmra.mrb[2].mxu1 %v30702_v7 }
 0x20c   :  { %28306 = vmatpush3.bf16.msra.mxu1 %v30739_v31  ;;  %25976 = vmatprep.mubr.msk.f32.mxu1 %vm30068_vm1, %v34033_v48  ;;  %v34049_v31 = vpack.c.bf16 %v30754_v2, %v30759_v36  ;;  %v34050_v2 = vld [vmem:[#allocation35_spill] sm:$0xff]  ;;  %v34051_v36 = vld [vmem:[#allocation20_spill] sm:$0xff] }
 0x20d   :  { %28307 = vmatprep.subr.bf16.mxu1 %v34034_v14  ;;  %26777 = vmatmul.mubr.f32.gmra.mrb[38].mxu0 %v30943_v38 }
 0x20e   :  { %26779 = vmatprep.mubr.f32.mxu0 %v30968_v6 }
 0x211   :  { %26780 = vmatmul.mubr.f32.gmra.mrb[40].mxu0 %v30970_v10 }
 0x212   :  { %26782 = vmatprep.mubr.f32.mxu0 %v30999_v21 }
 0x213   :  { %25977 = vmatmul.mubr.f32.vlgmr.msra.gmra.mrb[2].mxu1 %v30702_v7 }
 0x214   :  { %28309 = vmatpush3.bf16.msra.mxu1 %v30757_v28  ;;  %25983 = vmatprep.mubr.msk.f32.mxu1 %vm30068_vm1, %v34033_v48 }
 0x215   :  { %28310 = vmatprep.subr.bf16.mxu1 %v34034_v14  ;;  %26783 = vmatmul.mubr.f32.gmra.mrb[42].mxu0 %v31002_v26 }
 0x216   :  { %26785 = vmatprep.mubr.f32.mxu0 %v31029_v50 }
 0x217   :  { %25984 = vmatmul.mubr.f32.vlgmr.msra.gmra.mrb[4].mxu1 %v30727_v9 }
 0x218   :  { %28312 = vmatpush3.bf16.msra.mxu1 %v30796_v41  ;;  %25990 = vmatprep.mubr.msk.f32.mxu1 %vm30068_vm1, %v34033_v48  ;;  %v34053_v41 = vand.u32 4294901760, %v30861_v39 }
 0x219   :  { %28313 = vmatprep.subr.bf16.mxu1 %v34034_v14  ;;  %26786 = vmatmul.mubr.f32.gmra.mrb[44].mxu0 %v31031_v19 }
 0x21a   :  { %26788 = vmatprep.mubr.f32.mxu0 %v31058_v4 }
 0x21d   :  { %26789 = vmatmul.mubr.f32.gmra.mrb[46].mxu0 %v31060_v23 }
 0x21e   :  { %26795 = vmatprep.mubr.f32.mxu0 %v30861_v39  ;;  %v34058_v39 = vand.u32 4294901760, %v30916_v51 }
 0x21f   :  { %25991 = vmatmul.mubr.f32.vlgmr.msra.gmra.mrb[4].mxu1 %v30702_v7 }
 0x220   :  { %28315 = vmatpush3.bf16.msra.mxu1 %v34049_v31  ;;  %25997 = vmatprep.mubr.msk.f32.mxu1 %vm30068_vm1, %v34033_v48 }
 0x221   :  { %28316 = vmatprep.subr.bf16.mxu1 %v34034_v14  ;;  %26796 = vmatmul.mubr.f32.vlgmr.msra.gmra.mrb[32].mxu0 %v30864_v46 }
 0x222   :  { %26798 = vmatprep.mubr.f32.mxu0 %v30901_v30  ;;  %28598 = vmatpush3.bf16.msra.mxu0 %v30140_v12  ;;  %v34060_v30 = vand.u32 4294901760, %v30935_v29 }
 0x223   :  { %28600 = vmatprep.subr.bf16.mxu0 %v30313_v60 }
 0x225   :  { %26799 = vmatmul.mubr.f32.gmra.mrb[34].mxu0 %v30916_v51  ;;  %v34065_v51 = vand.u32 4294901760, %v34050_v2 }
 0x226   :  { %26801 = vmatprep.mubr.f32.mxu0 %v30926_v44 }
 0x227   :  { %25998 = vmatmul.mubr.f32.vlgmr.msra.gmra.mrb[4].mxu1 %v30707_v22 }
 0x228   :  { %28318 = vmatpush3.bf16.msra.mxu1 %v30757_v28  ;;  %26004 = vmatprep.mubr.msk.f32.mxu1 %vm30068_vm1, %v34033_v48 }
 0x229   :  { %28319 = vmatprep.subr.bf16.mxu1 %v34034_v14  ;;  %26802 = vmatmul.mubr.f32.gmra.mrb[36].mxu0 %v30935_v29  ;;  %v34067_v29 = vand.u32 4294901760, %v30987_v27 }
 0x22a   :  { %26804 = vmatprep.mubr.f32.mxu0 %v30955_v37  ;;  %v34068_v37 = vand.u32 4294901760, %v34052_v16 }
 0x22d   :  { %26805 = vmatmul.mubr.f32.gmra.mrb[38].mxu0 %v34050_v2 }
 0x22e   :  { %26807 = vmatprep.mubr.f32.mxu0 %v30981_v40 }
 0x22f   :  { %26005 = vmatmul.mubr.f32.vlgmr.msra.gmra.mrb[4].mxu1 %v30712_v34 }
 0x230   :  { %28321 = vmatpush3.bf16.msra.mxu1 %v34051_v36  ;;  %26011 = vmatprep.mubr.msk.f32.mxu1 %vm30068_vm1, %v34033_v48 }
 0x231   :  { %28322 = vmatprep.subr.bf16.mxu1 %v34034_v14  ;;  %26808 = vmatmul.mubr.f32.gmra.mrb[40].mxu0 %v30987_v27  ;;  %v34071_v27 = vld [vmem:[#allocation22_spill] sm:$0xff] }
 0x232   :  { %26810 = vmatprep.mubr.f32.mxu0 %v34052_v16 }
 0x235   :  { %26811 = vmatmul.mubr.f32.gmra.mrb[42].mxu0 %v31023_v47 }
 0x236   :  { %26813 = vmatprep.mubr.f32.mxu0 %v31038_v56 }
 0x237   :  { %26012 = vmatmul.mubr.f32.vlgmr.msra.gmra.mrb[4].mxu1 %v30702_v7 }
 0x238   :  { %28324 = vmatpush3.bf16.msra.mxu1 %v30757_v28  ;;  %26018 = vmatprep.mubr.msk.f32.mxu1 %vm30068_vm1, %v34033_v48  ;;  %v34055_v28 = vand.u32 4294901760, %v30864_v46  ;;  %v34059_v46 = vand.u32 4294901760, %v30926_v44  ;;  %v34066_v44 = vand.u32 4294901760, %v30981_v40  ;;  %v34070_v40 = vld [vmem:[#allocation24_spill] sm:$0xff] }
 0x239   :  { %28325 = vmatprep.subr.bf16.mxu1 %v34034_v14  ;;  %26814 = vmatmul.mubr.f32.gmra.mrb[44].mxu0 %v31041_v63 }
 0x23a   :  { %26816 = vmatprep.mubr.f32.mxu0 %v31076_v18  ;;  %v34074_v18 = vld [vmem:[#allocation23_spill] sm:$0xff] }
 0x23d   :  { %26817 = vmatmul.mubr.f32.gmra.mrb[46].mxu0 %v31084_v1 }
 0x23e   :  { %26823 = vmatprep.mubr.f32.mxu0 %v34053_v41 }
 0x23f   :  { %26019 = vmatmul.mubr.f32.vlgmr.msra.gmra.mrb[4].mxu1 %v30702_v7 }
 0x240   :  { %28327 = vmatpush3.bf16.msra.mxu1 %v34054_v24  ;;  %26025 = vmatprep.mubr.msk.f32.mxu1 %vm30068_vm1, %v34033_v48 }
 0x241   :  { %28328 = vmatprep.subr.bf16.mxu1 %v34034_v14  ;;  %26824 = vmatmul.mubr.f32.vlgmr.msra.gmra.mrb[32].mxu0 %v34055_v28 }
 0x242   :  { %26826 = vmatprep.mubr.f32.mxu0 %v34056_v25  ;;  %28602 = vmatpush3.bf16.msra.mxu0 %v30313_v60 }
 0x243   :  { %26026 = vmatmul.mubr.f32.vlgmr.msra.gmra.mrb[6].mxu1 %v30727_v9  ;;  %28604 = vmatprep.subr.bf16.mxu0 %v30140_v12 }
 0x244   :  { %28330 = vmatpush3.bf16.msra.mxu1 %v34057_v15  ;;  %26032 = vmatprep.mubr.msk.f32.mxu1 %vm30068_vm1, %v34033_v48 }
 0x245   :  { %28331 = vmatprep.subr.bf16.mxu1 %v34034_v14  ;;  %26827 = vmatmul.mubr.f32.gmra.mrb[34].mxu0 %v34058_v39 }
 0x246   :  { %26829 = vmatprep.mubr.f32.mxu0 %v34059_v46 }
 0x249   :  { %26830 = vmatmul.mubr.f32.gmra.mrb[36].mxu0 %v34060_v30 }
 0x24a   :  { %26832 = vmatprep.mubr.f32.mxu0 %v34061_v11 }
 0x24b   :  { %26033 = vmatmul.mubr.f32.vlgmr.msra.gmra.mrb[6].mxu1 %v30702_v7 }
 0x24c   :  { %28333 = vmatpush3.bf16.msra.mxu1 %v34064_v3  ;;  %26039 = vmatprep.mubr.msk.f32.mxu1 %vm30068_vm1, %v34033_v48 }
 0x24d   :  { %28334 = vmatprep.subr.bf16.mxu1 %v34034_v14  ;;  %26833 = vmatmul.mubr.f32.gmra.mrb[38].mxu0 %v34065_v51 }
 0x24e   :  { %26835 = vmatprep.mubr.f32.mxu0 %v34066_v44 }
 0x251   :  { %26836 = vmatmul.mubr.f32.gmra.mrb[40].mxu0 %v34067_v29 }
 0x252   :  { %26838 = vmatprep.mubr.f32.mxu0 %v34068_v37 }
 0x253   :  { %26040 = vmatmul.mubr.f32.vlgmr.msra.gmra.mrb[6].mxu1 %v30707_v22 }
 0x254   :  { %28336 = vmatpush3.bf16.msra.mxu1 %v34054_v24  ;;  %26046 = vmatprep.mubr.msk.f32.mxu1 %vm30068_vm1, %v34033_v48 }
 0x255   :  { %28337 = vmatprep.subr.bf16.mxu1 %v34034_v14  ;;  %26839 = vmatmul.mubr.f32.gmra.mrb[42].mxu0 %v34069_v35 }
 0x256   :  { %26841 = vmatprep.mubr.f32.mxu0 %v9995_v62  ;;  %v34073_v62 = vld [vmem:[#allocation21_spill] sm:$0xff] }
 0x257   :  { %v34075_v1 = vpack.c.bf16 %v34073_v62, %v34074_v18 }
 0x259   :  { %26842 = vmatmul.mubr.f32.gmra.mrb[44].mxu0 %v10005_v5  ;;  %v34072_v5 = vld [vmem:[#allocation32_spill] sm:$0xff] }
 0x25a   :  { %26844 = vmatprep.mubr.f32.mxu0 %v10015_v53 }
 0x25b   :  { %26047 = vmatmul.mubr.f32.vlgmr.msra.gmra.mrb[6].mxu1 %v30712_v34 }
 0x25c   :  { %28339 = vmatpush3.bf16.msra.mxu1 %v34070_v40  ;;  %26053 = vmatprep.mubr.msk.f32.mxu1 %vm30068_vm1, %v34033_v48 }
 0x25d   :  { %28340 = vmatprep.subr.bf16.mxu1 %v34034_v14  ;;  %26845 = vmatmul.mubr.f32.gmra.mrb[46].mxu0 %v10025_v55 }
 0x25e   :  { %26851 = vmatprep.mubr.f32.mxu0 %v30850_v32 }
 0x261   :  { %26852 = vmatmul.mubr.f32.vlgmr.msra.gmra.mrb[32].mxu0 %v30834_v45 }
 0x262   :  { %26854 = vmatprep.mubr.f32.mxu0 %v30881_v49  ;;  %28606 = vmatpush3.bf16.msra.mxu0 %v30140_v12 }
 0x263   :  { %26054 = vmatmul.mubr.f32.vlgmr.msra.gmra.mrb[6].mxu1 %v30702_v7  ;;  %28752 = vmatprep.subr.bf16.mxu0 %v30140_v12 }
 0x264   :  { %28342 = vmatpush3.bf16.msra.mxu1 %v34054_v24  ;;  %26060 = vmatprep.mubr.msk.f32.mxu1 %vm30068_vm1, %v34033_v48 }
 0x265   :  { %28343 = vmatprep.subr.bf16.mxu1 %v34034_v14  ;;  %26855 = vmatmul.mubr.f32.gmra.mrb[34].mxu0 %v30908_v61 }
 0x266   :  { %26857 = vmatprep.mubr.f32.mxu0 %v30913_v57 }
 0x269   :  { %26858 = vmatmul.mubr.f32.gmra.mrb[36].mxu0 %v30918_v52 }
 0x26a   :  { %26860 = vmatprep.mubr.f32.mxu0 %v30941_v0 }
 0x26b   :  { %26061 = vmatmul.mubr.f32.vlgmr.msra.gmra.mrb[6].mxu1 %v30702_v7 }
 0x26c   :  { %28345 = vmatpush3.bf16.msra.mxu1 %v34071_v27  ;;  %26067 = vmatprep.mubr.msk.f32.mxu1 %vm30068_vm1, %v34033_v48 }
 0x26d   :  { %28346 = vmatprep.subr.bf16.mxu1 %v34034_v14  ;;  %26861 = vmatmul.mubr.f32.gmra.mrb[38].mxu0 %v30943_v38 }
 0x26e   :  { %26863 = vmatprep.mubr.f32.mxu0 %v30968_v6 }
 0x26f   :  { %26068 = vmatmul.mubr.f32.vlgmr.msra.gmra.mrb[8].mxu1 %v30727_v9 }
 0x270   :  { %28348 = vmatpush3.bf16.msra.mxu1 %v34072_v5  ;;  %26074 = vmatprep.mubr.msk.f32.mxu1 %vm30068_vm1, %v34033_v48 }
 0x271   :  { %28349 = vmatprep.subr.bf16.mxu1 %v34034_v14  ;;  %26864 = vmatmul.mubr.f32.gmra.mrb[40].mxu0 %v30970_v10 }
 0x272   :  { %26866 = vmatprep.mubr.f32.mxu0 %v30999_v21 }
 0x275   :  { %26867 = vmatmul.mubr.f32.gmra.mrb[42].mxu0 %v31002_v26 }
 0x276   :  { %v26377_v47 = vpop.f32.mrb[16].mxu0  ;;  %26869 = vmatprep.mubr.f32.mxu0 %v31029_v50 }
 0x277   :  { %v6074_v56 = vand.u32 4294901760, %v26377_v47  ;;  %26075 = vmatmul.mubr.f32.vlgmr.msra.gmra.mrb[8].mxu1 %v30702_v7  ;;  %v5976_v63 = vpop.f32.mrb[17].mxu0 }
 0x278   :  { %28351 = vmatpush3.bf16.msra.mxu1 %v34075_v1  ;;  %v6071_v53 = vand.u32 4294901760, %v5976_v63  ;;  %26081 = vmatprep.mubr.msk.f32.mxu1 %vm30068_vm1, %v34033_v48 }
 0x279   :  { %v31275_v55 = vsub.f32 %v26377_v47, %v6074_v56  ;;  %28352 = vmatprep.subr.bf16.mxu1 %v34034_v14  ;;  %26870 = vmatmul.mubr.f32.gmra.mrb[44].mxu0 %v31031_v19 }
 0x27a   :  { %v31278_v8 = vpack.c.bf16 %v6074_v56, %v6071_v53  ;;  %v31280_v43 = vsub.f32 %v5976_v63, %v6071_v53  ;;  %v26380_v31 = vpop.f32.mrb[18].mxu0  ;;  %26872 = vmatprep.mubr.f32.mxu0 %v31058_v4 }
 0x27b   :  { %v6157_v2 = vand.u32 4294901760, %v31275_v55  ;;  %v6533_v36 = vand.u32 4294901760, %v26380_v31  ;;  %v5988_v16 = vpop.f32.mrb[19].mxu0 }
 0x27c   :  { %v6150_v41 = vand.u32 4294901760, %v31280_v43  ;;  %v6530_v28 = vand.u32 4294901760, %v5988_v16 }
 0x27d   :  { %v6158_v25 = vsub.f32 %v31275_v55, %v6157_v2  ;;  %v31289_v15 = vsub.f32 %v26380_v31, %v6533_v36  ;;  %26873 = vmatmul.mubr.f32.gmra.mrb[46].mxu0 %v31060_v23 }
 0x27e   :  { %v6151_v39 = vsub.f32 %v31280_v43, %v6150_v41  ;;  %v31292_v46 = vpack.c.bf16 %v6533_v36, %v6530_v28  ;;  %v31294_v30 = vsub.f32 %v5988_v16, %v6530_v28  ;;  %v26383_v11 = vpop.f32.mrb[20].mxu0  ;;  %v31297_v17 = vpack.c.bf16 %v6157_v2, %v6150_v41  ;;  %26879 = vmatprep.mubr.f32.mxu0 %v30850_v32 }
 0x27f   :  { %v6159_v20 = vand.u32 4294901760, %v6158_v25  ;;  %v6616_v3 = vand.u32 4294901760, %v31289_v15  ;;  %v6992_v51 = vand.u32 4294901760, %v26383_v11  ;;  %26082 = vmatmul.mubr.f32.vlgmr.msra.gmra.mrb[8].mxu1 %v30707_v22  ;;  %v6000_v44 = vpop.f32.mrb[21].mxu0  ;;  %v34076_v25 = vld [vmem:[#allocation15_spill] sm:$0xff] }
 0x280   :  { %v6152_v29 = vand.u32 4294901760, %v6151_v39  ;;  %v6609_v37 = vand.u32 4294901760, %v31294_v30  ;;  %28354 = vmatpush3.bf16.msra.mxu1 %v34071_v27  ;;  %v6989_v40 = vand.u32 4294901760, %v6000_v44  ;;  %26088 = vmatprep.mubr.msk.f32.mxu1 %vm30068_vm1, %v34033_v48 }
 0x281   :  { %v6617_v5 = vsub.f32 %v31289_v15, %v6616_v3  ;;  %v31309_v47 = vsub.f32 %v26383_v11, %v6992_v51  ;;  %28355 = vmatprep.subr.bf16.mxu1 %v34034_v14  ;;  %26880 = vmatmul.mubr.f32.vlgmr.msra.gmra.mrb[32].mxu0 %v30834_v45 }
 0x282   :  { %v6610_v32 = vsub.f32 %v31294_v30, %v6609_v37  ;;  %v31313_v56 = vpack.c.bf16 %v6992_v51, %v6989_v40  ;;  %v31315_v63 = vsub.f32 %v6000_v44, %v6989_v40  ;;  %v26386_v62 = vpop.f32.mrb[22].mxu0  ;;  %v31318_v18 = vpack.c.bf16 %v6159_v20, %v6152_v29  ;;  %26882 = vmatprep.mubr.f32.mxu0 %v30881_v49 }
 0x283   :  { %v6618_v1 = vand.u32 4294901760, %v6617_v5  ;;  %v7075_v53 = vand.u32 4294901760, %v31309_v47  ;;  %v7451_v31 = vand.u32 4294901760, %v26386_v62  ;;  %v6012_v2 = vpop.f32.mrb[23].mxu0  ;;  %v31322_v36 = vpack.c.bf16 %v6616_v3, %v6609_v37  ;;  %28754 = vmatpush3.bf16.msra.mxu0 %v30140_v12 }
 0x284   :  { %v6611_v16 = vand.u32 4294901760, %v6610_v32  ;;  %v7068_v41 = vand.u32 4294901760, %v31315_v63  ;;  %v7448_v45 = vand.u32 4294901760, %v6012_v2  ;;  %28756 = vmatprep.subr.bf16.mxu0 %v34076_v25 }
 0x285   :  { %v7076_v39 = vsub.f32 %v31309_v47, %v7075_v53  ;;  %v31330_v11 = vsub.f32 %v26386_v62, %v7451_v31  ;;  %26883 = vmatmul.mubr.f32.gmra.mrb[34].mxu0 %v30908_v61  ;;  %v34080_v61 = vld [vmem:[#allocation29_spill] sm:$0xff] }
 0x286   :  { %v7069_v20 = vsub.f32 %v31315_v63, %v7068_v41  ;;  %v31333_v49 = vpack.c.bf16 %v7451_v31, %v7448_v45  ;;  %v31335_v3 = vsub.f32 %v6012_v2, %v7448_v45  ;;  %v26389_v51 = vpop.f32.mrb[24].mxu0  ;;  %v31338_v44 = vpack.c.bf16 %v6618_v1, %v6611_v16  ;;  %26885 = vmatprep.mubr.f32.mxu0 %v30913_v57 }
 0x287   :  { %34077 = vst [vmem:[#allocation35_spill] sm:$0xff] %v31330_v11  ;;  %v7077_v29 = vand.u32 4294901760, %v7076_v39  ;;  %v7534_v37 = vand.u32 4294901760, %v31330_v11  ;;  %v7910_v40 = vand.u32 4294901760, %v26389_v51  ;;  %26089 = vmatmul.mubr.f32.vlgmr.msra.gmra.mrb[8].mxu1 %v30712_v34  ;;  %v6024_v5 = vpop.f32.mrb[25].mxu0  ;;  %v31343_v32 = vpack.c.bf16 %v7075_v53, %v7068_v41 }
 0x288   :  { %34078 = vst [vmem:[#allocation20_spill] sm:$0xff] %v31333_v49  ;;  %34079 = vst [vmem:[#allocation37_spill] sm:$0xff] %v31335_v3  ;;  %v7070_v62 = vand.u32 4294901760, %v7069_v20  ;;  %v7527_v31 = vand.u32 4294901760, %v31335_v3  ;;  %28357 = vmatpush3.bf16.msra.mxu1 %v34080_v61  ;;  %v7907_v1 = vand.u32 4294901760, %v6024_v5  ;;  %26095 = vmatprep.mubr.msk.f32.mxu1 %vm30068_vm1, %v34033_v48 }
 0x289   :  { %v7535_v16 = vsub.f32 %v31330_v11, %v7534_v37  ;;  %v31352_v45 = vsub.f32 %v26389_v51, %v7910_v40  ;;  %28358 = vmatprep.subr.bf16.mxu1 %v34034_v14  ;;  %26886 = vmatmul.mubr.f32.gmra.mrb[36].mxu0 %v30918_v52 }
 0x28a   :  { %v7528_v57 = vsub.f32 %v31335_v3, %v7527_v31  ;;  %v31356_v53 = vpack.c.bf16 %v7910_v40, %v7907_v1  ;;  %v31358_v41 = vsub.f32 %v6024_v5, %v7907_v1  ;;  %v26392_v39 = vpop.f32.mrb[26].mxu0  ;;  %v31361_v20 = vpack.c.bf16 %v7077_v29, %v7070_v62  ;;  %26888 = vmatprep.mubr.f32.mxu0 %v30941_v0 }
 0x28b   :  { %34081 = vst [vmem:[#allocation18_spill] sm:$0xff] %v31352_v45  ;;  %v7536_v61 = vand.u32 4294901760, %v7535_v16  ;;  %v7993_v2 = vand.u32 4294901760, %v31352_v45  ;;  %v8369_v28 = vand.u32 4294901760, %v26392_v39  ;;  %v6036_v35 = vpop.f32.mrb[27].mxu0  ;;  %v31365_v51 = vpack.c.bf16 %v7534_v37, %v7527_v31 }
 0x28c   :  { %34082 = vst [vmem:[#allocation28_spill] sm:$0xff] %v31356_v53  ;;  %34083 = vst [vmem:[#allocation17_spill] sm:$0xff] %v31358_v41  ;;  %v7529_v24 = vand.u32 4294901760, %v7528_v57  ;;  %v7986_v40 = vand.u32 4294901760, %v31358_v41  ;;  %v8366_v1 = vand.u32 4294901760, %v6036_v35 }
 0x28d   :  { %34084 = vst [vmem:[#allocation19_spill] sm:$0xff] %v31365_v51  ;;  %v7994_v52 = vsub.f32 %v31352_v45, %v7993_v2  ;;  %v31371_v29 = vsub.f32 %v26392_v39, %v8369_v28  ;;  %26889 = vmatmul.mubr.f32.gmra.mrb[38].mxu0 %v30943_v38 }
 0x28e   :  { %v7987_v62 = vsub.f32 %v31358_v41, %v7986_v40  ;;  %v31374_v16 = vpack.c.bf16 %v8369_v28, %v8366_v1  ;;  %v31376_v53 = vsub.f32 %v6036_v35, %v8366_v1  ;;  %v26395_v0 = vpop.f32.mrb[28].mxu0  ;;  %v31379_v37 = vpack.c.bf16 %v7536_v61, %v7529_v24  ;;  %26891 = vmatprep.mubr.f32.mxu0 %v30968_v6 }
 0x28f   :  { %34085 = vst [vmem:[#allocation24_spill] sm:$0xff] %v31371_v29  ;;  %v7995_v31 = vand.u32 4294901760, %v7994_v52  ;;  %v8452_v57 = vand.u32 4294901760, %v31371_v29  ;;  %v8828_v5 = vand.u32 4294901760, %v26395_v0  ;;  %26096 = vmatmul.mubr.f32.vlgmr.msra.gmra.mrb[8].mxu1 %v30702_v7  ;;  %v6048_v45 = vpop.f32.mrb[29].mxu0  ;;  %v31384_v39 = vpack.c.bf16 %v7993_v2, %v7986_v40 }
 0x290   :  { %34086 = vst [vmem:[#allocation22_spill] sm:$0xff] %v31374_v16  ;;  %34087 = vst [vmem:[#allocation32_spill] sm:$0xff] %v31376_v53  ;;  %v7988_v28 = vand.u32 4294901760, %v7987_v62  ;;  %v8445_v35 = vand.u32 4294901760, %v31376_v53  ;;  %28360 = vmatpush3.bf16.msra.mxu1 %v34071_v27  ;;  %v8825_v38 = vand.u32 4294901760, %v6048_v45  ;;  %26102 = vmatprep.mubr.msk.f32.mxu1 %vm30068_vm1, %v34033_v48 }
 0x291   :  { %34088 = vst [vmem:[#allocation21_spill] sm:$0xff] %v31379_v37  ;;  %34089 = vst [vmem:[#allocation23_spill] sm:$0xff] %v31384_v39  ;;  %v8453_v24 = vsub.f32 %v31371_v29, %v8452_v57  ;;  %v31393_v61 = vsub.f32 %v26395_v0, %v8828_v5  ;;  %28361 = vmatprep.subr.bf16.mxu1 %v34034_v14  ;;  %26892 = vmatmul.mubr.f32.gmra.mrb[40].mxu0 %v30970_v10 }
 0x292   :  { %v8446_v6 = vsub.f32 %v31376_v53, %v8445_v35  ;;  %v31397_v2 = vpack.c.bf16 %v8828_v5, %v8825_v38  ;;  %v31399_v40 = vsub.f32 %v6048_v45, %v8825_v38  ;;  %v26398_v52 = vpop.f32.mrb[30].mxu0  ;;  %v31402_v27 = vpack.c.bf16 %v7995_v31, %v7988_v28  ;;  %26894 = vmatprep.mubr.f32.mxu0 %v30999_v21 }
 0x293   :  { %34090 = vst [vmem:[#allocation29_spill] sm:$0xff] %v31393_v61  ;;  %v8454_v62 = vand.u32 4294901760, %v8453_v24  ;;  %v8911_v1 = vand.u32 4294901760, %v31393_v61  ;;  %v9287_v16 = vand.u32 4294901760, %v26398_v52  ;;  %v6060_v29 = vpop.f32.mrb[31].mxu0  ;;  %v31406_v0 = vpack.c.bf16 %v8452_v57, %v8445_v35 }
 0x294   :  { %34091 = vst [vmem:[#allocation40_spill] sm:$0xff] %v31397_v2  ;;  %34092 = vst [vmem:[#allocation41_spill] sm:$0xff] %v31399_v40  ;;  %v8447_v39 = vand.u32 4294901760, %v8446_v6  ;;  %v8904_v5 = vand.u32 4294901760, %v31399_v40  ;;  %v9284_v38 = vand.u32 4294901760, %v6060_v29 }
 0x295   :  { %34093 = vst [vmem:[#allocation42_spill] sm:$0xff] %v31402_v27  ;;  %34094 = vst [vmem:[#allocation43_spill] sm:$0xff] %v31406_v0  ;;  %v8912_v10 = vsub.f32 %v31393_v61, %v8911_v1  ;;  %v31412_v31 = vsub.f32 %v26398_v52, %v9287_v16  ;;  %26895 = vmatmul.mubr.f32.gmra.mrb[42].mxu0 %v31002_v26 }
 0x296   :  { %v8905_v28 = vsub.f32 %v31399_v40, %v8904_v5  ;;  %v31415_v24 = vpack.c.bf16 %v9287_v16, %v9284_v38  ;;  %v31417_v2 = vsub.f32 %v6060_v29, %v9284_v38  ;;  %v31420_v21 = vpack.c.bf16 %v8454_v62, %v8447_v39  ;;  %26897 = vmatprep.mubr.f32.mxu0 %v31029_v50  ;;  %v34100_v16 = vld [vmem:[#allocation26_spill] sm:$0xff]  ;;  %v29941_v40 = vld [vmem:[#allocation7 + $0x58] sm:$0xff] }
 0x297   :  { %34095 = vst [vmem:[#allocation44_spill] sm:$0xff] %v31412_v31  ;;  %v8913_v57 = vand.u32 4294901760, %v8912_v10  ;;  %v9370_v35 = vand.u32 4294901760, %v31412_v31  ;;  %26103 = vmatmul.mubr.f32.vlgmr.msra.gmra.mrb[8].mxu1 %v30702_v7  ;;  %v31425_v6 = vpack.c.bf16 %v8911_v1, %v8904_v5  ;;  %v34103_v38 = vld [vmem:[#allocation34_spill] sm:$0xff]  ;;  %v34106_v10 = vld [vmem:[#allocation27_spill] sm:$0xff]  ;;  %v14593_v61 = vmul.f32 %v29941_v40, %v29941_v40 }
 0x298   :  { %34096 = vst [vmem:[#allocation45_spill] sm:$0xff] %v31415_v24  ;;  %34097 = vst [vmem:[#allocation46_spill] sm:$0xff] %v31417_v2  ;;  %v8906_v52 = vand.u32 4294901760, %v8905_v28  ;;  %v9363_v45 = vand.u32 4294901760, %v31417_v2  ;;  %28363 = vmatpush3.bf16.msra.mxu1 %v34100_v16  ;;  %26109 = vmatprep.mubr.msk.f32.mxu1 %vm30068_vm1, %v34033_v48 }
 0x299   :  { %34098 = vst [vmem:[#allocation47_spill] sm:$0xff] %v31420_v21  ;;  %34099 = vst [vmem:[#allocation48_spill] sm:$0xff] %v31425_v6  ;;  %v9371_v26 = vsub.f32 %v31412_v31, %v9370_v35  ;;  %28364 = vmatprep.subr.bf16.mxu1 %v34034_v14  ;;  %26898 = vmatmul.mubr.f32.gmra.mrb[44].mxu0 %v31031_v19  ;;  %v29939_v31 = vld [vmem:[#allocation7 + $0x48] sm:$0xff] }
 0x29a   :  { %v9364_v39 = vsub.f32 %v31417_v2, %v9363_v45  ;;  %v31437_v50 = vpack.c.bf16 %v8913_v57, %v8906_v52  ;;  %v31439_v1 = vpack.c.bf16 %v9370_v35, %v9363_v45  ;;  %26900 = vmatprep.mubr.f32.mxu0 %v31058_v4  ;;  %v34105_v45 = vld [vmem:[#allocation25_spill] sm:$0xff]  ;;  %v34108_v4 = vld [vmem:[#allocation36_spill] sm:$0xff]  ;;  %v34110_v35 = vld [vmem:[#allocation30_spill] sm:$0xff] }
 0x29b   :  { %v9372_v62 = vand.u32 4294901760, %v9371_v26  ;;  %26110 = vmatmul.mubr.f32.vlgmr.msra.gmra.mrb[10].mxu1 %v30727_v9  ;;  %v34107_v28 = vpack.c.bf16 %v34105_v45, %v34106_v10  ;;  %v34111_v52 = vld [vmem:[#allocation38_spill] sm:$0xff]  ;;  %v29932_v10 = vld [vmem:[#allocation7 + $0x10] sm:$0xff] }
 0x29c   :  { %34101 = vst [vmem:[#allocation26_spill] sm:$0xff] %v31437_v50  ;;  %34102 = vst [vmem:[#allocation49_spill] sm:$0xff] %v31439_v1  ;;  %v9365_v5 = vand.u32 4294901760, %v9364_v39  ;;  %28366 = vmatpush3.bf16.msra.mxu1 %v34103_v38  ;;  %26116 = vmatprep.mubr.msk.f32.mxu1 %vm30068_vm1, %v34033_v48  ;;  %v34114_v39 = vld [vmem:[#allocation39_spill] sm:$0xff]  ;;  %v34117_v38 = vpack.c.bf16 %v30848_v33, %v30855_v13  ;;  %v34119_v13 = vpack.c.bf16 %v31275_v55, %v31280_v43  ;;  %v29931_v55 = vld [vmem:[#allocation7] sm:$0xff] }
 0x29d   :  { %28367 = vmatprep.subr.bf16.mxu1 %v34034_v14  ;;  %26901 = vmatmul.mubr.f32.gmra.mrb[46].mxu0 %v31060_v23  ;;  %v14582_v43 = vmul.f32 %v29931_v55, %v29931_v55  ;;  %v29934_v55 = vld [vmem:[#allocation7 + $0x20] sm:$0xff] }
 0x29e   :  { %v31448_v19 = vpack.c.bf16 %v9372_v62, %v9365_v5  ;;  %v34116_v5 = vld [vmem:[#allocation33_spill] sm:$0xff] }
 0x29f   :  { %v29942_v50 = vld [vmem:[#allocation7 + $0x60] sm:$0xff] }
 0x2a0   :  { %34104 = vst [vmem:[#allocation34_spill] sm:$0xff] %v31448_v19  ;;  %v14591_v19 = vmul.f32 %v29939_v31, %v29939_v31 }
 0x2a2   :  { %v14626_v31 = vsel %vm90_vm0, %v14591_v19, 0  ;;  %v14632_v19 = vsel %vm90_vm0, %v14593_v61, 0 }
 0x2a3   :  { %26117 = vmatmul.mubr.f32.vlgmr.msra.gmra.mrb[10].mxu1 %v30702_v7  ;;  %v31691_v61 = vand.u32 4294901760, %v14632_v19 }
 0x2a4   :  { %28369 = vmatpush3.bf16.msra.mxu1 %v34107_v28  ;;  %26123 = vmatprep.mubr.msk.f32.mxu1 %vm30068_vm1, %v34033_v48  ;;  %v14584_v28 = vmul.f32 %v29932_v10, %v29932_v10 }
 0x2a5   :  { %28370 = vmatprep.subr.bf16.mxu1 %v34034_v14 }
 0x2ab   :  { %26124 = vmatmul.mubr.f32.vlgmr.msra.gmra.mrb[10].mxu1 %v30707_v22 }
 0x2ac   :  { %28372 = vmatpush3.bf16.msra.mxu1 %v34100_v16  ;;  %26130 = vmatprep.mubr.msk.f32.mxu1 %vm30068_vm1, %v34033_v48 }
 0x2ad   :  { %28373 = vmatprep.subr.bf16.mxu1 %v34034_v14 }
 0x2b3   :  { %26131 = vmatmul.mubr.f32.vlgmr.msra.gmra.mrb[10].mxu1 %v30712_v34 }
 0x2b4   :  { %28375 = vmatpush3.bf16.msra.mxu1 %v34108_v4  ;;  %26137 = vmatprep.mubr.msk.f32.mxu1 %vm30068_vm1, %v34033_v48 }
 0x2b5   :  { %28376 = vmatprep.subr.bf16.mxu1 %v34034_v14 }
 0x2ba   :  { %v31467_v23 = vpop.f32.mrb[0].mxu1 }
 0x2bb   :  { %34109 = vst [vmem:[#allocation25_spill] sm:$0xff] %v31467_v23  ;;  %v25936_v57 = vpop.f32.mrb[1].mxu1  ;;  %26138 = vmatmul.mubr.f32.vlgmr.msra.gmra.mrb[10].mxu1 %v30702_v7  ;;  %v14594_v23 = vmul.f32 %v29942_v50, %v29942_v50 }
 0x2bc   :  { %28378 = vmatpush3.bf16.msra.mxu1 %v34100_v16  ;;  %26144 = vmatprep.mubr.msk.f32.mxu1 %vm30068_vm1, %v34033_v48  ;;  %v34112_v16 = vld [vmem:[#allocation31_spill] sm:$0xff] }
 0x2bd   :  { %28379 = vmatprep.subr.bf16.mxu1 %v34034_v14  ;;  %v34113_v26 = vpack.c.bf16 %v30825_v58, %v34112_v16 }
 0x2c3   :  { %26145 = vmatmul.mubr.f32.vlgmr.msra.gmra.mrb[10].mxu1 %v30702_v7 }
 0x2c4   :  { %28381 = vmatpush3.bf16.msra.mxu1 %v34110_v35  ;;  %26151 = vmatprep.mubr.msk.f32.mxu1 %vm30068_vm1, %v34033_v48 }
 0x2c5   :  { %28382 = vmatprep.subr.bf16.mxu1 %v34034_v14 }
 0x2c7   :  { %26152 = vmatmul.mubr.f32.vlgmr.msra.gmra.mrb[12].mxu1 %v30727_v9 }
 0x2c8   :  { %28384 = vmatpush3.bf16.msra.mxu1 %v34111_v52  ;;  %26158 = vmatprep.mubr.msk.f32.mxu1 %vm30068_vm1, %v34033_v48  ;;  %v14605_v52 = vsel %vm90_vm0, %v14584_v28, 0  ;;  %v29936_v28 = vld [vmem:[#allocation7 + $0x30] sm:$0xff] }
 0x2c9   :  { %28385 = vmatprep.subr.bf16.mxu1 %v34034_v14 }
 0x2cf   :  { %26159 = vmatmul.mubr.f32.vlgmr.msra.gmra.mrb[12].mxu1 %v30702_v7 }
 0x2d0   :  { %28387 = vmatpush3.bf16.msra.mxu1 %v34113_v26  ;;  %26165 = vmatprep.mubr.msk.f32.mxu1 %vm30068_vm1, %v34033_v48 }
 0x2d1   :  { %28388 = vmatprep.subr.bf16.mxu1 %v34034_v14 }
 0x2d7   :  { %26166 = vmatmul.mubr.f32.vlgmr.msra.gmra.mrb[12].mxu1 %v30707_v22 }
 0x2d8   :  { %28390 = vmatpush3.bf16.msra.mxu1 %v34110_v35  ;;  %26172 = vmatprep.mubr.msk.f32.mxu1 %vm30068_vm1, %v34033_v48 }
 0x2d9   :  { %28391 = vmatprep.subr.bf16.mxu1 %v34034_v14 }
 0x2df   :  { %26173 = vmatmul.mubr.f32.vlgmr.msra.gmra.mrb[12].mxu1 %v30712_v34 }
 0x2e0   :  { %28393 = vmatpush3.bf16.msra.mxu1 %v34114_v39  ;;  %26179 = vmatprep.mubr.msk.f32.mxu1 %vm30068_vm1, %v34033_v48  ;;  %v31582_v39 = vand.u32 4294901760, %v14605_v52 }
 0x2e1   :  { %28394 = vmatprep.subr.bf16.mxu1 %v34034_v14 }
 0x2e2   :  { %34121 = vst [vmem:[#allocation38_spill] sm:$0xff] %v31582_v39 }
 0x2e6   :  { %v31501_v58 = vpop.f32.mrb[2].mxu1 }
 0x2e7   :  { %34115 = vst [vmem:[#allocation27_spill] sm:$0xff] %v31501_v58  ;;  %v25978_v62 = vpop.f32.mrb[3].mxu1  ;;  %26180 = vmatmul.mubr.f32.vlgmr.msra.gmra.mrb[12].mxu1 %v30702_v7 }
 0x2e8   :  { %28396 = vmatpush3.bf16.msra.mxu1 %v34110_v35  ;;  %26186 = vmatprep.mubr.msk.f32.mxu1 %vm30068_vm1, %v34033_v48  ;;  %v14599_v35 = vsel %vm90_vm0, %v14582_v43, 0  ;;  %v14586_v43 = vmul.f32 %v29934_v55, %v29934_v55 }
 0x2e9   :  { %28397 = vmatprep.subr.bf16.mxu1 %v34034_v14  ;;  %v31577_v16 = vand.u32 4294901760, %v14599_v35 }
 0x2eb   :  { %v31589_v62 = vsub.f32 %v14599_v35, %v31577_v16  ;;  %v14588_v35 = vmul.f32 %v29936_v28, %v29936_v28 }
 0x2ef   :  { %26187 = vmatmul.mubr.f32.vlgmr.msra.gmra.mrb[12].mxu1 %v30702_v7 }
 0x2f0   :  { %28399 = vmatpush3.bf16.msra.mxu1 %v34116_v5  ;;  %26193 = vmatprep.mubr.msk.f32.mxu1 %vm30068_vm1, %v34033_v48 }
 0x2f1   :  { %28400 = vmatprep.subr.bf16.mxu1 %v34034_v14 }
 0x2f3   :  { %26194 = vmatmul.mubr.f32.vlgmr.msra.gmra.mrb[14].mxu1 %v30727_v9 }
 0x2f4   :  { %28402 = vmatpush3.bf16.msra.mxu1 %v31054_v42  ;;  %26200 = vmatprep.mubr.msk.f32.mxu1 %vm30068_vm1, %v34033_v48 }
 0x2f5   :  { %28403 = vmatprep.subr.bf16.mxu1 %v34034_v14 }
 0x2fb   :  { %26201 = vmatmul.mubr.f32.vlgmr.msra.gmra.mrb[14].mxu1 %v30702_v7 }
 0x2fc   :  { %28405 = vmatpush3.bf16.msra.mxu1 %v34117_v38  ;;  %26207 = vmatprep.mubr.msk.f32.mxu1 %vm30068_vm1, %v34033_v48  ;;  %v31593_v38 = vsub.f32 %v14605_v52, %v31582_v39 }
 0x2fd   :  { %28406 = vmatprep.subr.bf16.mxu1 %v34034_v14 }
 0x303   :  { %26208 = vmatmul.mubr.f32.vlgmr.msra.gmra.mrb[14].mxu1 %v30707_v22 }
 0x304   :  { %28408 = vmatpush3.bf16.msra.mxu1 %v34116_v5  ;;  %26214 = vmatprep.mubr.msk.f32.mxu1 %vm30068_vm1, %v34033_v48 }
 0x305   :  { %28409 = vmatprep.subr.bf16.mxu1 %v34034_v14 }
 0x30b   :  { %26215 = vmatmul.mubr.f32.vlgmr.msra.gmra.mrb[14].mxu1 %v30712_v34 }
 0x30c   :  { %28411 = vmatpush3.bf16.msra.mxu1 %v31066_v54  ;;  %26221 = vmatprep.mubr.msk.f32.mxu1 %vm30068_vm1, %v34033_v48  ;;  %v29930_v54 = vld [vmem:[#allocation7 + $0x8] sm:$0xff] }
 0x30d   :  { %28412 = vmatprep.subr.bf16.mxu1 %v34034_v14 }
 0x312   :  { %v31535_v42 = vpop.f32.mrb[4].mxu1 }
 0x313   :  { %34118 = vst [vmem:[#allocation36_spill] sm:$0xff] %v31535_v42  ;;  %v26020_v33 = vpop.f32.mrb[5].mxu1  ;;  %26222 = vmatmul.mubr.f32.vlgmr.msra.gmra.mrb[14].mxu1 %v30702_v7 }
 0x314   :  { %28414 = vmatpush3.bf16.msra.mxu1 %v34116_v5  ;;  %26228 = vmatprep.mubr.msk.f32.mxu1 %vm30068_vm1, %v34033_v48  ;;  %v33832_v33 = vand.u32 4294901760, %v31589_v62 }
 0x315   :  { %28439 = vmatprep.subr.bf16.mxu1 %v34034_v14 }
 0x316   :  { %v14716_v52 = vsub.f32 %v31589_v62, %v33832_v33 }
 0x318   :  { %v14717_v28 = vand.u32 4294901760, %v14716_v52 }
 0x31a   :  { %27243 = vmatprep.mubr.f32.mxu0 %v14717_v28 }
 0x31b   :  { %26229 = vmatmul.mubr.f32.vlgmr.msra.gmra.mrb[14].mxu1 %v30702_v7 }
 0x31c   :  { %28441 = vmatpush3.bf16.msra.mxu1 %v31278_v8  ;;  %26403 = vmatprep.mubr.msk.f32.mxu1 %vm30068_vm1, %v34033_v48 }
 0x31d   :  { %28442 = vmatprep.subr.bf16.mxu1 %v34034_v14 }
 0x31f   :  { %26404 = vmatmul.mubr.f32.vlgmr.msra.gmra.mrb[16].mxu1 %v30727_v9 }
 0x320   :  { %28444 = vmatpush3.bf16.msra.mxu1 %v31318_v18  ;;  %26410 = vmatprep.mubr.msk.f32.mxu1 %vm30068_vm1, %v34033_v48  ;;  %v14583_v18 = vmul.f32 %v29930_v54, %v29930_v54  ;;  %v29933_v54 = vld [vmem:[#allocation7 + $0x18] sm:$0xff] }
 0x321   :  { %28445 = vmatprep.subr.bf16.mxu1 %v34034_v14 }
 0x322   :  { %v14602_v45 = vsel %vm90_vm0, %v14583_v18, 0  ;;  %v14585_v18 = vmul.f32 %v29933_v54, %v29933_v54  ;;  %v14611_v54 = vsel %vm90_vm0, %v14586_v43, 0 }
 0x323   :  { %v31570_v4 = vand.u32 4294901760, %v14602_v45  ;;  %v31613_v33 = vand.u32 4294901760, %v14611_v54 }
 0x325   :  { %v31580_v26 = vsub.f32 %v14602_v45, %v31570_v4  ;;  %v29935_v45 = vld [vmem:[#allocation7 + $0x28] sm:$0xff] }
 0x326   :  { %v14587_v10 = vmul.f32 %v29935_v45, %v29935_v45  ;;  %v14617_v45 = vsel %vm90_vm0, %v14588_v35, 0 }
 0x327   :  { %26411 = vmatmul.mubr.f32.vlgmr.msra.gmra.mrb[16].mxu1 %v30702_v7  ;;  %v33829_v5 = vand.u32 4294901760, %v31580_v26  ;;  %v31623_v43 = vand.u32 4294901760, %v14617_v45 }
 0x328   :  { %28447 = vmatpush3.bf16.msra.mxu1 %v34119_v13  ;;  %26417 = vmatprep.mubr.msk.f32.mxu1 %vm30068_vm1, %v34033_v48  ;;  %v14614_v55 = vsel %vm90_vm0, %v14587_v10, 0  ;;  %v29937_v10 = vld [vmem:[#allocation7 + $0x38] sm:$0xff] }
 0x329   :  { %28448 = vmatprep.subr.bf16.mxu1 %v34034_v14  ;;  %v14726_v13 = vsub.f32 %v31580_v26, %v33829_v5  ;;  %v14608_v5 = vsel %vm90_vm0, %v14585_v18, 0  ;;  %v14589_v35 = vmul.f32 %v29937_v10, %v29937_v10  ;;  %v31634_v1 = vsub.f32 %v14617_v45, %v31623_v43  ;;  %v29938_v45 = vld [vmem:[#allocation7 + $0x40] sm:$0xff] }
 0x32b   :  { %34125 = vst [vmem:[#allocation50_spill] sm:$0xff] %v31634_v1 }
 0x32f   :  { %26418 = vmatmul.mubr.f32.vlgmr.msra.gmra.mrb[16].mxu1 %v30707_v22 }
 0x330   :  { %28450 = vmatpush3.bf16.msra.mxu1 %v31278_v8  ;;  %26424 = vmatprep.mubr.msk.f32.mxu1 %vm30068_vm1, %v34033_v48 }
 0x331   :  { %28451 = vmatprep.subr.bf16.mxu1 %v34034_v14 }
 0x337   :  { %26425 = vmatmul.mubr.f32.vlgmr.msra.gmra.mrb[16].mxu1 %v30712_v34 }
 0x338   :  { %28453 = vmatpush3.bf16.msra.mxu1 %v31297_v17  ;;  %26431 = vmatprep.mubr.msk.f32.mxu1 %vm30068_vm1, %v34033_v48 }
 0x339   :  { %28454 = vmatprep.subr.bf16.mxu1 %v34034_v14 }
 0x33e   :  { %v31572_v57 = vpop.f32.mrb[6].mxu1 }
 0x33f   :  { %34120 = vst [vmem:[#allocation30_spill] sm:$0xff] %v31572_v57  ;;  %v26062_v17 = vpop.f32.mrb[7].mxu1  ;;  %26432 = vmatmul.mubr.f32.vlgmr.msra.gmra.mrb[16].mxu1 %v30702_v7  ;;  %v31607_v57 = vand.u32 4294901760, %v14608_v5 }
 0x340   :  { %28456 = vmatpush3.bf16.msra.mxu1 %v31278_v8  ;;  %26438 = vmatprep.mubr.msk.f32.mxu1 %vm30068_vm1, %v34033_v48  ;;  %v33833_v8 = vand.u32 4294901760, %v31593_v38  ;;  %v14727_v17 = vand.u32 4294901760, %v14726_v13  ;;  %v31615_v13 = vand.u32 4294901760, %v14614_v55 }
 0x341   :  { %28457 = vmatprep.subr.bf16.mxu1 %v34034_v14  ;;  %v31621_v18 = vsub.f32 %v14608_v5, %v31607_v57  ;;  %v14620_v5 = vsel %vm90_vm0, %v14589_v35, 0  ;;  %v14590_v35 = vmul.f32 %v29938_v45, %v29938_v45 }
 0x342   :  { %v14736_v29 = vsub.f32 %v31593_v38, %v33833_v8  ;;  %v31630_v52 = vsub.f32 %v14614_v55, %v31615_v13  ;;  %27244 = vmatmul.mubr.f32.vlgmr.msra.gmra.mrb[48].mxu0 %v14727_v17  ;;  %v33843_v55 = vand.u32 4294901760, %v31634_v1 }
 0x343   :  { %34122 = vst [vmem:[#allocation31_spill] sm:$0xff] %v31621_v18  ;;  %v33836_v8 = vand.u32 4294901760, %v31621_v18  ;;  %v14623_v24 = vsel %vm90_vm0, %v14590_v35, 0  ;;  %28758 = vmatpush3.bf16.msra.mxu0 %v34076_v25 }
 0x344   :  { %v14737_v42 = vand.u32 4294901760, %v14736_v29  ;;  %v31627_v29 = vsub.f32 %v14611_v54, %v31613_v33  ;;  %34124 = vst [vmem:[#allocation33_spill] sm:$0xff] %v31630_v52  ;;  %v33840_v28 = vand.u32 4294901760, %v31630_v52  ;;  %v31640_v54 = vand.u32 4294901760, %v14620_v5  ;;  %28760 = vmatprep.subr.bf16.mxu0 %v30307_v59 }
 0x345   :  { %v14746_v17 = vsub.f32 %v31621_v18, %v33836_v8  ;;  %v14776_v45 = vsub.f32 %v31634_v1, %v33843_v55  ;;  %v31665_v6 = vand.u32 4294901760, %v14623_v24  ;;  %v31675_v55 = vand.u32 4294901760, %v14626_v31 }
 0x346   :  { %34123 = vst [vmem:[#allocation39_spill] sm:$0xff] %v31627_v29  ;;  %27246 = vmatprep.mubr.f32.mxu0 %v14737_v42  ;;  %v33839_v10 = vand.u32 4294901760, %v31627_v29  ;;  %v31657_v2 = vsub.f32 %v14620_v5, %v31640_v54 }
 0x347   :  { %26439 = vmatmul.mubr.f32.vlgmr.msra.gmra.mrb[16].mxu1 %v30702_v7  ;;  %v14747_v8 = vand.u32 4294901760, %v14746_v17  ;;  %v29940_v17 = vld [vmem:[#allocation7 + $0x50] sm:$0xff] }
 0x348   :  { %28459 = vmatpush3.bf16.msra.mxu1 %v31292_v46  ;;  %26445 = vmatprep.mubr.msk.f32.mxu1 %vm30068_vm1, %v34033_v48  ;;  %v14756_v42 = vsub.f32 %v31627_v29, %v33839_v10  ;;  %34126 = vst [vmem:[#allocation51_spill] sm:$0xff] %v31657_v2  ;;  %v33845_v10 = vand.u32 4294901760, %v31657_v2 }
 0x349   :  { %28460 = vmatprep.subr.bf16.mxu1 %v34034_v14  ;;  %27247 = vmatmul.mubr.f32.gmra.mrb[50].mxu0 %v14747_v8  ;;  %v14777_v8 = vand.u32 4294901760, %v14776_v45 }
 0x34a   :  { %v14757_v58 = vand.u32 4294901760, %v14756_v42  ;;  %v14786_v35 = vsub.f32 %v31657_v2, %v33845_v10  ;;  %v31673_v42 = vsub.f32 %v14623_v24, %v31665_v6  ;;  %v34129_v10 = vpack.c.bf16 %v31289_v15, %v31294_v30 }
 0x34b   :  { %26446 = vmatmul.mubr.f32.vlgmr.msra.gmra.mrb[18].mxu1 %v30727_v9 }
 0x34c   :  { %28462 = vmatpush3.bf16.msra.mxu1 %v31338_v44  ;;  %26452 = vmatprep.mubr.msk.f32.mxu1 %vm30068_vm1, %v34033_v48  ;;  %v14766_v44 = vsub.f32 %v31630_v52, %v33840_v28  ;;  %v14592_v28 = vmul.f32 %v29940_v17, %v29940_v17  ;;  %34127 = vst [vmem:[#allocation52_spill] sm:$0xff] %v31673_v42  ;;  %v29943_v17 = vld [vmem:[#allocation7 + $0x68] sm:$0xff]  ;;  %v33847_v40 = vand.u32 4294901760, %v31673_v42  ;;  %v14787_v50 = vand.u32 4294901760, %v14786_v35 }
 0x34d   :  { %28463 = vmatprep.subr.bf16.mxu1 %v34034_v14  ;;  %27249 = vmatprep.mubr.f32.mxu0 %v14757_v58  ;;  %v14595_v0 = vmul.f32 %v29943_v17, %v29943_v17  ;;  %v31682_v58 = vsub.f32 %v14626_v31, %v31675_v55 }
 0x34e   :  { %v14767_v5 = vand.u32 4294901760, %v14766_v44  ;;  %v14629_v44 = vsel %vm90_vm0, %v14592_v28, 0  ;;  %v14635_v28 = vsel %vm90_vm0, %v14594_v23, 0  ;;  %v14796_v31 = vsub.f32 %v31673_v42, %v33847_v40 }
 0x34f   :  { %34128 = vst [vmem:[#allocation53_spill] sm:$0xff] %v31682_v58  ;;  %v31684_v24 = vand.u32 4294901760, %v14629_v44  ;;  %v14638_v45 = vsel %vm90_vm0, %v14595_v0, 0  ;;  %v33850_v15 = vand.u32 4294901760, %v31682_v58  ;;  %v31703_v35 = vand.u32 4294901760, %v14635_v28 }
 0x350   :  { %27250 = vmatmul.mubr.f32.gmra.mrb[52].mxu0 %v14767_v5  ;;  %v31706_v0 = vsub.f32 %v14632_v19, %v31691_v61  ;;  %v31708_v53 = vand.u32 4294901760, %v14638_v45  ;;  %v14797_v5 = vand.u32 4294901760, %v14796_v31 }
 0x351   :  { %27252 = vmatprep.mubr.f32.mxu0 %v14777_v8  ;;  %v14806_v40 = vsub.f32 %v31682_v58, %v33850_v15  ;;  %v31718_v8 = vsub.f32 %v14635_v28, %v31703_v35 }
 0x352   :  { %34131 = vst [vmem:[#allocation55_spill] sm:$0xff] %v31706_v0  ;;  %v33853_v41 = vand.u32 4294901760, %v31706_v0  ;;  %v31721_v19 = vsub.f32 %v14638_v45, %v31708_v53 }
 0x353   :  { %26453 = vmatmul.mubr.f32.vlgmr.msra.gmra.mrb[18].mxu1 %v30702_v7  ;;  %34132 = vst [vmem:[#allocation56_spill] sm:$0xff] %v31718_v8  ;;  %v14807_v27 = vand.u32 4294901760, %v14806_v40  ;;  %v33858_v45 = vand.u32 4294901760, %v31718_v8 }
 0x354   :  { %28465 = vmatpush3.bf16.msra.mxu1 %v34129_v10  ;;  %26459 = vmatprep.mubr.msk.f32.mxu1 %vm30068_vm1, %v34033_v48  ;;  %v26881_v30 = vpop.f32.mrb[32].mxu0  ;;  %v31701_v10 = vsub.f32 %v14629_v44, %v31684_v24  ;;  %34133 = vst [vmem:[#allocation57_spill] sm:$0xff] %v31721_v19  ;;  %v14826_v28 = vsub.f32 %v31706_v0, %v33853_v41 }
 0x355   :  { %28466 = vmatprep.subr.bf16.mxu1 %v34034_v14  ;;  %v10914_v17 = vand.u32 4294901760, %v26881_v30  ;;  %v10816_v23 = vpop.f32.mrb[33].mxu0  ;;  %27253 = vmatmul.mubr.f32.gmra.mrb[54].mxu0 %v14787_v50  ;;  %v33864_v50 = vand.u32 4294901760, %v31721_v19 }
 0x356   :  { %34130 = vst [vmem:[#allocation54_spill] sm:$0xff] %v31701_v10  ;;  %v33854_v21 = vand.u32 4294901760, %v31701_v10  ;;  %v10911_v25 = vand.u32 4294901760, %v10816_v23  ;;  %27255 = vmatprep.mubr.f32.mxu0 %v14797_v5 }
 0x357   :  { %v31714_v44 = vsub.f32 %v26881_v30, %v10914_v17 }
 0x358   :  { %v14816_v31 = vsub.f32 %v31701_v10, %v33854_v21  ;;  %v31726_v15 = vpack.c.bf16 %v10914_v17, %v10911_v25  ;;  %v31728_v51 = vsub.f32 %v10816_v23, %v10911_v25  ;;  %v26884_v30 = vpop.f32.mrb[34].mxu0  ;;  %v14827_v25 = vand.u32 4294901760, %v14826_v28 }
 0x359   :  { %v11373_v3 = vand.u32 4294901760, %v26884_v30  ;;  %v10828_v11 = vpop.f32.mrb[35].mxu0  ;;  %v14836_v23 = vsub.f32 %v31718_v8, %v33858_v45  ;;  %27256 = vmatmul.mubr.f32.gmra.mrb[56].mxu0 %v14807_v27  ;;  %v14846_v45 = vsub.f32 %v31721_v19, %v33864_v50 }
 0x35a   :  { %34134 = vst [vmem:[#allocation58_spill] sm:$0xff] %v31726_v15  ;;  %v14817_v40 = vand.u32 4294901760, %v14816_v31  ;;  %v11370_v17 = vand.u32 4294901760, %v10828_v11 }
 0x35b   :  { %26460 = vmatmul.mubr.f32.vlgmr.msra.gmra.mrb[18].mxu1 %v30707_v22  ;;  %v31744_v5 = vsub.f32 %v26884_v30, %v11373_v3  ;;  %v14837_v15 = vand.u32 4294901760, %v14836_v23  ;;  %v29944_v30 = vld [vmem:[#allocation7 + $0x70] sm:$0xff] }
 0x35c   :  { %28468 = vmatpush3.bf16.msra.mxu1 %v31292_v46  ;;  %26466 = vmatprep.mubr.msk.f32.mxu1 %vm30068_vm1, %v34033_v48  ;;  %v31746_v31 = vpack.c.bf16 %v11373_v3, %v11370_v17  ;;  %v31748_v41 = vsub.f32 %v10828_v11, %v11370_v17  ;;  %v26887_v21 = vpop.f32.mrb[36].mxu0  ;;  %v14596_v8 = vmul.f32 %v29944_v30, %v29944_v30  ;;  %v14847_v11 = vand.u32 4294901760, %v14846_v45  ;;  %v29945_v17 = vld [vmem:[#allocation7 + $0x78] sm:$0xff] }
 0x35d   :  { %28469 = vmatprep.subr.bf16.mxu1 %v34034_v14  ;;  %34135 = vst [vmem:[#allocation59_spill] sm:$0xff] %v31744_v5  ;;  %27258 = vmatprep.mubr.f32.mxu0 %v14817_v40  ;;  %v10840_v0 = vpop.f32.mrb[37].mxu0  ;;  %v11832_v27 = vand.u32 4294901760, %v26887_v21 }
 0x35e   :  { %34136 = vst [vmem:[#allocation60_spill] sm:$0xff] %v31746_v31  ;;  %34137 = vst [vmem:[#allocation61_spill] sm:$0xff] %v31748_v41  ;;  %v11829_v3 = vand.u32 4294901760, %v10840_v0  ;;  %27259 = vmatmul.mubr.f32.gmra.mrb[58].mxu0 %v14827_v25  ;;  %v14597_v31 = vmul.f32 %v29945_v17, %v29945_v17  ;;  %v14641_v40 = vsel %vm90_vm0, %v14596_v8, 0 }
 0x35f   :  { %27261 = vmatprep.mubr.f32.mxu0 %v14837_v15  ;;  %v31760_v28 = vsub.f32 %v26887_v21, %v11832_v27  ;;  %v31762_v50 = vand.u32 4294901760, %v14641_v40 }
 0x360   :  { %v26890_v37 = vpop.f32.mrb[38].mxu0  ;;  %v31757_v23 = vpack.c.bf16 %v11832_v27, %v11829_v3  ;;  %v31764_v19 = vsub.f32 %v10840_v0, %v11829_v3  ;;  %v14644_v25 = vsel %vm90_vm0, %v14597_v31, 0 }
 0x361   :  { %v10852_v10 = vpop.f32.mrb[39].mxu0  ;;  %34139 = vst [vmem:[#allocation63_spill] sm:$0xff] %v31760_v28  ;;  %v31770_v15 = vand.u32 4294901760, %v14644_v25  ;;  %v12291_v8 = vand.u32 4294901760, %v26890_v37  ;;  %v31774_v21 = vsub.f32 %v14641_v40, %v31762_v50 }
 0x362   :  { %34138 = vst [vmem:[#allocation62_spill] sm:$0xff] %v31757_v23  ;;  %34140 = vst [vmem:[#allocation64_spill] sm:$0xff] %v31764_v19  ;;  %v12288_v45 = vand.u32 4294901760, %v10852_v10  ;;  %27262 = vmatmul.mubr.f32.gmra.mrb[60].mxu0 %v14847_v11  ;;  %v11908_v52 = vand.u32 4294901760, %v31764_v19 }
 0x363   :  { %26467 = vmatmul.mubr.f32.vlgmr.msra.gmra.mrb[18].mxu1 %v30712_v34  ;;  %34141 = vst [vmem:[#allocation65_spill] sm:$0xff] %v31774_v21  ;;  %v31779_v31 = vsub.f32 %v14644_v25, %v31770_v15  ;;  %v33876_v3 = vand.u32 4294901760, %v31774_v21  ;;  %v31784_v17 = vsub.f32 %v26890_v37, %v12291_v8 }
 0x364   :  { %28471 = vmatpush3.bf16.msra.mxu1 %v31322_v36  ;;  %26473 = vmatprep.mubr.msk.f32.mxu1 %vm30068_vm1, %v34033_v48  ;;  %v26893_v27 = vpop.f32.mrb[40].mxu0  ;;  %v31781_v36 = vpack.c.bf16 %v12291_v8, %v12288_v45  ;;  %v31786_v23 = vsub.f32 %v10852_v10, %v12288_v45 }
 0x365   :  { %28472 = vmatprep.subr.bf16.mxu1 %v34034_v14  ;;  %34142 = vst [vmem:[#allocation66_spill] sm:$0xff] %v31779_v31  ;;  %v10864_v30 = vpop.f32.mrb[41].mxu0  ;;  %34144 = vst [vmem:[#allocation68_spill] sm:$0xff] %v31784_v17  ;;  %v12750_v11 = vand.u32 4294901760, %v26893_v27  ;;  %v33878_v40 = vand.u32 4294901760, %v31779_v31  ;;  %v14856_v25 = vsub.f32 %v31774_v21, %v33876_v3 }
 0x366   :  { %34143 = vst [vmem:[#allocation67_spill] sm:$0xff] %v31781_v36  ;;  %34145 = vst [vmem:[#allocation69_spill] sm:$0xff] %v31786_v23  ;;  %v12747_v58 = vand.u32 4294901760, %v10864_v30  ;;  %v11456_v36 = vand.u32 4294901760, %v31744_v5 }
 0x367   :  { %v14866_v10 = vsub.f32 %v31779_v31, %v33878_v40  ;;  %v14857_v0 = vand.u32 4294901760, %v14856_v25  ;;  %v31804_v2 = vsub.f32 %v26893_v27, %v12750_v11  ;;  %v34151_v27 = vand.u32 4294901760, %v31728_v51 }
 0x368   :  { %v26896_v42 = vpop.f32.mrb[42].mxu0  ;;  %v31801_v8 = vpack.c.bf16 %v12750_v11, %v12747_v58  ;;  %v31806_v3 = vsub.f32 %v10864_v30, %v12747_v58  ;;  %v11449_v25 = vand.u32 4294901760, %v31748_v41 }
 0x369   :  { %v10876_v45 = vpop.f32.mrb[43].mxu0  ;;  %34148 = vst [vmem:[#allocation72_spill] sm:$0xff] %v31804_v2  ;;  %v13209_v40 = vand.u32 4294901760, %v26896_v42  ;;  %v10991_v58 = vsub.f32 %v31728_v51, %v34151_v27  ;;  %27264 = vmatprep.mubr.f32.mxu0 %v14857_v0  ;;  %v11457_v0 = vsub.f32 %v31744_v5, %v11456_v36 }
 0x36a   :  { %v31796_v37 = vpop.f32.mrb[8].mxu1  ;;  %34147 = vst [vmem:[#allocation71_spill] sm:$0xff] %v31801_v8  ;;  %34149 = vst [vmem:[#allocation73_spill] sm:$0xff] %v31806_v3  ;;  %v13206_v30 = vand.u32 4294901760, %v10876_v45 }
 0x36b   :  { %34146 = vst [vmem:[#allocation70_spill] sm:$0xff] %v31796_v37  ;;  %v26104_v49 = vpop.f32.mrb[9].mxu1  ;;  %26474 = vmatmul.mubr.f32.vlgmr.msra.gmra.mrb[18].mxu1 %v30702_v7  ;;  %v14867_v37 = vand.u32 4294901760, %v14866_v10  ;;  %v31823_v21 = vsub.f32 %v26896_v42, %v13209_v40  ;;  %v10992_v18 = vand.u32 4294901760, %v10991_v58  ;;  %v11458_v58 = vand.u32 4294901760, %v11457_v0 }
 0x36c   :  { %28474 = vmatpush3.bf16.msra.mxu1 %v31292_v46  ;;  %26480 = vmatprep.mubr.msk.f32.mxu1 %vm30068_vm1, %v34033_v48  ;;  %v34150_v49 = vand.u32 4294901760, %v31714_v44  ;;  %v26899_v11 = vpop.f32.mrb[44].mxu0  ;;  %v31827_v1 = vsub.f32 %v10876_v45, %v13206_v30  ;;  %v11915_v46 = vand.u32 4294901760, %v31760_v28 }
 0x36d   :  { %28475 = vmatprep.subr.bf16.mxu1 %v34034_v14  ;;  %27265 = vmatmul.mubr.f32.gmra.mrb[62].mxu0 %v14867_v37  ;;  %v13668_v10 = vand.u32 4294901760, %v26899_v11  ;;  %v10888_v31 = vpop.f32.mrb[45].mxu0  ;;  %34152 = vst [vmem:[#allocation74_spill] sm:$0xff] %v31823_v21 }
 0x36e   :  { %v10998_v8 = vsub.f32 %v31714_v44, %v34150_v49  ;;  %27271 = vmatprep.mubr.f32.mxu0 %v31577_v16  ;;  %v31825_v49 = vpack.c.bf16 %v13209_v40, %v13206_v30  ;;  %34154 = vst [vmem:[#allocation76_spill] sm:$0xff] %v31827_v1  ;;  %v13665_v27 = vand.u32 4294901760, %v10888_v31  ;;  %v11450_v40 = vsub.f32 %v31748_v41, %v11449_v25 }
 0x36f   :  { %v31838_v45 = vsub.f32 %v26899_v11, %v13668_v10  ;;  %v11916_v37 = vsub.f32 %v31760_v28, %v11915_v46  ;;  %v11909_v11 = vsub.f32 %v31764_v19, %v11908_v52  ;;  %v12367_v28 = vand.u32 4294901760, %v31786_v23 }
 0x370   :  { %34153 = vst [vmem:[#allocation75_spill] sm:$0xff] %v31825_v49  ;;  %v10999_v29 = vand.u32 4294901760, %v10998_v8  ;;  %v31834_v60 = vpack.c.bf16 %v13668_v10, %v13665_v27  ;;  %v26902_v42 = vpop.f32.mrb[46].mxu0  ;;  %v31840_v30 = vsub.f32 %v10888_v31, %v13665_v27  ;;  %v12374_v10 = vand.u32 4294901760, %v31784_v17 }
 0x371   :  { %27272 = vmatmul.mubr.f32.vlgmr.msra.gmra.mrb[48].mxu0 %v31570_v4  ;;  %34156 = vst [vmem:[#allocation78_spill] sm:$0xff] %v31838_v45  ;;  %v14127_v49 = vand.u32 4294901760, %v26902_v42  ;;  %v10900_v5 = vpop.f32.mrb[47].mxu0  ;;  %v11451_v0 = vand.u32 4294901760, %v11450_v40  ;;  %v34161_v19 = vand.u32 4294901760, %v31728_v51  ;;  %v12368_v40 = vsub.f32 %v31786_v23, %v12367_v28 }
 0x372   :  { %34155 = vst [vmem:[#allocation77_spill] sm:$0xff] %v31834_v60  ;;  %34157 = vst [vmem:[#allocation79_spill] sm:$0xff] %v31840_v30  ;;  %27274 = vmatprep.mubr.f32.mxu0 %v31582_v39  ;;  %v14124_v8 = vand.u32 4294901760, %v10900_v5  ;;  %28762 = vmatpush3.bf16.msra.mxu0 %v30307_v59  ;;  %v31863_v31 = vpack.c.bf16 %v10999_v29, %v10992_v18  ;;  %v31878_v18 = vpack.c.bf16 %v11456_v36, %v11449_v25 }
 0x373   :  { %26481 = vmatmul.mubr.f32.vlgmr.msra.gmra.mrb[18].mxu1 %v30702_v7  ;;  %v31853_v27 = vsub.f32 %v26902_v42, %v14127_v49  ;;  %28764 = vmatprep.subr.bf16.mxu0 %v30140_v12  ;;  %v34162_v42 = vand.u32 4294901760, %v31714_v44  ;;  %v11917_v29 = vand.u32 4294901760, %v11916_v37  ;;  %v31889_v36 = vpack.c.bf16 %v11915_v46, %v11908_v52 }
 0x374   :  { %28477 = vmatpush3.bf16.msra.mxu1 %v31313_v56  ;;  %26487 = vmatprep.mubr.msk.f32.mxu1 %vm30068_vm1, %v34033_v48  ;;  %v31855_v60 = vpack.c.bf16 %v14127_v49, %v14124_v8  ;;  %v31857_v41 = vsub.f32 %v10900_v5, %v14124_v8  ;;  %v11910_v49 = vand.u32 4294901760, %v11909_v11  ;;  %v12833_v8 = vand.u32 4294901760, %v31804_v2 }
 0x375   :  { %28478 = vmatprep.subr.bf16.mxu1 %v34034_v14  ;;  %34158 = vst [vmem:[#allocation80_spill] sm:$0xff] %v31853_v27  ;;  %27275 = vmatmul.mubr.f32.gmra.mrb[50].mxu0 %v31607_v57  ;;  %v31869_v39 = vpack.c.bf16 %v34162_v42, %v34161_v19  ;;  %v12375_v19 = vsub.f32 %v31784_v17, %v12374_v10  ;;  %v12826_v42 = vand.u32 4294901760, %v31806_v3  ;;  %v13292_v37 = vand.u32 4294901760, %v31823_v21 }
 0x376   :  { %34159 = vst [vmem:[#allocation81_spill] sm:$0xff] %v31855_v60  ;;  %34160 = vst [vmem:[#allocation82_spill] sm:$0xff] %v31857_v41  ;;  %27277 = vmatprep.mubr.f32.mxu0 %v31613_v33  ;;  %v13285_v11 = vand.u32 4294901760, %v31827_v1  ;;  %v12369_v5 = vand.u32 4294901760, %v12368_v40  ;;  %v12834_v60 = vsub.f32 %v31804_v2, %v12833_v8  ;;  %v31896_v17 = vpack.c.bf16 %v11917_v29, %v11910_v49 }
 0x377   :  { %26488 = vmatmul.mubr.f32.vlgmr.msra.gmra.mrb[20].mxu1 %v30727_v9  ;;  %v12376_v25 = vand.u32 4294901760, %v12375_v19  ;;  %v12827_v23 = vsub.f32 %v31806_v3, %v12826_v42  ;;  %v34163_v52 = vpack.c.bf16 %v31309_v47, %v31315_v63  ;;  %v31905_v46 = vpack.c.bf16 %v12374_v10, %v12367_v28 }
 0x378   :  { %28480 = vmatpush3.bf16.msra.mxu1 %v31361_v20  ;;  %26494 = vmatprep.mubr.msk.f32.mxu1 %vm30068_vm1, %v34033_v48  ;;  %v31886_v20 = vpack.c.bf16 %v11458_v58, %v11451_v0  ;;  %v13293_v58 = vsub.f32 %v31823_v21, %v13292_v37  ;;  %v13286_v0 = vsub.f32 %v31827_v1, %v13285_v11  ;;  %v13751_v29 = vand.u32 4294901760, %v31838_v45 }
 0x379   :  { %28481 = vmatprep.subr.bf16.mxu1 %v34034_v14  ;;  %27278 = vmatmul.mubr.f32.gmra.mrb[52].mxu0 %v31615_v13  ;;  %34164 = vst [vmem:[#allocation83_spill] sm:$0xff] %v31905_v46  ;;  %v12835_v49 = vand.u32 4294901760, %v12834_v60  ;;  %v12828_v19 = vand.u32 4294901760, %v12827_v23  ;;  %v13744_v40 = vand.u32 4294901760, %v31840_v30  ;;  %v31913_v47 = vpack.c.bf16 %v12376_v25, %v12369_v5 }
 0x37a   :  { %27280 = vmatprep.mubr.f32.mxu0 %v31623_v43  ;;  %v31916_v63 = vpack.c.bf16 %v12833_v8, %v12826_v42  ;;  %v13294_v28 = vand.u32 4294901760, %v13293_v58  ;;  %v13287_v10 = vand.u32 4294901760, %v13286_v0  ;;  %v14210_v21 = vand.u32 4294901760, %v31853_v27 }
 0x37b   :  { %v13745_v1 = vsub.f32 %v31840_v30, %v13744_v40  ;;  %v14203_v60 = vand.u32 4294901760, %v31857_v41  ;;  %v31923_v23 = vpack.c.bf16 %v12835_v49, %v12828_v19  ;;  %v31930_v5 = vpack.c.bf16 %v13292_v37, %v13285_v11 }
 0x37c   :  { %34165 = vst [vmem:[#allocation84_spill] sm:$0xff] %v31916_v63  ;;  %v14211_v25 = vsub.f32 %v31853_v27, %v14210_v21  ;;  %v31936_v0 = vpack.c.bf16 %v13294_v28, %v13287_v10  ;;  %v31939_v49 = vpack.c.bf16 %v13751_v29, %v13744_v40  ;;  %v34177_v10 = vld [vmem:[#allocation50_spill] sm:$0xff]  ;;  %v34189_v27 = vld [vmem:[#allocation37_spill] sm:$0xff] }
 0x37d   :  { %27281 = vmatmul.mubr.f32.gmra.mrb[54].mxu0 %v31640_v54  ;;  %34166 = vst [vmem:[#allocation85_spill] sm:$0xff] %v31923_v23  ;;  %34167 = vst [vmem:[#allocation86_spill] sm:$0xff] %v31930_v5  ;;  %v13746_v42 = vand.u32 4294901760, %v13745_v1  ;;  %v14204_v58 = vsub.f32 %v31857_v41, %v14203_v60  ;;  %v31949_v1 = vpack.c.bf16 %v14210_v21, %v14203_v60  ;;  %v34175_v21 = vld [vmem:[#allocation39_spill] sm:$0xff]  ;;  %v34179_v60 = vld [vmem:[#allocation52_spill] sm:$0xff] }
 0x37e   :  { %27283 = vmatprep.mubr.f32.mxu0 %v31665_v6  ;;  %34168 = vst [vmem:[#allocation87_spill] sm:$0xff] %v31936_v0  ;;  %34169 = vst [vmem:[#allocation88_spill] sm:$0xff] %v31939_v49  ;;  %v14212_v19 = vand.u32 4294901760, %v14211_v25  ;;  %v34183_v25 = vld [vmem:[#allocation21_spill] sm:$0xff]  ;;  %v34188_v41 = vld [vmem:[#allocation35_spill] sm:$0xff]  ;;  %v34192_v49 = vand.u32 4294901760, %v31589_v62 }
 0x37f   :  { %26495 = vmatmul.mubr.f32.vlgmr.msra.gmra.mrb[20].mxu1 %v30702_v7  ;;  %v14205_v30 = vand.u32 4294901760, %v14204_v58  ;;  %34171 = vst [vmem:[#allocation90_spill] sm:$0xff] %v31949_v1  ;;  %v34184_v58 = vld [vmem:[#allocation55_spill] sm:$0xff]  ;;  %v34187_v1 = vld [vmem:[#allocation65_spill] sm:$0xff] }
 0x380   :  { %28483 = vmatpush3.bf16.msra.mxu1 %v34163_v52  ;;  %26501 = vmatprep.mubr.msk.f32.mxu1 %vm30068_vm1, %v34033_v48  ;;  %v13752_v52 = vsub.f32 %v31838_v45, %v13751_v29  ;;  %v34173_v29 = vld [vmem:[#allocation16_spill] sm:$0xff]  ;;  %v34193_v45 = vand.u32 4294901760, %v31580_v26 }
 0x381   :  { %28484 = vmatprep.subr.bf16.mxu1 %v34034_v14  ;;  %27284 = vmatmul.mubr.f32.gmra.mrb[56].mxu0 %v31675_v55  ;;  %v31953_v11 = vpack.c.bf16 %v14212_v19, %v14205_v30  ;;  %v34176_v30 = vld [vmem:[#allocation33_spill] sm:$0xff]  ;;  %v34185_v19 = vld [vmem:[#allocation56_spill] sm:$0xff] }
 0x382   :  { %27286 = vmatprep.mubr.f32.mxu0 %v31684_v24  ;;  %v13753_v8 = vand.u32 4294901760, %v13752_v52  ;;  %v34178_v52 = vld [vmem:[#allocation51_spill] sm:$0xff] }
 0x383   :  { %34172 = vst [vmem:[#allocation91_spill] sm:$0xff] %v31953_v11  ;;  %v34190_v11 = vpack.c.bf16 %v34188_v41, %v34189_v27  ;;  %v34200_v27 = vand.u32 4294901760, %v34178_v52 }
 0x384   :  { %v31942_v37 = vpack.c.bf16 %v13753_v8, %v13746_v42  ;;  %v34180_v8 = vld [vmem:[#allocation20_spill] sm:$0xff]  ;;  %v34182_v42 = vld [vmem:[#allocation54_spill] sm:$0xff] }
 0x385   :  { %27287 = vmatmul.mubr.f32.gmra.mrb[58].mxu0 %v31691_v61 }
 0x386   :  { %27289 = vmatprep.mubr.f32.mxu0 %v31703_v35  ;;  %34170 = vst [vmem:[#allocation89_spill] sm:$0xff] %v31942_v37  ;;  %v34194_v37 = vand.u32 4294901760, %v31593_v38 }
 0x387   :  { %26502 = vmatmul.mubr.f32.vlgmr.msra.gmra.mrb[20].mxu1 %v30707_v22 }
 0x388   :  { %28486 = vmatpush3.bf16.msra.mxu1 %v31313_v56  ;;  %26508 = vmatprep.mubr.msk.f32.mxu1 %vm30068_vm1, %v34033_v48 }
 0x389   :  { %28487 = vmatprep.subr.bf16.mxu1 %v34034_v14  ;;  %27290 = vmatmul.mubr.f32.gmra.mrb[60].mxu0 %v31708_v53 }
 0x38a   :  { %27292 = vmatprep.mubr.f32.mxu0 %v31762_v50 }
 0x38d   :  { %27293 = vmatmul.mubr.f32.gmra.mrb[62].mxu0 %v31770_v15 }
 0x38e   :  { %27299 = vmatprep.mubr.f32.mxu0 %v31589_v62  ;;  %v34197_v62 = vand.u32 4294901760, %v34176_v30 }
 0x38f   :  { %26509 = vmatmul.mubr.f32.vlgmr.msra.gmra.mrb[20].mxu1 %v30712_v34 }
 0x390   :  { %28489 = vmatpush3.bf16.msra.mxu1 %v31343_v32  ;;  %26515 = vmatprep.mubr.msk.f32.mxu1 %vm30068_vm1, %v34033_v48  ;;  %v34174_v32 = vld [vmem:[#allocation31_spill] sm:$0xff] }
 0x391   :  { %28490 = vmatprep.subr.bf16.mxu1 %v34034_v14  ;;  %27300 = vmatmul.mubr.f32.vlgmr.msra.gmra.mrb[48].mxu0 %v31580_v26  ;;  %v34195_v41 = vand.u32 4294901760, %v34174_v32  ;;  %v34196_v26 = vand.u32 4294901760, %v34175_v21 }
 0x392   :  { %27302 = vmatprep.mubr.f32.mxu0 %v31593_v38  ;;  %28766 = vmatpush3.bf16.msra.mxu0 %v30140_v12  ;;  %v34198_v38 = vand.u32 4294901760, %v34177_v10 }
 0x393   :  { %28768 = vmatprep.subr.bf16.mxu0 %v34173_v29 }
 0x395   :  { %27303 = vmatmul.mubr.f32.gmra.mrb[50].mxu0 %v34174_v32 }
 0x396   :  { %v31958_v40 = vpop.f32.mrb[10].mxu1  ;;  %27305 = vmatprep.mubr.f32.mxu0 %v34175_v21  ;;  %v34204_v21 = vand.u32 4294901760, %v34182_v42 }
 0x397   :  { %v26146_v28 = vpop.f32.mrb[11].mxu1  ;;  %26516 = vmatmul.mubr.f32.vlgmr.msra.gmra.mrb[20].mxu1 %v30702_v7 }
 0x398   :  { %28492 = vmatpush3.bf16.msra.mxu1 %v31313_v56  ;;  %26522 = vmatprep.mubr.msk.f32.mxu1 %vm30068_vm1, %v34033_v48  ;;  %v34181_v56 = vld [vmem:[#allocation53_spill] sm:$0xff] }
 0x399   :  { %28493 = vmatprep.subr.bf16.mxu1 %v34034_v14  ;;  %27306 = vmatmul.mubr.f32.gmra.mrb[52].mxu0 %v34176_v30  ;;  %v34186_v28 = vld [vmem:[#allocation57_spill] sm:$0xff]  ;;  %v34205_v30 = vand.u32 4294901760, %v34184_v58 }
 0x39a   :  { %27308 = vmatprep.mubr.f32.mxu0 %v34177_v10  ;;  %v34206_v10 = vand.u32 4294901760, %v34185_v19 }
 0x39d   :  { %27309 = vmatmul.mubr.f32.gmra.mrb[54].mxu0 %v34178_v52  ;;  %v34207_v52 = vand.u32 4294901760, %v34186_v28 }
 0x39e   :  { %27311 = vmatprep.mubr.f32.mxu0 %v34179_v60 }
 0x39f   :  { %26523 = vmatmul.mubr.f32.vlgmr.msra.gmra.mrb[20].mxu1 %v30702_v7 }
 0x3a0   :  { %28495 = vmatpush3.bf16.msra.mxu1 %v34180_v8  ;;  %26529 = vmatprep.mubr.msk.f32.mxu1 %vm30068_vm1, %v34033_v48 }
 0x3a1   :  { %28496 = vmatprep.subr.bf16.mxu1 %v34034_v14  ;;  %27312 = vmatmul.mubr.f32.gmra.mrb[56].mxu0 %v34181_v56 }
 0x3a2   :  { %27314 = vmatprep.mubr.f32.mxu0 %v34182_v42  ;;  %v34211_v42 = vld [vmem:[#allocation42_spill] sm:$0xff] }
 0x3a3   :  { %26530 = vmatmul.mubr.f32.vlgmr.msra.gmra.mrb[22].mxu1 %v30727_v9 }
 0x3a4   :  { %28498 = vmatpush3.bf16.msra.mxu1 %v34183_v25  ;;  %26536 = vmatprep.mubr.msk.f32.mxu1 %vm30068_vm1, %v34033_v48  ;;  %v34191_v25 = vld [vmem:[#allocation66_spill] sm:$0xff] }
 0x3a5   :  { %28499 = vmatprep.subr.bf16.mxu1 %v34034_v14  ;;  %27315 = vmatmul.mubr.f32.gmra.mrb[58].mxu0 %v34184_v58  ;;  %v34213_v58 = vld [vmem:[#allocation18_spill] sm:$0xff] }
 0x3a6   :  { %27317 = vmatprep.mubr.f32.mxu0 %v34185_v19  ;;  %v34214_v19 = vld [vmem:[#allocation17_spill] sm:$0xff] }
 0x3a9   :  { %27318 = vmatmul.mubr.f32.gmra.mrb[60].mxu0 %v34186_v28  ;;  %v34215_v28 = vpack.c.bf16 %v34213_v58, %v34214_v19  ;;  %v34246_v19 = vld [vmem:[#allocation49_spill] sm:$0xff] }
 0x3aa   :  { %27320 = vmatprep.mubr.f32.mxu0 %v34187_v1 }
 0x3ab   :  { %26537 = vmatmul.mubr.f32.vlgmr.msra.gmra.mrb[22].mxu1 %v30702_v7 }
 0x3ac   :  { %28501 = vmatpush3.bf16.msra.mxu1 %v34190_v11  ;;  %26543 = vmatprep.mubr.msk.f32.mxu1 %vm30068_vm1, %v34033_v48  ;;  %v34203_v11 = vand.u32 4294901760, %v34181_v56  ;;  %v34210_v56 = vand.u32 4294901760, %v34191_v25 }
 0x3ad   :  { %28502 = vmatprep.subr.bf16.mxu1 %v34034_v14  ;;  %27321 = vmatmul.mubr.f32.gmra.mrb[62].mxu0 %v34191_v25  ;;  %v34216_v25 = vld [vmem:[#allocation23_spill] sm:$0xff] }
 0x3ae   :  { %27327 = vmatprep.mubr.f32.mxu0 %v34192_v49  ;;  %v34201_v49 = vand.u32 4294901760, %v34179_v60  ;;  %v34208_v60 = vand.u32 4294901760, %v34187_v1  ;;  %v34212_v1 = vld [vmem:[#allocation38_spill] sm:$0xff] }
 0x3b1   :  { %27328 = vmatmul.mubr.f32.vlgmr.msra.gmra.mrb[48].mxu0 %v34193_v45  ;;  %v34199_v45 = vld [vmem:[#allocation19_spill] sm:$0xff] }
 0x3b2   :  { %27330 = vmatprep.mubr.f32.mxu0 %v34194_v37  ;;  %28770 = vmatpush3.bf16.msra.mxu0 %v34173_v29 }
 0x3b3   :  { %26544 = vmatmul.mubr.f32.vlgmr.msra.gmra.mrb[22].mxu1 %v30707_v22  ;;  %28772 = vmatprep.subr.bf16.mxu0 %v30140_v12 }
 0x3b4   :  { %28504 = vmatpush3.bf16.msra.mxu1 %v34180_v8  ;;  %26550 = vmatprep.mubr.msk.f32.mxu1 %vm30068_vm1, %v34033_v48 }
 0x3b5   :  { %28505 = vmatprep.subr.bf16.mxu1 %v34034_v14  ;;  %27331 = vmatmul.mubr.f32.gmra.mrb[50].mxu0 %v34195_v41 }
 0x3b6   :  { %27333 = vmatprep.mubr.f32.mxu0 %v34196_v26 }
 0x3b9   :  { %27334 = vmatmul.mubr.f32.gmra.mrb[52].mxu0 %v34197_v62  ;;  %v34218_v62 = vld [vmem:[#allocation15_spill] sm:$0xff] }
 0x3ba   :  { %27336 = vmatprep.mubr.f32.mxu0 %v34198_v38  ;;  %v34232_v38 = vld [vmem:[#allocation29_spill] sm:$0xff] }
 0x3bb   :  { %26551 = vmatmul.mubr.f32.vlgmr.msra.gmra.mrb[22].mxu1 %v30712_v34 }
 0x3bc   :  { %28507 = vmatpush3.bf16.msra.mxu1 %v34199_v45  ;;  %26557 = vmatprep.mubr.msk.f32.mxu1 %vm30068_vm1, %v34033_v48  ;;  %v34233_v45 = vld [vmem:[#allocation41_spill] sm:$0xff] }
 0x3bd   :  { %28508 = vmatprep.subr.bf16.mxu1 %v34034_v14  ;;  %27337 = vmatmul.mubr.f32.gmra.mrb[54].mxu0 %v34200_v27  ;;  %v34234_v27 = vpack.c.bf16 %v34232_v38, %v34233_v45  ;;  %v29948_v38 = vld [vmem:[#allocation4 + $0x10] sm:$0xff] }
 0x3be   :  { %27339 = vmatprep.mubr.f32.mxu0 %v34201_v49  ;;  %v34235_v49 = vld [vmem:[#allocation48_spill] sm:$0xff] }
 0x3bf   :  { %v29949_v45 = vld [vmem:[#allocation7 + $0x10] sm:$0xff] }
 0x3c1   :  { %27340 = vmatmul.mubr.f32.gmra.mrb[56].mxu0 %v34203_v11 }
 0x3c2   :  { %v32025_v37 = vpop.f32.mrb[12].mxu1  ;;  %27342 = vmatprep.mubr.f32.mxu0 %v34204_v21 }
 0x3c3   :  { %34202 = vst [vmem:[#allocation16_spill] sm:$0xff] %v32025_v37  ;;  %v26188_v32 = vpop.f32.mrb[13].mxu1  ;;  %26558 = vmatmul.mubr.f32.vlgmr.msra.gmra.mrb[22].mxu1 %v30702_v7 }
 0x3c4   :  { %28510 = vmatpush3.bf16.msra.mxu1 %v34180_v8  ;;  %26564 = vmatprep.mubr.msk.f32.mxu1 %vm30068_vm1, %v34033_v48  ;;  %v34209_v8 = vld [vmem:[#allocation28_spill] sm:$0xff]  ;;  %v34236_v32 = vld [vmem:[#allocation27_spill] sm:$0xff] }
 0x3c5   :  { %28511 = vmatprep.subr.bf16.mxu1 %v34034_v14  ;;  %27343 = vmatmul.mubr.f32.gmra.mrb[58].mxu0 %v34205_v30  ;;  %v32190_v21 = vmul.f32 %v34236_v32, %v34236_v32 }
 0x3c6   :  { %27345 = vmatprep.mubr.f32.mxu0 %v34206_v10 }
 0x3c7   :  { %34237 = vst [vmem:[#allocation52_spill] sm:$0xff] %v32190_v21 }
 0x3c9   :  { %27346 = vmatmul.mubr.f32.gmra.mrb[60].mxu0 %v34207_v52 }
 0x3ca   :  { %27348 = vmatprep.mubr.f32.mxu0 %v34208_v60 }
 0x3cb   :  { %26565 = vmatmul.mubr.f32.vlgmr.msra.gmra.mrb[22].mxu1 %v30702_v7 }
 0x3cc   :  { %28513 = vmatpush3.bf16.msra.mxu1 %v34209_v8  ;;  %26571 = vmatprep.mubr.msk.f32.mxu1 %vm30068_vm1, %v34033_v48 }
 0x3cd   :  { %28514 = vmatprep.subr.bf16.mxu1 %v34034_v14  ;;  %27349 = vmatmul.mubr.f32.gmra.mrb[62].mxu0 %v34210_v56  ;;  %v34242_v56 = vld [vmem:[#allocation34_spill] sm:$0xff] }
 0x3ce   :  { %27355 = vmatprep.mubr.f32.mxu0 %v31577_v16 }
 0x3cf   :  { %26572 = vmatmul.mubr.f32.vlgmr.msra.gmra.mrb[24].mxu1 %v30727_v9 }
 0x3d0   :  { %28516 = vmatpush3.bf16.msra.mxu1 %v34211_v42  ;;  %26578 = vmatprep.mubr.msk.f32.mxu1 %vm30068_vm1, %v34033_v48  ;;  %v34243_v42 = vld [vmem:[#allocation44_spill] sm:$0xff] }
 0x3d1   :  { %28517 = vmatprep.subr.bf16.mxu1 %v34034_v14  ;;  %27356 = vmatmul.mubr.f32.vlgmr.msra.gmra.mrb[48].mxu0 %v31570_v4 }
 0x3d2   :  { %27358 = vmatprep.mubr.f32.mxu0 %v34212_v1  ;;  %28774 = vmatpush3.bf16.msra.mxu0 %v30140_v12 }
 0x3d3   :  { %28920 = vmatprep.subr.bf16.mxu0 %v30140_v12 }
 0x3d5   :  { %27359 = vmatmul.mubr.f32.gmra.mrb[50].mxu0 %v31607_v57 }
 0x3d6   :  { %27361 = vmatprep.mubr.f32.mxu0 %v31613_v33 }
 0x3d7   :  { %26579 = vmatmul.mubr.f32.vlgmr.msra.gmra.mrb[24].mxu1 %v30702_v7 }
 0x3d8   :  { %28519 = vmatpush3.bf16.msra.mxu1 %v34215_v28  ;;  %26585 = vmatprep.mubr.msk.f32.mxu1 %vm30068_vm1, %v34033_v48 }
 0x3d9   :  { %28520 = vmatprep.subr.bf16.mxu1 %v34034_v14  ;;  %27362 = vmatmul.mubr.f32.gmra.mrb[52].mxu0 %v31615_v13 }
 0x3da   :  { %27364 = vmatprep.mubr.f32.mxu0 %v31623_v43 }
 0x3dd   :  { %27365 = vmatmul.mubr.f32.gmra.mrb[54].mxu0 %v31640_v54 }
 0x3de   :  { %27367 = vmatprep.mubr.f32.mxu0 %v31665_v6 }
 0x3df   :  { %26586 = vmatmul.mubr.f32.vlgmr.msra.gmra.mrb[24].mxu1 %v30707_v22 }
 0x3e0   :  { %28522 = vmatpush3.bf16.msra.mxu1 %v34209_v8  ;;  %26592 = vmatprep.mubr.msk.f32.mxu1 %vm30068_vm1, %v34033_v48 }
 0x3e1   :  { %28523 = vmatprep.subr.bf16.mxu1 %v34034_v14  ;;  %27368 = vmatmul.mubr.f32.gmra.mrb[56].mxu0 %v31675_v55 }
 0x3e2   :  { %27370 = vmatprep.mubr.f32.mxu0 %v31684_v24 }
 0x3e5   :  { %27371 = vmatmul.mubr.f32.gmra.mrb[58].mxu0 %v31691_v61 }
 0x3e6   :  { %27373 = vmatprep.mubr.f32.mxu0 %v31703_v35 }
 0x3e7   :  { %26593 = vmatmul.mubr.f32.vlgmr.msra.gmra.mrb[24].mxu1 %v30712_v34 }
 0x3e8   :  { %28525 = vmatpush3.bf16.msra.mxu1 %v34216_v25  ;;  %26599 = vmatprep.mubr.msk.f32.mxu1 %vm30068_vm1, %v34033_v48  ;;  %v34247_v25 = vld [vmem:[#allocation36_spill] sm:$0xff] }
 0x3e9   :  { %28526 = vmatprep.subr.bf16.mxu1 %v34034_v14  ;;  %27374 = vmatmul.mubr.f32.gmra.mrb[60].mxu0 %v31708_v53 }
 0x3ea   :  { %27376 = vmatprep.mubr.f32.mxu0 %v31762_v50 }
 0x3ed   :  { %27377 = vmatmul.mubr.f32.gmra.mrb[62].mxu0 %v31770_v15 }
 0x3ee   :  { %v32090_v41 = vpop.f32.mrb[14].mxu1  ;;  %27383 = vmatprep.mubr.f32.mxu0 %v31577_v16  ;;  %v34219_v16 = vld [vmem:[#allocation22_spill] sm:$0xff] }
 0x3ef   :  { %34217 = vst [vmem:[#allocation31_spill] sm:$0xff] %v32090_v41  ;;  %v26230_v26 = vpop.f32.mrb[15].mxu1  ;;  %26600 = vmatmul.mubr.f32.vlgmr.msra.gmra.mrb[24].mxu1 %v30702_v7 }
 0x3f0   :  { %28528 = vmatpush3.bf16.msra.mxu1 %v34209_v8  ;;  %26606 = vmatprep.mubr.msk.f32.mxu1 %vm30068_vm1, %v34033_v48  ;;  %v34241_v8 = vld [vmem:[#allocation45_spill] sm:$0xff]  ;;  %v32235_v26 = vmul.f32 %v34247_v25, %v34247_v25 }
 0x3f1   :  { %28529 = vmatprep.subr.bf16.mxu1 %v34034_v14  ;;  %27384 = vmatmul.mubr.f32.vlgmr.msra.gmra.mrb[48].mxu0 %v31570_v4  ;;  %v34220_v4 = vld [vmem:[#allocation47_spill] sm:$0xff] }
 0x3f2   :  { %27386 = vmatprep.mubr.f32.mxu0 %v34212_v1  ;;  %28922 = vmatpush3.bf16.msra.mxu0 %v30140_v12  ;;  %v34244_v1 = vld [vmem:[#allocation46_spill] sm:$0xff]  ;;  %34248 = vst [vmem:[#allocation21_spill] sm:$0xff] %v32235_v26 }
 0x3f3   :  { %28924 = vmatprep.subr.bf16.mxu0 %v34218_v62  ;;  %v34245_v58 = vpack.c.bf16 %v34243_v42, %v34244_v1 }
 0x3f5   :  { %27387 = vmatmul.mubr.f32.gmra.mrb[50].mxu0 %v31607_v57  ;;  %v34221_v57 = vld [vmem:[#allocation24_spill] sm:$0xff] }
 0x3f6   :  { %27389 = vmatprep.mubr.f32.mxu0 %v31613_v33  ;;  %v34222_v33 = vld [vmem:[#allocation32_spill] sm:$0xff] }
 0x3f7   :  { %26607 = vmatmul.mubr.f32.vlgmr.msra.gmra.mrb[24].mxu1 %v30702_v7 }
 0x3f8   :  { %28531 = vmatpush3.bf16.msra.mxu1 %v34219_v16  ;;  %26613 = vmatprep.mubr.msk.f32.mxu1 %vm30068_vm1, %v34033_v48 }
 0x3f9   :  { %28532 = vmatprep.subr.bf16.mxu1 %v34034_v14  ;;  %27390 = vmatmul.mubr.f32.gmra.mrb[52].mxu0 %v31615_v13  ;;  %v34223_v13 = vpack.c.bf16 %v34221_v57, %v34222_v33 }
 0x3fa   :  { %27392 = vmatprep.mubr.f32.mxu0 %v31623_v43  ;;  %v34225_v43 = vld [vmem:[#allocation25_spill] sm:$0xff] }
 0x3fb   :  { %26614 = vmatmul.mubr.f32.vlgmr.msra.gmra.mrb[26].mxu1 %v30727_v9 }
 0x3fc   :  { %28534 = vmatpush3.bf16.msra.mxu1 %v34220_v4  ;;  %26620 = vmatprep.mubr.msk.f32.mxu1 %vm30068_vm1, %v34033_v48 }
 0x3fd   :  { %28535 = vmatprep.subr.bf16.mxu1 %v34034_v14  ;;  %27393 = vmatmul.mubr.f32.gmra.mrb[54].mxu0 %v31640_v54  ;;  %v32145_v54 = vmul.f32 %v34225_v43, %v34225_v43 }
 0x3fe   :  { %27395 = vmatprep.mubr.f32.mxu0 %v31665_v6  ;;  %v34224_v6 = vld [vmem:[#allocation43_spill] sm:$0xff] }
 0x3ff   :  { %34226 = vst [vmem:[#allocation39_spill] sm:$0xff] %v32145_v54 }
 0x401   :  { %27396 = vmatmul.mubr.f32.gmra.mrb[56].mxu0 %v31675_v55 }
 0x402   :  { %27398 = vmatprep.mubr.f32.mxu0 %v31684_v24 }
 0x403   :  { %26621 = vmatmul.mubr.f32.vlgmr.msra.gmra.mrb[26].mxu1 %v30702_v7 }
 0x404   :  { %28537 = vmatpush3.bf16.msra.mxu1 %v34223_v13  ;;  %26627 = vmatprep.mubr.msk.f32.mxu1 %vm30068_vm1, %v34033_v48  ;;  %v34252_v13 = vld [vmem:[#allocation58_spill] sm:$0xff] }
 0x405   :  { %28538 = vmatprep.subr.bf16.mxu1 %v34034_v14  ;;  %27399 = vmatmul.mubr.f32.gmra.mrb[58].mxu0 %v31691_v61 }
 0x406   :  { %27401 = vmatprep.mubr.f32.mxu0 %v31703_v35 }
 0x409   :  { %27402 = vmatmul.mubr.f32.gmra.mrb[60].mxu0 %v31708_v53 }
 0x40a   :  { %27404 = vmatprep.mubr.f32.mxu0 %v31762_v50  ;;  %v34230_v50 = vld [vmem:[#allocation40_spill] sm:$0xff] }
 0x40b   :  { %26628 = vmatmul.mubr.f32.vlgmr.msra.gmra.mrb[26].mxu1 %v30707_v22 }
 0x40c   :  { %28540 = vmatpush3.bf16.msra.mxu1 %v34219_v16  ;;  %26634 = vmatprep.mubr.msk.f32.mxu1 %vm30068_vm1, %v34033_v48 }
 0x40d   :  { %28541 = vmatprep.subr.bf16.mxu1 %v34034_v14  ;;  %27405 = vmatmul.mubr.f32.gmra.mrb[62].mxu0 %v31770_v15  ;;  %v34231_v15 = vld [vmem:[#allocation26_spill] sm:$0xff] }
 0x413   :  { %26635 = vmatmul.mubr.f32.vlgmr.msra.gmra.mrb[26].mxu1 %v30712_v34 }
 0x414   :  { %28543 = vmatpush3.bf16.msra.mxu1 %v34224_v6  ;;  %26641 = vmatprep.mubr.msk.f32.mxu1 %vm30068_vm1, %v34033_v48  ;;  %v34253_v6 = vpack.c.bf16 %v31714_v44, %v31728_v51  ;;  %v29946_v51 = vld [vmem:[#allocation4] sm:$0xff] }
 0x415   :  { %28544 = vmatprep.subr.bf16.mxu1 %v34034_v14  ;;  %v29947_v44 = vld [vmem:[#allocation7] sm:$0xff] }
 0x41a   :  { %v6525_v53 = vpop.f32.mrb[16].mxu1 }
 0x41b   :  { %v32147_v55 = vmul.f32 %v6525_v53, %v6525_v53  ;;  %v32150_v24 = vmul.f32 %v6525_v53, %v34225_v43  ;;  %v26440_v61 = vpop.f32.mrb[17].mxu1  ;;  %26642 = vmatmul.mubr.f32.vlgmr.msra.gmra.mrb[26].mxu1 %v30702_v7  ;;  %v19422_v43 = vmul.f32 %v29947_v44, %v29946_v51 }
 0x41c   :  { %28546 = vmatpush3.bf16.msra.mxu1 %v34219_v16  ;;  %26648 = vmatprep.mubr.msk.f32.mxu1 %vm30068_vm1, %v34033_v48 }
 0x41d   :  { %34227 = vst [vmem:[#allocation33_spill] sm:$0xff] %v32147_v55  ;;  %34228 = vst [vmem:[#allocation50_spill] sm:$0xff] %v32150_v24  ;;  %v32158_v35 = vadd.f32 %v32147_v55, %v32145_v54  ;;  %28547 = vmatprep.subr.bf16.mxu1 %v34034_v14  ;;  %v29967_v55 = vld [vmem:[#allocation7 + $0x58] sm:$0xff] }
 0x41f   :  { %34229 = vst [vmem:[#allocation51_spill] sm:$0xff] %v32158_v35  ;;  %v29966_v35 = vld [vmem:[#allocation4 + $0x58] sm:$0xff] }
 0x423   :  { %26649 = vmatmul.mubr.f32.vlgmr.msra.gmra.mrb[26].mxu1 %v30702_v7 }
 0x424   :  { %28549 = vmatpush3.bf16.msra.mxu1 %v34230_v50  ;;  %26655 = vmatprep.mubr.msk.f32.mxu1 %vm30068_vm1, %v34033_v48 }
 0x425   :  { %28550 = vmatprep.subr.bf16.mxu1 %v34034_v14 }
 0x427   :  { %26656 = vmatmul.mubr.f32.vlgmr.msra.gmra.mrb[28].mxu1 %v30727_v9 }
 0x428   :  { %28552 = vmatpush3.bf16.msra.mxu1 %v34231_v15  ;;  %26662 = vmatprep.mubr.msk.f32.mxu1 %vm30068_vm1, %v34033_v48 }
 0x429   :  { %28553 = vmatprep.subr.bf16.mxu1 %v34034_v14 }
 0x42f   :  { %26663 = vmatmul.mubr.f32.vlgmr.msra.gmra.mrb[28].mxu1 %v30702_v7 }
 0x430   :  { %28555 = vmatpush3.bf16.msra.mxu1 %v34234_v27  ;;  %26669 = vmatprep.mubr.msk.f32.mxu1 %vm30068_vm1, %v34033_v48  ;;  %v19424_v27 = vmul.f32 %v29949_v45, %v29948_v38  ;;  %v29951_v38 = vld [vmem:[#allocation7 + $0x18] sm:$0xff] }
 0x431   :  { %28556 = vmatprep.subr.bf16.mxu1 %v34034_v14 }
 0x437   :  { %26670 = vmatmul.mubr.f32.vlgmr.msra.gmra.mrb[28].mxu1 %v30707_v22 }
 0x438   :  { %28558 = vmatpush3.bf16.msra.mxu1 %v34230_v50  ;;  %26676 = vmatprep.mubr.msk.f32.mxu1 %vm30068_vm1, %v34033_v48 }
 0x439   :  { %28559 = vmatprep.subr.bf16.mxu1 %v34034_v14 }
 0x43f   :  { %26677 = vmatmul.mubr.f32.vlgmr.msra.gmra.mrb[28].mxu1 %v30712_v34 }
 0x440   :  { %28561 = vmatpush3.bf16.msra.mxu1 %v34235_v49  ;;  %26683 = vmatprep.mubr.msk.f32.mxu1 %vm30068_vm1, %v34033_v48 }
 0x441   :  { %28562 = vmatprep.subr.bf16.mxu1 %v34034_v14 }
 0x446   :  { %v6984_v11 = vpop.f32.mrb[18].mxu1 }
 0x447   :  { %v32192_v30 = vmul.f32 %v6984_v11, %v6984_v11  ;;  %v32195_v10 = vmul.f32 %v6984_v11, %v34236_v32  ;;  %v26482_v52 = vpop.f32.mrb[19].mxu1  ;;  %26684 = vmatmul.mubr.f32.vlgmr.msra.gmra.mrb[28].mxu1 %v30702_v7  ;;  %v34257_v11 = vld [vmem:[#allocation30_spill] sm:$0xff] }
 0x448   :  { %28564 = vmatpush3.bf16.msra.mxu1 %v34230_v50  ;;  %26690 = vmatprep.mubr.msk.f32.mxu1 %vm30068_vm1, %v34033_v48  ;;  %v19439_v50 = vsel %vm90_vm0, %v19422_v43, 0  ;;  %v32290_v32 = vmul.f32 %v34257_v11, %v34257_v11 }
 0x449   :  { %34238 = vst [vmem:[#allocation20_spill] sm:$0xff] %v32192_v30  ;;  %34239 = vst [vmem:[#allocation53_spill] sm:$0xff] %v32195_v10  ;;  %v32203_v60 = vadd.f32 %v32192_v30, %v32190_v21  ;;  %28565 = vmatprep.subr.bf16.mxu1 %v34034_v14  ;;  %v32286_v49 = vand.u32 4294901760, %v19439_v50 }
 0x44a   :  { %34258 = vst [vmem:[#allocation37_spill] sm:$0xff] %v32290_v32 }
 0x44b   :  { %34240 = vst [vmem:[#allocation54_spill] sm:$0xff] %v32203_v60  ;;  %34256 = vst [vmem:[#allocation35_spill] sm:$0xff] %v32286_v49 }
 0x44f   :  { %26691 = vmatmul.mubr.f32.vlgmr.msra.gmra.mrb[28].mxu1 %v30702_v7 }
 0x450   :  { %28567 = vmatpush3.bf16.msra.mxu1 %v34241_v8  ;;  %26697 = vmatprep.mubr.msk.f32.mxu1 %vm30068_vm1, %v34033_v48 }
 0x451   :  { %28568 = vmatprep.subr.bf16.mxu1 %v34034_v14 }
 0x453   :  { %26698 = vmatmul.mubr.f32.vlgmr.msra.gmra.mrb[30].mxu1 %v30727_v9 }
 0x454   :  { %28570 = vmatpush3.bf16.msra.mxu1 %v34242_v56  ;;  %26704 = vmatprep.mubr.msk.f32.mxu1 %vm30068_vm1, %v34033_v48 }
 0x455   :  { %28571 = vmatprep.subr.bf16.mxu1 %v34034_v14 }
 0x45b   :  { %26705 = vmatmul.mubr.f32.vlgmr.msra.gmra.mrb[30].mxu1 %v30702_v7 }
 0x45c   :  { %28573 = vmatpush3.bf16.msra.mxu1 %v34245_v58  ;;  %26711 = vmatprep.mubr.msk.f32.mxu1 %vm30068_vm1, %v34033_v48  ;;  %v32301_v58 = vsub.f32 %v19439_v50, %v32286_v49  ;;  %v29950_v50 = vld [vmem:[#allocation4 + $0x18] sm:$0xff] }
 0x45d   :  { %28574 = vmatprep.subr.bf16.mxu1 %v34034_v14  ;;  %v19425_v45 = vmul.f32 %v29951_v38, %v29950_v50 }
 0x45f   :  { %v19448_v50 = vsel %vm90_vm0, %v19425_v45, 0 }
 0x463   :  { %26712 = vmatmul.mubr.f32.vlgmr.msra.gmra.mrb[30].mxu1 %v30707_v22 }
 0x464   :  { %28576 = vmatpush3.bf16.msra.mxu1 %v34241_v8  ;;  %26718 = vmatprep.mubr.msk.f32.mxu1 %vm30068_vm1, %v34033_v48 }
 0x465   :  { %28577 = vmatprep.subr.bf16.mxu1 %v34034_v14 }
 0x46b   :  { %26719 = vmatmul.mubr.f32.vlgmr.msra.gmra.mrb[30].mxu1 %v30712_v34 }
 0x46c   :  { %28579 = vmatpush3.bf16.msra.mxu1 %v34246_v19  ;;  %26725 = vmatprep.mubr.msk.f32.mxu1 %vm30068_vm1, %v34033_v48 }
 0x46d   :  { %28580 = vmatprep.subr.bf16.mxu1 %v34034_v14 }
 0x472   :  { %v7443_v28 = vpop.f32.mrb[20].mxu1 }
 0x473   :  { %v32237_v16 = vmul.f32 %v7443_v28, %v7443_v28  ;;  %v32240_v4 = vmul.f32 %v7443_v28, %v34247_v25  ;;  %v26524_v57 = vpop.f32.mrb[21].mxu1  ;;  %26726 = vmatmul.mubr.f32.vlgmr.msra.gmra.mrb[30].mxu1 %v30702_v7  ;;  %v33912_v25 = vand.u32 4294901760, %v32301_v58 }
 0x474   :  { %28582 = vmatpush3.bf16.msra.mxu1 %v34241_v8  ;;  %26732 = vmatprep.mubr.msk.f32.mxu1 %vm30068_vm1, %v34033_v48  ;;  %v19445_v8 = vsel %vm90_vm0, %v19424_v27, 0  ;;  %v29952_v27 = vld [vmem:[#allocation4 + $0x20] sm:$0xff] }
 0x475   :  { %34249 = vst [vmem:[#allocation55_spill] sm:$0xff] %v32237_v16  ;;  %34250 = vst [vmem:[#allocation56_spill] sm:$0xff] %v32240_v4  ;;  %v32248_v33 = vadd.f32 %v32237_v16, %v32235_v26  ;;  %28607 = vmatprep.subr.bf16.mxu1 %v34034_v14  ;;  %v32303_v19 = vand.u32 4294901760, %v19445_v8 }
 0x477   :  { %34251 = vst [vmem:[#allocation57_spill] sm:$0xff] %v32248_v33  ;;  %34261 = vst [vmem:[#allocation28_spill] sm:$0xff] %v32303_v19 }
 0x47b   :  { %26733 = vmatmul.mubr.f32.vlgmr.msra.gmra.mrb[30].mxu1 %v30702_v7 }
 0x47c   :  { %28609 = vmatpush3.bf16.msra.mxu1 %v34252_v13  ;;  %26907 = vmatprep.mubr.msk.f32.mxu1 %vm30068_vm1, %v34033_v48 }
 0x47d   :  { %28610 = vmatprep.subr.bf16.mxu1 %v34034_v14 }
 0x47f   :  { %26908 = vmatmul.mubr.f32.vlgmr.msra.gmra.mrb[32].mxu1 %v30727_v9 }
 0x480   :  { %28612 = vmatpush3.bf16.msra.mxu1 %v31863_v31  ;;  %26914 = vmatprep.mubr.msk.f32.mxu1 %vm30068_vm1, %v34033_v48  ;;  %v34254_v31 = vld [vmem:[#allocation14_spill] sm:$0xff] }
 0x481   :  { %28613 = vmatprep.subr.bf16.mxu1 %v34034_v14  ;;  %v19442_v53 = vsel %vm90_vm0, %v34254_v31, 0 }
 0x482   :  { %v32276_v61 = vand.u32 4294901760, %v19442_v53 }
 0x484   :  { %34255 = vst [vmem:[#allocation65_spill] sm:$0xff] %v32276_v61  ;;  %v32284_v15 = vsub.f32 %v19442_v53, %v32276_v61 }
 0x486   :  { %v33911_v52 = vand.u32 4294901760, %v32284_v15 }
 0x487   :  { %26915 = vmatmul.mubr.f32.vlgmr.msra.gmra.mrb[32].mxu1 %v30702_v7 }
 0x488   :  { %28615 = vmatpush3.bf16.msra.mxu1 %v34253_v6  ;;  %26921 = vmatprep.mubr.msk.f32.mxu1 %vm30068_vm1, %v34033_v48  ;;  %v19566_v57 = vsub.f32 %v32284_v15, %v33911_v52  ;;  %v32318_v6 = vsub.f32 %v19445_v8, %v32303_v19  ;;  %v29954_v8 = vld [vmem:[#allocation4 + $0x28] sm:$0xff] }
 0x489   :  { %28616 = vmatprep.subr.bf16.mxu1 %v34034_v14 }
 0x48a   :  { %v33913_v31 = vand.u32 4294901760, %v32318_v6  ;;  %v19567_v51 = vand.u32 4294901760, %v19566_v57  ;;  %v29956_v57 = vld [vmem:[#allocation4 + $0x30] sm:$0xff] }
 0x48c   :  { %v19576_v44 = vsub.f32 %v32318_v6, %v33913_v31 }
 0x48e   :  { %v19577_v43 = vand.u32 4294901760, %v19576_v44 }
 0x48f   :  { %26922 = vmatmul.mubr.f32.vlgmr.msra.gmra.mrb[32].mxu1 %v30707_v22 }
 0x490   :  { %28618 = vmatpush3.bf16.msra.mxu1 %v34252_v13  ;;  %26928 = vmatprep.mubr.msk.f32.mxu1 %vm30068_vm1, %v34033_v48 }
 0x491   :  { %28619 = vmatprep.subr.bf16.mxu1 %v34034_v14 }
 0x497   :  { %26929 = vmatmul.mubr.f32.vlgmr.msra.gmra.mrb[32].mxu1 %v30712_v34 }
 0x498   :  { %28621 = vmatpush3.bf16.msra.mxu1 %v31869_v39  ;;  %26935 = vmatprep.mubr.msk.f32.mxu1 %vm30068_vm1, %v34033_v48 }
 0x499   :  { %28622 = vmatprep.subr.bf16.mxu1 %v34034_v14 }
 0x49e   :  { %v7902_v39 = vpop.f32.mrb[22].mxu1 }
 0x49f   :  { %v32294_v56 = vmul.f32 %v7902_v39, %v7902_v39  ;;  %v32297_v42 = vmul.f32 %v7902_v39, %v34257_v11  ;;  %v26566_v1 = vpop.f32.mrb[23].mxu1  ;;  %26936 = vmatmul.mubr.f32.vlgmr.msra.gmra.mrb[32].mxu1 %v30702_v7  ;;  %v29953_v11 = vld [vmem:[#allocation7 + $0x20] sm:$0xff] }
 0x4a0   :  { %28624 = vmatpush3.bf16.msra.mxu1 %v34252_v13  ;;  %26942 = vmatprep.mubr.msk.f32.mxu1 %vm30068_vm1, %v34033_v48  ;;  %v19556_v13 = vsub.f32 %v32301_v58, %v33912_v25  ;;  %v19426_v39 = vmul.f32 %v29953_v11, %v29952_v27  ;;  %v29955_v1 = vld [vmem:[#allocation7 + $0x28] sm:$0xff]  ;;  %v34263_v25 = vld [vmem:[#allocation60_spill] sm:$0xff]  ;;  %v32335_v11 = vand.u32 4294901760, %v19448_v50 }
 0x4a1   :  { %34259 = vst [vmem:[#allocation66_spill] sm:$0xff] %v32294_v56  ;;  %34260 = vst [vmem:[#allocation19_spill] sm:$0xff] %v32297_v42  ;;  %v32310_v28 = vadd.f32 %v32294_v56, %v32290_v32  ;;  %28625 = vmatprep.subr.bf16.mxu1 %v34034_v14  ;;  %v19427_v52 = vmul.f32 %v29955_v1, %v29954_v8  ;;  %v29958_v42 = vld [vmem:[#allocation4 + $0x38] sm:$0xff]  ;;  %v29968_v32 = vld [vmem:[#allocation4 + $0x60] sm:$0xff] }
 0x4a2   :  { %v19557_v53 = vand.u32 4294901760, %v19556_v13  ;;  %v29957_v13 = vld [vmem:[#allocation7 + $0x30] sm:$0xff]  ;;  %v19451_v38 = vsel %vm90_vm0, %v19426_v39, 0  ;;  %v29961_v39 = vld [vmem:[#allocation7 + $0x40] sm:$0xff] }
 0x4a3   :  { %34262 = vst [vmem:[#allocation42_spill] sm:$0xff] %v32310_v28  ;;  %v19428_v31 = vmul.f32 %v29957_v13, %v29956_v57  ;;  %v19454_v27 = vsel %vm90_vm0, %v19427_v52, 0  ;;  %v32337_v8 = vand.u32 4294901760, %v19451_v38  ;;  %v32352_v52 = vsub.f32 %v19448_v50, %v32335_v11 }
 0x4a4   :  { %27747 = vmatprep.mubr.f32.mxu0 %v19557_v53  ;;  %v29959_v53 = vld [vmem:[#allocation7 + $0x38] sm:$0xff]  ;;  %v32339_v1 = vand.u32 4294901760, %v19454_v27 }
 0x4a5   :  { %v19429_v44 = vmul.f32 %v29959_v53, %v29958_v42  ;;  %27748 = vmatmul.mubr.f32.vlgmr.msra.gmra.mrb[64].mxu0 %v19567_v51  ;;  %v19457_v57 = vsel %vm90_vm0, %v19428_v31, 0  ;;  %v32355_v31 = vsub.f32 %v19451_v38, %v32337_v8  ;;  %v29962_v53 = vld [vmem:[#allocation4 + $0x48] sm:$0xff]  ;;  %v33920_v4 = vand.u32 4294901760, %v32352_v52 }
 0x4a6   :  { %27750 = vmatprep.mubr.f32.mxu0 %v19577_v43  ;;  %28926 = vmatpush3.bf16.msra.mxu0 %v34218_v62  ;;  %v32344_v42 = vand.u32 4294901760, %v19457_v57  ;;  %v32358_v62 = vsub.f32 %v19454_v27, %v32339_v1 }
 0x4a7   :  { %26943 = vmatmul.mubr.f32.vlgmr.msra.gmra.mrb[32].mxu1 %v30702_v7  ;;  %v19460_v51 = vsel %vm90_vm0, %v19429_v44, 0  ;;  %28928 = vmatprep.subr.bf16.mxu0 %v30307_v59  ;;  %v29963_v44 = vld [vmem:[#allocation7 + $0x48] sm:$0xff]  ;;  %v33921_v38 = vand.u32 4294901760, %v32355_v31 }
 0x4a8   :  { %28627 = vmatpush3.bf16.msra.mxu1 %v34263_v25  ;;  %26949 = vmatprep.mubr.msk.f32.mxu1 %vm30068_vm1, %v34033_v48  ;;  %34264 = vst [vmem:[#allocation38_spill] sm:$0xff] %v32344_v42  ;;  %v32360_v43 = vand.u32 4294901760, %v19460_v51  ;;  %v32364_v45 = vsub.f32 %v19457_v57, %v32344_v42  ;;  %v19431_v50 = vmul.f32 %v29963_v44, %v29962_v53  ;;  %v33922_v27 = vand.u32 4294901760, %v32358_v62 }
 0x4a9   :  { %28628 = vmatprep.subr.bf16.mxu1 %v34034_v14 }
 0x4aa   :  { %v32370_v10 = vsub.f32 %v19460_v51, %v32360_v43  ;;  %v19466_v28 = vsel %vm90_vm0, %v19431_v50, 0  ;;  %v19606_v51 = vsub.f32 %v32358_v62, %v33922_v27  ;;  %v29965_v50 = vld [vmem:[#allocation7 + $0x50] sm:$0xff] }
 0x4ab   :  { %26950 = vmatmul.mubr.f32.vlgmr.msra.gmra.mrb[34].mxu1 %v30727_v9  ;;  %v32387_v24 = vand.u32 4294901760, %v19466_v28 }
 0x4ac   :  { %28630 = vmatpush3.bf16.msra.mxu1 %v31886_v20  ;;  %26956 = vmatprep.mubr.msk.f32.mxu1 %vm30068_vm1, %v34033_v48  ;;  %v29960_v20 = vld [vmem:[#allocation4 + $0x40] sm:$0xff]  ;;  %v33925_v53 = vand.u32 4294901760, %v32370_v10 }
 0x4ad   :  { %28631 = vmatprep.subr.bf16.mxu1 %v34034_v14  ;;  %v19430_v13 = vmul.f32 %v29961_v39, %v29960_v20  ;;  %v19586_v20 = vsub.f32 %v32352_v52, %v33920_v4  ;;  %v19596_v39 = vsub.f32 %v32355_v31, %v33921_v38  ;;  %v34265_v4 = vand.u32 4294901760, %v32364_v45 }
 0x4ae   :  { %v19626_v38 = vsub.f32 %v32370_v10, %v33925_v53  ;;  %v32400_v30 = vsub.f32 %v19466_v28, %v32387_v24  ;;  %v19433_v53 = vmul.f32 %v29967_v55, %v29966_v35  ;;  %v19607_v28 = vand.u32 4294901760, %v19606_v51 }
 0x4af   :  { %v19463_v57 = vsel %vm90_vm0, %v19430_v13, 0  ;;  %v29964_v13 = vld [vmem:[#allocation4 + $0x50] sm:$0xff]  ;;  %v19587_v33 = vand.u32 4294901760, %v19586_v20  ;;  %v19597_v16 = vand.u32 4294901760, %v19596_v39  ;;  %v19616_v60 = vsub.f32 %v32364_v45, %v34265_v4  ;;  %v34267_v39 = vld [vmem:[#allocation61_spill] sm:$0xff] }
 0x4b0   :  { %v32385_v44 = vand.u32 4294901760, %v19463_v57  ;;  %v19432_v56 = vmul.f32 %v29965_v50, %v29964_v13  ;;  %v34266_v20 = vld [vmem:[#allocation59_spill] sm:$0xff]  ;;  %v19472_v55 = vsel %vm90_vm0, %v19433_v53, 0  ;;  %v29975_v53 = vld [vmem:[#allocation7 + $0x78] sm:$0xff] }
 0x4b1   :  { %v34268_v50 = vpack.c.bf16 %v34266_v20, %v34267_v39  ;;  %27751 = vmatmul.mubr.f32.gmra.mrb[66].mxu0 %v19587_v33  ;;  %v29970_v39 = vld [vmem:[#allocation4 + $0x68] sm:$0xff]  ;;  %v19617_v54 = vand.u32 4294901760, %v19616_v60  ;;  %v32421_v51 = vand.u32 4294901760, %v19472_v55  ;;  %v29974_v20 = vld [vmem:[#allocation4 + $0x78] sm:$0xff] }
 0x4b2   :  { %v32397_v27 = vsub.f32 %v19463_v57, %v32385_v44  ;;  %v19469_v13 = vsel %vm90_vm0, %v19432_v56, 0  ;;  %v29969_v57 = vld [vmem:[#allocation7 + $0x60] sm:$0xff]  ;;  %27753 = vmatprep.mubr.f32.mxu0 %v19597_v16  ;;  %v29972_v16 = vld [vmem:[#allocation4 + $0x70] sm:$0xff]  ;;  %v19437_v0 = vmul.f32 %v29975_v53, %v29974_v20 }
 0x4b3   :  { %26957 = vmatmul.mubr.f32.vlgmr.msra.gmra.mrb[34].mxu1 %v30702_v7  ;;  %v32408_v4 = vand.u32 4294901760, %v19469_v13  ;;  %v19434_v26 = vmul.f32 %v29969_v57, %v29968_v32  ;;  %v19627_v32 = vand.u32 4294901760, %v19626_v38  ;;  %v34269_v38 = vand.u32 4294901760, %v32400_v30 }
 0x4b4   :  { %28633 = vmatpush3.bf16.msra.mxu1 %v34268_v50  ;;  %26963 = vmatprep.mubr.msk.f32.mxu1 %vm30068_vm1, %v34033_v48  ;;  %v33934_v56 = vand.u32 4294901760, %v32397_v27  ;;  %v29971_v50 = vld [vmem:[#allocation7 + $0x68] sm:$0xff]  ;;  %v32431_v41 = vsub.f32 %v19472_v55, %v32421_v51  ;;  %v19484_v20 = vsel %vm90_vm0, %v19437_v0, 0 }
 0x4b5   :  { %28634 = vmatprep.subr.bf16.mxu1 %v34034_v14  ;;  %v19435_v21 = vmul.f32 %v29971_v50, %v29970_v39  ;;  %v32414_v5 = vsub.f32 %v19469_v13, %v32408_v4  ;;  %v19475_v35 = vsel %vm90_vm0, %v19434_v26, 0  ;;  %v29973_v13 = vld [vmem:[#allocation7 + $0x70] sm:$0xff]  ;;  %27754 = vmatmul.mubr.f32.gmra.mrb[68].mxu0 %v19607_v28 }
 0x4b6   :  { %v19636_v33 = vsub.f32 %v32397_v27, %v33934_v56  ;;  %v32423_v57 = vand.u32 4294901760, %v19475_v35  ;;  %v19436_v50 = vmul.f32 %v29973_v13, %v29972_v16  ;;  %v19646_v56 = vsub.f32 %v32400_v30, %v34269_v38  ;;  %34270 = vst [vmem:[#allocation18_spill] sm:$0xff] %v32431_v41  ;;  %27756 = vmatprep.mubr.f32.mxu0 %v19617_v54 }
 0x4b7   :  { %v33936_v39 = vand.u32 4294901760, %v32414_v5  ;;  %v19478_v60 = vsel %vm90_vm0, %v19435_v21, 0 }
 0x4b8   :  { %v19637_v26 = vand.u32 4294901760, %v19636_v33  ;;  %v32434_v63 = vsub.f32 %v19475_v35, %v32423_v57  ;;  %v32439_v16 = vand.u32 4294901760, %v19478_v60  ;;  %v19481_v28 = vsel %vm90_vm0, %v19436_v50, 0 }
 0x4b9   :  { %v19656_v21 = vsub.f32 %v32414_v5, %v33936_v39  ;;  %v33941_v33 = vand.u32 4294901760, %v32431_v41  ;;  %v32446_v13 = vand.u32 4294901760, %v19481_v28  ;;  %v32448_v35 = vand.u32 4294901760, %v19484_v20  ;;  %27757 = vmatmul.mubr.f32.gmra.mrb[70].mxu0 %v19627_v32 }
 0x4ba   :  { %34271 = vst [vmem:[#allocation17_spill] sm:$0xff] %v32434_v63  ;;  %v33938_v55 = vand.u32 4294901760, %v32434_v63  ;;  %v32454_v54 = vsub.f32 %v19478_v60, %v32439_v16  ;;  %v19647_v0 = vand.u32 4294901760, %v19646_v56  ;;  %27759 = vmatprep.mubr.f32.mxu0 %v19637_v26 }
 0x4bb   :  { %26964 = vmatmul.mubr.f32.vlgmr.msra.gmra.mrb[34].mxu1 %v30707_v22  ;;  %v19666_v50 = vsub.f32 %v32431_v41, %v33941_v33  ;;  %v32461_v53 = vsub.f32 %v19481_v28, %v32446_v13  ;;  %v19657_v38 = vand.u32 4294901760, %v19656_v21  ;;  %v32468_v3 = vsub.f32 %v19484_v20, %v32448_v35 }
 0x4bc   :  { %28636 = vmatpush3.bf16.msra.mxu1 %v34263_v25  ;;  %26970 = vmatprep.mubr.msk.f32.mxu1 %vm30068_vm1, %v34033_v48  ;;  %34272 = vst [vmem:[#allocation23_spill] sm:$0xff] %v32454_v54  ;;  %v19676_v39 = vsub.f32 %v32434_v63, %v33938_v55  ;;  %v33940_v60 = vand.u32 4294901760, %v32454_v54 }
 0x4bd   :  { %28637 = vmatprep.subr.bf16.mxu1 %v34034_v14  ;;  %34273 = vst [vmem:[#allocation15_spill] sm:$0xff] %v32461_v53  ;;  %34274 = vst [vmem:[#allocation22_spill] sm:$0xff] %v32468_v3  ;;  %v33939_v56 = vand.u32 4294901760, %v32461_v53  ;;  %27760 = vmatmul.mubr.f32.gmra.mrb[72].mxu0 %v19647_v0  ;;  %v19667_v32 = vand.u32 4294901760, %v19666_v50  ;;  %v33944_v26 = vand.u32 4294901760, %v32468_v3 }
 0x4be   :  { %v19686_v28 = vsub.f32 %v32454_v54, %v33940_v60  ;;  %27762 = vmatprep.mubr.f32.mxu0 %v19657_v38  ;;  %v19677_v21 = vand.u32 4294901760, %v19676_v39 }
 0x4bf   :  { %v19696_v55 = vsub.f32 %v32461_v53, %v33939_v56  ;;  %v19706_v39 = vsub.f32 %v32468_v3, %v33944_v26 }
 0x4c0   :  { %v19687_v0 = vand.u32 4294901760, %v19686_v28 }
 0x4c1   :  { %27763 = vmatmul.mubr.f32.gmra.mrb[74].mxu0 %v19667_v32  ;;  %v19697_v56 = vand.u32 4294901760, %v19696_v55  ;;  %v19707_v37 = vand.u32 4294901760, %v19706_v39  ;;  %v34278_v32 = vld [vmem:[#allocation70_spill] sm:$0xff] }
 0x4c2   :  { %27765 = vmatprep.mubr.f32.mxu0 %v19677_v21  ;;  %v32494_v28 = vmul.f32 %v34278_v32, %v34278_v32 }
 0x4c3   :  { %26971 = vmatmul.mubr.f32.vlgmr.msra.gmra.mrb[34].mxu1 %v30712_v34 }
 0x4c4   :  { %28639 = vmatpush3.bf16.msra.mxu1 %v31878_v18  ;;  %26977 = vmatprep.mubr.msk.f32.mxu1 %vm30068_vm1, %v34033_v48  ;;  %v27385_v20 = vpop.f32.mrb[48].mxu0  ;;  %34279 = vst [vmem:[#allocation43_spill] sm:$0xff] %v32494_v28 }
 0x4c5   :  { %28640 = vmatprep.subr.bf16.mxu1 %v34034_v14  ;;  %v15754_v50 = vand.u32 4294901760, %v27385_v20  ;;  %v15656_v38 = vpop.f32.mrb[49].mxu0  ;;  %27766 = vmatmul.mubr.f32.gmra.mrb[76].mxu0 %v19687_v0 }
 0x4c6   :  { %v15751_v60 = vand.u32 4294901760, %v15656_v38  ;;  %27768 = vmatprep.mubr.f32.mxu0 %v19697_v56 }
 0x4c7   :  { %v32486_v33 = vsub.f32 %v27385_v20, %v15754_v50 }
 0x4c8   :  { %v32488_v18 = vpack.c.bf16 %v15754_v50, %v15751_v60  ;;  %v32490_v2 = vsub.f32 %v15656_v38, %v15751_v60  ;;  %v27388_v23 = vpop.f32.mrb[50].mxu0 }
 0x4c9   :  { %34275 = vst [vmem:[#allocation47_spill] sm:$0xff] %v32486_v33  ;;  %v15837_v26 = vand.u32 4294901760, %v32486_v33  ;;  %v16213_v3 = vand.u32 4294901760, %v27388_v23  ;;  %v15668_v21 = vpop.f32.mrb[51].mxu0  ;;  %27769 = vmatmul.mubr.f32.gmra.mrb[78].mxu0 %v19707_v37 }
 0x4ca   :  { %34276 = vst [vmem:[#allocation24_spill] sm:$0xff] %v32488_v18  ;;  %34277 = vst [vmem:[#allocation32_spill] sm:$0xff] %v32490_v2  ;;  %v8361_v46 = vpop.f32.mrb[24].mxu1  ;;  %v15830_v0 = vand.u32 4294901760, %v32490_v2  ;;  %v16210_v56 = vand.u32 4294901760, %v15668_v21  ;;  %27775 = vmatprep.mubr.f32.mxu0 %v32286_v49 }
 0x4cb   :  { %v32497_v55 = vmul.f32 %v8361_v46, %v8361_v46  ;;  %v32500_v20 = vmul.f32 %v8361_v46, %v34278_v32  ;;  %v26608_v60 = vpop.f32.mrb[25].mxu1  ;;  %26978 = vmatmul.mubr.f32.vlgmr.msra.gmra.mrb[34].mxu1 %v30702_v7  ;;  %v32509_v50 = vsub.f32 %v27388_v23, %v16213_v3  ;;  %v15838_v38 = vsub.f32 %v32486_v33, %v15837_v26 }
 0x4cc   :  { %28642 = vmatpush3.bf16.msra.mxu1 %v34263_v25  ;;  %26984 = vmatprep.mubr.msk.f32.mxu1 %vm30068_vm1, %v34033_v48  ;;  %v27391_v32 = vpop.f32.mrb[52].mxu0  ;;  %v15831_v60 = vsub.f32 %v32490_v2, %v15830_v0  ;;  %v32519_v39 = vpack.c.bf16 %v16213_v3, %v16210_v56 }
 0x4cd   :  { %34280 = vst [vmem:[#allocation25_spill] sm:$0xff] %v32497_v55  ;;  %34281 = vst [vmem:[#allocation40_spill] sm:$0xff] %v32500_v20  ;;  %v32513_v46 = vadd.f32 %v32497_v55, %v32494_v28  ;;  %28643 = vmatprep.subr.bf16.mxu1 %v34034_v14  ;;  %v16296_v25 = vand.u32 4294901760, %v32509_v50  ;;  %v32521_v20 = vsub.f32 %v15668_v21, %v16210_v56  ;;  %v15680_v23 = vpop.f32.mrb[53].mxu0  ;;  %v16672_v18 = vand.u32 4294901760, %v27391_v32 }
 0x4ce   :  { %34282 = vst [vmem:[#allocation26_spill] sm:$0xff] %v32509_v50  ;;  %34284 = vst [vmem:[#allocation41_spill] sm:$0xff] %v32519_v39  ;;  %v16669_v28 = vand.u32 4294901760, %v15680_v23  ;;  %v15839_v33 = vand.u32 4294901760, %v15838_v38  ;;  %27776 = vmatmul.mubr.f32.vlgmr.msra.gmra.mrb[64].mxu0 %v32276_v61  ;;  %v15832_v3 = vand.u32 4294901760, %v15831_v60  ;;  %v34289_v60 = vld [vmem:[#allocation62_spill] sm:$0xff] }
 0x4cf   :  { %34283 = vst [vmem:[#allocation29_spill] sm:$0xff] %v32513_v46  ;;  %34285 = vst [vmem:[#allocation48_spill] sm:$0xff] %v32521_v20  ;;  %v16289_v46 = vand.u32 4294901760, %v32521_v20  ;;  %v16297_v37 = vsub.f32 %v32509_v50, %v16296_v25  ;;  %v32528_v2 = vsub.f32 %v27391_v32, %v16672_v18  ;;  %27778 = vmatprep.mubr.f32.mxu0 %v32303_v19  ;;  %28930 = vmatpush3.bf16.msra.mxu0 %v30307_v59 }
 0x4d0   :  { %v27394_v53 = vpop.f32.mrb[54].mxu0  ;;  %v32532_v56 = vpack.c.bf16 %v16672_v18, %v16669_v28  ;;  %v32534_v39 = vsub.f32 %v15680_v23, %v16669_v28  ;;  %28932 = vmatprep.subr.bf16.mxu0 %v30140_v12  ;;  %v32547_v23 = vpack.c.bf16 %v15837_v26, %v15830_v0  ;;  %v32558_v28 = vpack.c.bf16 %v15839_v33, %v15832_v3 }
 0x4d1   :  { %34286 = vst [vmem:[#allocation27_spill] sm:$0xff] %v32528_v2  ;;  %v16290_v21 = vsub.f32 %v32521_v20, %v16289_v46  ;;  %v15692_v49 = vpop.f32.mrb[55].mxu0  ;;  %v16755_v38 = vand.u32 4294901760, %v32528_v2  ;;  %v17131_v32 = vand.u32 4294901760, %v27394_v53  ;;  %v16298_v59 = vand.u32 4294901760, %v16297_v37 }
 0x4d2   :  { %34287 = vst [vmem:[#allocation45_spill] sm:$0xff] %v32532_v56  ;;  %34288 = vst [vmem:[#allocation34_spill] sm:$0xff] %v32534_v39  ;;  %v17128_v55 = vand.u32 4294901760, %v15692_v49  ;;  %v16748_v18 = vand.u32 4294901760, %v32534_v39  ;;  %27779 = vmatmul.mubr.f32.gmra.mrb[66].mxu0 %v32335_v11  ;;  %v32572_v37 = vpack.c.bf16 %v16296_v25, %v16289_v46 }
 0x4d3   :  { %26985 = vmatmul.mubr.f32.vlgmr.msra.gmra.mrb[34].mxu1 %v30702_v7  ;;  %34290 = vst [vmem:[#allocation44_spill] sm:$0xff] %v32547_v23  ;;  %v32550_v56 = vsub.f32 %v27394_v53, %v17131_v32  ;;  %v16291_v61 = vand.u32 4294901760, %v16290_v21  ;;  %v16756_v54 = vsub.f32 %v32528_v2, %v16755_v38  ;;  %34294 = vst [vmem:[#allocation58_spill] sm:$0xff] %v32558_v28  ;;  %27781 = vmatprep.mubr.f32.mxu0 %v32337_v8 }
 0x4d4   :  { %28645 = vmatpush3.bf16.msra.mxu1 %v34289_v60  ;;  %26991 = vmatprep.mubr.msk.f32.mxu1 %vm30068_vm1, %v34033_v48  ;;  %v32552_v20 = vpack.c.bf16 %v17131_v32, %v17128_v55  ;;  %v32554_v50 = vsub.f32 %v15692_v49, %v17128_v55  ;;  %v27397_v19 = vpop.f32.mrb[56].mxu0  ;;  %v16749_v26 = vsub.f32 %v32534_v39, %v16748_v18 }
 0x4d5   :  { %28646 = vmatprep.subr.bf16.mxu1 %v34034_v14  ;;  %34291 = vst [vmem:[#allocation46_spill] sm:$0xff] %v32550_v56  ;;  %v17590_v63 = vand.u32 4294901760, %v27397_v19  ;;  %v15704_v41 = vpop.f32.mrb[57].mxu0  ;;  %v17214_v53 = vand.u32 4294901760, %v32550_v56  ;;  %34296 = vst [vmem:[#allocation30_spill] sm:$0xff] %v32572_v37  ;;  %v32584_v37 = vpack.c.bf16 %v16298_v59, %v16291_v61 }
 0x4d6   :  { %34292 = vst [vmem:[#allocation49_spill] sm:$0xff] %v32552_v20  ;;  %34293 = vst [vmem:[#allocation36_spill] sm:$0xff] %v32554_v50  ;;  %v17207_v0 = vand.u32 4294901760, %v32554_v50  ;;  %v17587_v55 = vand.u32 4294901760, %v15704_v41  ;;  %27782 = vmatmul.mubr.f32.gmra.mrb[68].mxu0 %v32339_v1  ;;  %v16750_v46 = vand.u32 4294901760, %v16749_v26  ;;  %v32596_v26 = vpack.c.bf16 %v16755_v38, %v16748_v18  ;;  %v34303_v18 = vld [vmem:[#allocation63_spill] sm:$0xff] }
 0x4d7   :  { %26992 = vmatmul.mubr.f32.vlgmr.msra.gmra.mrb[36].mxu1 %v30727_v9  ;;  %v32570_v33 = vsub.f32 %v27397_v19, %v17590_v63  ;;  %v17215_v3 = vsub.f32 %v32550_v56, %v17214_v53  ;;  %v16757_v19 = vand.u32 4294901760, %v16756_v54  ;;  %27784 = vmatprep.mubr.f32.mxu0 %v32344_v42  ;;  %34299 = vst [vmem:[#allocation61_spill] sm:$0xff] %v32584_v37 }
 0x4d8   :  { %28648 = vmatpush3.bf16.msra.mxu1 %v31896_v17  ;;  %26998 = vmatprep.mubr.msk.f32.mxu1 %vm30068_vm1, %v34033_v48  ;;  %v17208_v21 = vsub.f32 %v32554_v50, %v17207_v0  ;;  %v27400_v32 = vpop.f32.mrb[58].mxu0  ;;  %v32578_v20 = vpack.c.bf16 %v17590_v63, %v17587_v55  ;;  %v32580_v17 = vsub.f32 %v15704_v41, %v17587_v55 }
 0x4d9   :  { %34295 = vst [vmem:[#allocation14_spill] sm:$0xff] %v32570_v33  ;;  %28649 = vmatprep.subr.bf16.mxu1 %v34034_v14  ;;  %v17673_v49 = vand.u32 4294901760, %v32570_v33  ;;  %v18049_v39 = vand.u32 4294901760, %v27400_v32  ;;  %v15716_v2 = vpop.f32.mrb[59].mxu0  ;;  %v17216_v55 = vand.u32 4294901760, %v17215_v3  ;;  %v32606_v38 = vpack.c.bf16 %v16757_v19, %v16750_v46 }
 0x4da   :  { %34297 = vst [vmem:[#allocation60_spill] sm:$0xff] %v32578_v20  ;;  %34298 = vst [vmem:[#allocation59_spill] sm:$0xff] %v32580_v17  ;;  %v18046_v25 = vand.u32 4294901760, %v15716_v2  ;;  %v17666_v56 = vand.u32 4294901760, %v32580_v17  ;;  %v17209_v28 = vand.u32 4294901760, %v17208_v21  ;;  %27785 = vmatmul.mubr.f32.gmra.mrb[70].mxu0 %v32360_v43  ;;  %v34304_v21 = vld [vmem:[#allocation64_spill] sm:$0xff] }
 0x4db   :  { %v17674_v50 = vsub.f32 %v32570_v33, %v17673_v49  ;;  %v32590_v41 = vsub.f32 %v27400_v32, %v18049_v39  ;;  %27787 = vmatprep.mubr.f32.mxu0 %v32385_v44  ;;  %v34305_v32 = vpack.c.bf16 %v34303_v18, %v34304_v21 }
 0x4dc   :  { %v32592_v20 = vpack.c.bf16 %v18049_v39, %v18046_v25  ;;  %v32594_v23 = vsub.f32 %v15716_v2, %v18046_v25  ;;  %v27403_v54 = vpop.f32.mrb[60].mxu0  ;;  %v17667_v61 = vsub.f32 %v32580_v17, %v17666_v56 }
 0x4dd   :  { %34300 = vst [vmem:[#allocation70_spill] sm:$0xff] %v32590_v41  ;;  %v18132_v59 = vand.u32 4294901760, %v32590_v41  ;;  %v18508_v37 = vand.u32 4294901760, %v27403_v54  ;;  %v15728_v42 = vpop.f32.mrb[61].mxu0  ;;  %v17675_v25 = vand.u32 4294901760, %v17674_v50 }
 0x4de   :  { %34301 = vst [vmem:[#allocation62_spill] sm:$0xff] %v32592_v20  ;;  %34302 = vst [vmem:[#allocation92_spill] sm:$0xff] %v32594_v23  ;;  %v18125_v3 = vand.u32 4294901760, %v32594_v23  ;;  %v18505_v39 = vand.u32 4294901760, %v15728_v42  ;;  %v32615_v20 = vpack.c.bf16 %v17214_v53, %v17207_v0  ;;  %v17668_v2 = vand.u32 4294901760, %v17667_v61  ;;  %27788 = vmatmul.mubr.f32.gmra.mrb[72].mxu0 %v32387_v24 }
 0x4df   :  { %26999 = vmatmul.mubr.f32.vlgmr.msra.gmra.mrb[36].mxu1 %v30702_v7  ;;  %v32613_v63 = vsub.f32 %v27403_v54, %v18508_v37  ;;  %v18133_v17 = vsub.f32 %v32590_v41, %v18132_v59  ;;  %v32626_v53 = vpack.c.bf16 %v17216_v55, %v17209_v28  ;;  %27790 = vmatprep.mubr.f32.mxu0 %v32408_v4 }
 0x4e0   :  { %28651 = vmatpush3.bf16.msra.mxu1 %v34305_v32  ;;  %27005 = vmatprep.mubr.msk.f32.mxu1 %vm30068_vm1, %v34033_v48  ;;  %34306 = vst [vmem:[#allocation63_spill] sm:$0xff] %v32615_v20  ;;  %v32619_v33 = vpack.c.bf16 %v18508_v37, %v18505_v39  ;;  %v32621_v19 = vsub.f32 %v15728_v42, %v18505_v39  ;;  %v27406_v46 = vpop.f32.mrb[62].mxu0 }
 0x4e1   :  { %28652 = vmatprep.subr.bf16.mxu1 %v34034_v14  ;;  %v18126_v18 = vsub.f32 %v32594_v23, %v18125_v3  ;;  %v18591_v21 = vand.u32 4294901760, %v32613_v63  ;;  %v18967_v32 = vand.u32 4294901760, %v27406_v46  ;;  %v15740_v50 = vpop.f32.mrb[63].mxu0  ;;  %v32634_v61 = vpack.c.bf16 %v17673_v49, %v17666_v56 }
 0x4e2   :  { %34307 = vst [vmem:[#allocation64_spill] sm:$0xff] %v32619_v33  ;;  %v18584_v0 = vand.u32 4294901760, %v32621_v19  ;;  %v18964_v37 = vand.u32 4294901760, %v15740_v50  ;;  %v18134_v39 = vand.u32 4294901760, %v18133_v17  ;;  %27791 = vmatmul.mubr.f32.gmra.mrb[74].mxu0 %v32421_v51  ;;  %v32644_v54 = vpack.c.bf16 %v17675_v25, %v17668_v2 }
 0x4e3   :  { %v32632_v42 = vsub.f32 %v27406_v46, %v18967_v32  ;;  %v18592_v33 = vsub.f32 %v32613_v63, %v18591_v21  ;;  %v18127_v28 = vand.u32 4294901760, %v18126_v18  ;;  %27793 = vmatprep.mubr.f32.mxu0 %v32423_v57  ;;  %v32654_v17 = vpack.c.bf16 %v18132_v59, %v18125_v3 }
 0x4e4   :  { %v32637_v23 = vpack.c.bf16 %v18967_v32, %v18964_v37  ;;  %v32639_v41 = vsub.f32 %v15740_v50, %v18964_v37  ;;  %v18585_v55 = vsub.f32 %v32621_v19, %v18584_v0  ;;  %v32663_v50 = vpack.c.bf16 %v18591_v21, %v18584_v0 }
 0x4e5   :  { %v19050_v20 = vand.u32 4294901760, %v32632_v42  ;;  %v18593_v2 = vand.u32 4294901760, %v18592_v33  ;;  %v32660_v32 = vpack.c.bf16 %v18134_v39, %v18127_v28 }
 0x4e6   :  { %v19043_v56 = vand.u32 4294901760, %v32639_v41  ;;  %v18586_v25 = vand.u32 4294901760, %v18585_v55  ;;  %27794 = vmatmul.mubr.f32.gmra.mrb[76].mxu0 %v32439_v16  ;;  %v34313_v55 = vld [vmem:[#allocation17_spill] sm:$0xff] }
 0x4e7   :  { %27006 = vmatmul.mubr.f32.vlgmr.msra.gmra.mrb[36].mxu1 %v30707_v22  ;;  %v19051_v46 = vsub.f32 %v32632_v42, %v19050_v20  ;;  %27796 = vmatprep.mubr.f32.mxu0 %v32446_v13 }
 0x4e8   :  { %28654 = vmatpush3.bf16.msra.mxu1 %v34289_v60  ;;  %27012 = vmatprep.mubr.msk.f32.mxu1 %vm30068_vm1, %v34033_v48  ;;  %v19044_v18 = vsub.f32 %v32639_v41, %v19043_v56  ;;  %v32666_v59 = vpack.c.bf16 %v18593_v2, %v18586_v25  ;;  %v32673_v33 = vpack.c.bf16 %v19050_v20, %v19043_v56  ;;  %v34314_v56 = vld [vmem:[#allocation23_spill] sm:$0xff]  ;;  %v34316_v2 = vld [vmem:[#allocation68_spill] sm:$0xff]  ;;  %v34317_v25 = vld [vmem:[#allocation69_spill] sm:$0xff] }
 0x4e9   :  { %28655 = vmatprep.subr.bf16.mxu1 %v34034_v14  ;;  %v19052_v37 = vand.u32 4294901760, %v19051_v46  ;;  %v34318_v46 = vpack.c.bf16 %v34316_v2, %v34317_v25  ;;  %v34327_v2 = vld [vmem:[#allocation83_spill] sm:$0xff]  ;;  %v34331_v25 = vld [vmem:[#allocation16_spill] sm:$0xff] }
 0x4ea   :  { %v19045_v49 = vand.u32 4294901760, %v19044_v18  ;;  %27797 = vmatmul.mubr.f32.gmra.mrb[78].mxu0 %v32448_v35  ;;  %v34320_v18 = vand.u32 4294901760, %v32301_v58 }
 0x4eb   :  { %27803 = vmatprep.mubr.f32.mxu0 %v32301_v58  ;;  %v34323_v58 = vand.u32 4294901760, %v32352_v52 }
 0x4ec   :  { %v32677_v3 = vpack.c.bf16 %v19052_v37, %v19045_v49  ;;  %v34315_v49 = vld [vmem:[#allocation15_spill] sm:$0xff]  ;;  %v34321_v37 = vand.u32 4294901760, %v32284_v15 }
 0x4ee   :  { %27804 = vmatmul.mubr.f32.vlgmr.msra.gmra.mrb[64].mxu0 %v32284_v15  ;;  %v34324_v15 = vand.u32 4294901760, %v32355_v31 }
 0x4ef   :  { %27013 = vmatmul.mubr.f32.vlgmr.msra.gmra.mrb[36].mxu1 %v30712_v34  ;;  %27806 = vmatprep.mubr.f32.mxu0 %v32318_v6 }
 0x4f0   :  { %28657 = vmatpush3.bf16.msra.mxu1 %v31889_v36  ;;  %27019 = vmatprep.mubr.msk.f32.mxu1 %vm30068_vm1, %v34033_v48  ;;  %v32685_v36 = vmul.f32 %v31958_v40, %v31958_v40 }
 0x4f1   :  { %28658 = vmatprep.subr.bf16.mxu1 %v34034_v14  ;;  %28934 = vmatpush3.bf16.msra.mxu0 %v30140_v12 }
 0x4f2   :  { %28936 = vmatprep.subr.bf16.mxu0 %v34173_v29  ;;  %27807 = vmatmul.mubr.f32.gmra.mrb[66].mxu0 %v32352_v52  ;;  %v34329_v52 = vand.u32 4294901760, %v32397_v27 }
 0x4f3   :  { %27809 = vmatprep.mubr.f32.mxu0 %v32355_v31 }
 0x4f6   :  { %v8820_v21 = vpop.f32.mrb[26].mxu1  ;;  %27810 = vmatmul.mubr.f32.gmra.mrb[68].mxu0 %v32358_v62 }
 0x4f7   :  { %v32687_v20 = vmul.f32 %v8820_v21, %v8820_v21  ;;  %v32690_v0 = vmul.f32 %v8820_v21, %v31958_v40  ;;  %v26650_v39 = vpop.f32.mrb[27].mxu1  ;;  %27020 = vmatmul.mubr.f32.vlgmr.msra.gmra.mrb[36].mxu1 %v30702_v7  ;;  %27812 = vmatprep.mubr.f32.mxu0 %v32364_v45  ;;  %v34311_v40 = vld [vmem:[#allocation67_spill] sm:$0xff]  ;;  %v34322_v21 = vand.u32 4294901760, %v32318_v6  ;;  %v34325_v6 = vand.u32 4294901760, %v32358_v62 }
 0x4f8   :  { %28660 = vmatpush3.bf16.msra.mxu1 %v34289_v60  ;;  %27026 = vmatprep.mubr.msk.f32.mxu1 %vm30068_vm1, %v34033_v48  ;;  %v34312_v60 = vld [vmem:[#allocation18_spill] sm:$0xff]  ;;  %v34326_v39 = vand.u32 4294901760, %v32364_v45  ;;  %v34330_v62 = vand.u32 4294901760, %v32400_v30  ;;  %v32764_v45 = vmul.f32 %v34331_v25, %v34331_v25 }
 0x4f9   :  { %34308 = vst [vmem:[#allocation93_spill] sm:$0xff] %v32687_v20  ;;  %34309 = vst [vmem:[#allocation94_spill] sm:$0xff] %v32690_v0  ;;  %v32699_v28 = vadd.f32 %v32687_v20, %v32685_v36  ;;  %28661 = vmatprep.subr.bf16.mxu1 %v34034_v14 }
 0x4fa   :  { %27813 = vmatmul.mubr.f32.gmra.mrb[70].mxu0 %v32370_v10 }
 0x4fb   :  { %34310 = vst [vmem:[#allocation95_spill] sm:$0xff] %v32699_v28  ;;  %27815 = vmatprep.mubr.f32.mxu0 %v32397_v27  ;;  %v34336_v27 = vand.u32 4294901760, %v34312_v60 }
 0x4fe   :  { %27816 = vmatmul.mubr.f32.gmra.mrb[72].mxu0 %v32400_v30 }
 0x4ff   :  { %27027 = vmatmul.mubr.f32.vlgmr.msra.gmra.mrb[36].mxu1 %v30702_v7  ;;  %27818 = vmatprep.mubr.f32.mxu0 %v32414_v5 }
 0x500   :  { %28663 = vmatpush3.bf16.msra.mxu1 %v34311_v40  ;;  %27033 = vmatprep.mubr.msk.f32.mxu1 %vm30068_vm1, %v34033_v48 }
 0x501   :  { %28664 = vmatprep.subr.bf16.mxu1 %v34034_v14 }
 0x502   :  { %27819 = vmatmul.mubr.f32.gmra.mrb[74].mxu0 %v34312_v60 }
 0x503   :  { %27034 = vmatmul.mubr.f32.vlgmr.msra.gmra.mrb[38].mxu1 %v30727_v9  ;;  %27821 = vmatprep.mubr.f32.mxu0 %v34313_v55 }
 0x504   :  { %28666 = vmatpush3.bf16.msra.mxu1 %v31913_v47  ;;  %27040 = vmatprep.mubr.msk.f32.mxu1 %vm30068_vm1, %v34033_v48  ;;  %v34319_v47 = vld [vmem:[#allocation22_spill] sm:$0xff] }
 0x505   :  { %28667 = vmatprep.subr.bf16.mxu1 %v34034_v14  ;;  %v34341_v60 = vand.u32 4294901760, %v34319_v47 }
 0x506   :  { %27822 = vmatmul.mubr.f32.gmra.mrb[76].mxu0 %v34314_v56 }
 0x507   :  { %27824 = vmatprep.mubr.f32.mxu0 %v34315_v49 }
 0x50a   :  { %27825 = vmatmul.mubr.f32.gmra.mrb[78].mxu0 %v34319_v47  ;;  %v34346_v47 = vld [vmem:[#allocation72_spill] sm:$0xff] }
 0x50b   :  { %27041 = vmatmul.mubr.f32.vlgmr.msra.gmra.mrb[38].mxu1 %v30702_v7  ;;  %27831 = vmatprep.mubr.f32.mxu0 %v34320_v18 }
 0x50c   :  { %28669 = vmatpush3.bf16.msra.mxu1 %v34318_v46  ;;  %27047 = vmatprep.mubr.msk.f32.mxu1 %vm30068_vm1, %v34033_v48 }
 0x50d   :  { %28670 = vmatprep.subr.bf16.mxu1 %v34034_v14 }
 0x50e   :  { %27832 = vmatmul.mubr.f32.vlgmr.msra.gmra.mrb[64].mxu0 %v34321_v37 }
 0x50f   :  { %27834 = vmatprep.mubr.f32.mxu0 %v34322_v21  ;;  %28938 = vmatpush3.bf16.msra.mxu0 %v34173_v29  ;;  %v34328_v29 = vand.u32 4294901760, %v32370_v10  ;;  %v34334_v10 = vand.u32 4294901760, %v32414_v5  ;;  %v34337_v21 = vand.u32 4294901760, %v34313_v55  ;;  %v34338_v5 = vand.u32 4294901760, %v34314_v56  ;;  %v34342_v55 = vld [vmem:[#allocation35_spill] sm:$0xff]  ;;  %v34343_v56 = vld [vmem:[#allocation85_spill] sm:$0xff] }
 0x510   :  { %28940 = vmatprep.subr.bf16.mxu0 %v30140_v12 }
 0x512   :  { %27835 = vmatmul.mubr.f32.gmra.mrb[66].mxu0 %v34323_v58  ;;  %v34340_v58 = vld [vmem:[#allocation71_spill] sm:$0xff] }
 0x513   :  { %27048 = vmatmul.mubr.f32.vlgmr.msra.gmra.mrb[38].mxu1 %v30707_v22  ;;  %27837 = vmatprep.mubr.f32.mxu0 %v34324_v15  ;;  %v34345_v15 = vld [vmem:[#allocation28_spill] sm:$0xff] }
 0x514   :  { %28672 = vmatpush3.bf16.msra.mxu1 %v34311_v40  ;;  %27054 = vmatprep.mubr.msk.f32.mxu1 %vm30068_vm1, %v34033_v48 }
 0x515   :  { %28673 = vmatprep.subr.bf16.mxu1 %v34034_v14 }
 0x516   :  { %27838 = vmatmul.mubr.f32.gmra.mrb[68].mxu0 %v34325_v6  ;;  %v34347_v6 = vld [vmem:[#allocation73_spill] sm:$0xff] }
 0x517   :  { %27840 = vmatprep.mubr.f32.mxu0 %v34326_v39  ;;  %v34348_v39 = vpack.c.bf16 %v34346_v47, %v34347_v6  ;;  %v34371_v47 = vld [vmem:[#allocation80_spill] sm:$0xff]  ;;  %v34372_v6 = vld [vmem:[#allocation82_spill] sm:$0xff] }
 0x51a   :  { %27841 = vmatmul.mubr.f32.gmra.mrb[70].mxu0 %v34328_v29 }
 0x51b   :  { %27055 = vmatmul.mubr.f32.vlgmr.msra.gmra.mrb[38].mxu1 %v30712_v34  ;;  %27843 = vmatprep.mubr.f32.mxu0 %v34329_v52  ;;  %v34351_v52 = vld [vmem:[#allocation31_spill] sm:$0xff] }
 0x51c   :  { %28675 = vmatpush3.bf16.msra.mxu1 %v34327_v2  ;;  %27061 = vmatprep.mubr.msk.f32.mxu1 %vm30068_vm1, %v34033_v48  ;;  %v34349_v2 = vld [vmem:[#allocation38_spill] sm:$0xff] }
 0x51d   :  { %28676 = vmatprep.subr.bf16.mxu1 %v34034_v14 }
 0x51e   :  { %27844 = vmatmul.mubr.f32.gmra.mrb[72].mxu0 %v34330_v62 }
 0x51f   :  { %27846 = vmatprep.mubr.f32.mxu0 %v34334_v10 }
 0x522   :  { %v9279_v31 = vpop.f32.mrb[28].mxu1  ;;  %27847 = vmatmul.mubr.f32.gmra.mrb[74].mxu0 %v34336_v27  ;;  %v34355_v27 = vld [vmem:[#allocation75_spill] sm:$0xff] }
 0x523   :  { %v32766_v46 = vmul.f32 %v9279_v31, %v9279_v31  ;;  %v32769_v18 = vmul.f32 %v9279_v31, %v34331_v25  ;;  %v26692_v37 = vpop.f32.mrb[29].mxu1  ;;  %27062 = vmatmul.mubr.f32.vlgmr.msra.gmra.mrb[38].mxu1 %v30702_v7  ;;  %27849 = vmatprep.mubr.f32.mxu0 %v34337_v21  ;;  %v32838_v31 = vmul.f32 %v34351_v52, %v34351_v52  ;;  %v34356_v21 = vld [vmem:[#allocation87_spill] sm:$0xff] }
 0x524   :  { %28678 = vmatpush3.bf16.msra.mxu1 %v34311_v40  ;;  %27068 = vmatprep.mubr.msk.f32.mxu1 %vm30068_vm1, %v34033_v48  ;;  %v34339_v40 = vand.u32 4294901760, %v34315_v49  ;;  %v34344_v49 = vld [vmem:[#allocation65_spill] sm:$0xff] }
 0x525   :  { %34332 = vst [vmem:[#allocation67_spill] sm:$0xff] %v32766_v46  ;;  %34333 = vst [vmem:[#allocation18_spill] sm:$0xff] %v32769_v18  ;;  %v32779_v30 = vadd.f32 %v32766_v46, %v32764_v45  ;;  %28679 = vmatprep.subr.bf16.mxu1 %v34034_v14 }
 0x526   :  { %27850 = vmatmul.mubr.f32.gmra.mrb[76].mxu0 %v34338_v5 }
 0x527   :  { %34335 = vst [vmem:[#allocation17_spill] sm:$0xff] %v32779_v30  ;;  %27852 = vmatprep.mubr.f32.mxu0 %v34339_v40  ;;  %v34367_v40 = vld [vmem:[#allocation88_spill] sm:$0xff] }
 0x52a   :  { %27853 = vmatmul.mubr.f32.gmra.mrb[78].mxu0 %v34341_v60  ;;  %v34368_v60 = vld [vmem:[#allocation52_spill] sm:$0xff] }
 0x52b   :  { %27069 = vmatmul.mubr.f32.vlgmr.msra.gmra.mrb[38].mxu1 %v30702_v7  ;;  %27859 = vmatprep.mubr.f32.mxu0 %v34342_v55 }
 0x52c   :  { %28681 = vmatpush3.bf16.msra.mxu1 %v34340_v58  ;;  %27075 = vmatprep.mubr.msk.f32.mxu1 %vm30068_vm1, %v34033_v48 }
 0x52d   :  { %28682 = vmatprep.subr.bf16.mxu1 %v34034_v14 }
 0x52e   :  { %27860 = vmatmul.mubr.f32.vlgmr.msra.gmra.mrb[64].mxu0 %v34344_v49 }
 0x52f   :  { %27076 = vmatmul.mubr.f32.vlgmr.msra.gmra.mrb[40].mxu1 %v30727_v9  ;;  %27862 = vmatprep.mubr.f32.mxu0 %v34345_v15 }
 0x530   :  { %28684 = vmatpush3.bf16.msra.mxu1 %v34343_v56  ;;  %27082 = vmatprep.mubr.msk.f32.mxu1 %vm30068_vm1, %v34033_v48 }
 0x531   :  { %28685 = vmatprep.subr.bf16.mxu1 %v34034_v14  ;;  %28942 = vmatpush3.bf16.msra.mxu0 %v30140_v12  ;;  %v34350_v12 = vld [vmem:[#allocation84_spill] sm:$0xff] }
 0x532   :  { %27863 = vmatmul.mubr.f32.gmra.mrb[66].mxu0 %v32335_v11 }
 0x533   :  { %27865 = vmatprep.mubr.f32.mxu0 %v32337_v8 }
 0x536   :  { %27866 = vmatmul.mubr.f32.gmra.mrb[68].mxu0 %v32339_v1 }
 0x537   :  { %27083 = vmatmul.mubr.f32.vlgmr.msra.gmra.mrb[40].mxu1 %v30702_v7  ;;  %27868 = vmatprep.mubr.f32.mxu0 %v34349_v2 }
 0x538   :  { %28687 = vmatpush3.bf16.msra.mxu1 %v34348_v39  ;;  %27089 = vmatprep.mubr.msk.f32.mxu1 %vm30068_vm1, %v34033_v48  ;;  %v34373_v39 = vpack.c.bf16 %v34371_v47, %v34372_v6 }
 0x539   :  { %28688 = vmatprep.subr.bf16.mxu1 %v34034_v14 }
 0x53a   :  { %27869 = vmatmul.mubr.f32.gmra.mrb[70].mxu0 %v32360_v43 }
 0x53b   :  { %27871 = vmatprep.mubr.f32.mxu0 %v32385_v44 }
 0x53e   :  { %27872 = vmatmul.mubr.f32.gmra.mrb[72].mxu0 %v32387_v24 }
 0x53f   :  { %27090 = vmatmul.mubr.f32.vlgmr.msra.gmra.mrb[40].mxu1 %v30707_v22  ;;  %27874 = vmatprep.mubr.f32.mxu0 %v32408_v4 }
 0x540   :  { %28690 = vmatpush3.bf16.msra.mxu1 %v34340_v58  ;;  %27096 = vmatprep.mubr.msk.f32.mxu1 %vm30068_vm1, %v34033_v48 }
 0x541   :  { %28691 = vmatprep.subr.bf16.mxu1 %v34034_v14 }
 0x542   :  { %27875 = vmatmul.mubr.f32.gmra.mrb[74].mxu0 %v32421_v51 }
 0x543   :  { %27877 = vmatprep.mubr.f32.mxu0 %v32423_v57 }
 0x546   :  { %27878 = vmatmul.mubr.f32.gmra.mrb[76].mxu0 %v32439_v16 }
 0x547   :  { %27097 = vmatmul.mubr.f32.vlgmr.msra.gmra.mrb[40].mxu1 %v30712_v34  ;;  %27880 = vmatprep.mubr.f32.mxu0 %v32446_v13 }
 0x548   :  { %28693 = vmatpush3.bf16.msra.mxu1 %v34350_v12  ;;  %27103 = vmatprep.mubr.msk.f32.mxu1 %vm30068_vm1, %v34033_v48 }
 0x549   :  { %28694 = vmatprep.subr.bf16.mxu1 %v34034_v14 }
 0x54a   :  { %27881 = vmatmul.mubr.f32.gmra.mrb[78].mxu0 %v32448_v35 }
 0x54b   :  { %27887 = vmatprep.mubr.f32.mxu0 %v34342_v55 }
 0x54e   :  { %v9738_v29 = vpop.f32.mrb[30].mxu1  ;;  %27888 = vmatmul.mubr.f32.vlgmr.msra.gmra.mrb[64].mxu0 %v34344_v49  ;;  %v34369_v49 = vld [vmem:[#allocation81_spill] sm:$0xff] }
 0x54f   :  { %v32840_v62 = vmul.f32 %v9738_v29, %v9738_v29  ;;  %v32843_v25 = vmul.f32 %v9738_v29, %v34351_v52  ;;  %v26734_v37 = vpop.f32.mrb[31].mxu1  ;;  %27104 = vmatmul.mubr.f32.vlgmr.msra.gmra.mrb[40].mxu1 %v30702_v7  ;;  %27890 = vmatprep.mubr.f32.mxu0 %v34345_v15  ;;  %v34370_v15 = vld [vmem:[#allocation91_spill] sm:$0xff]  ;;  %v34375_v29 = vld [vmem:[#allocation21_spill] sm:$0xff] }
 0x550   :  { %28696 = vmatpush3.bf16.msra.mxu1 %v34340_v58  ;;  %27110 = vmatprep.mubr.msk.f32.mxu1 %vm30068_vm1, %v34033_v48 }
 0x551   :  { %34352 = vst [vmem:[#allocation23_spill] sm:$0xff] %v32840_v62  ;;  %34353 = vst [vmem:[#allocation15_spill] sm:$0xff] %v32843_v25  ;;  %v32852_v10 = vadd.f32 %v32840_v62, %v32838_v31  ;;  %28697 = vmatprep.subr.bf16.mxu1 %v34034_v14 }
 0x552   :  { %27891 = vmatmul.mubr.f32.gmra.mrb[66].mxu0 %v32335_v11  ;;  %v34357_v11 = vld [vmem:[#allocation74_spill] sm:$0xff] }
 0x553   :  { %34354 = vst [vmem:[#allocation68_spill] sm:$0xff] %v32852_v10  ;;  %27893 = vmatprep.mubr.f32.mxu0 %v32337_v8  ;;  %v34358_v8 = vld [vmem:[#allocation76_spill] sm:$0xff] }
 0x556   :  { %27894 = vmatmul.mubr.f32.gmra.mrb[68].mxu0 %v32339_v1  ;;  %v34359_v1 = vpack.c.bf16 %v34357_v11, %v34358_v8  ;;  %v34378_v11 = vld [vmem:[#allocation47_spill] sm:$0xff]  ;;  %v34379_v8 = vld [vmem:[#allocation32_spill] sm:$0xff] }
 0x557   :  { %27111 = vmatmul.mubr.f32.vlgmr.msra.gmra.mrb[40].mxu1 %v30702_v7  ;;  %27896 = vmatprep.mubr.f32.mxu0 %v34349_v2  ;;  %v34374_v2 = vld [vmem:[#allocation90_spill] sm:$0xff] }
 0x558   :  { %28699 = vmatpush3.bf16.msra.mxu1 %v34355_v27  ;;  %27117 = vmatprep.mubr.msk.f32.mxu1 %vm30068_vm1, %v34033_v48 }
 0x559   :  { %28700 = vmatprep.subr.bf16.mxu1 %v34034_v14 }
 0x55a   :  { %27897 = vmatmul.mubr.f32.gmra.mrb[70].mxu0 %v32360_v43 }
 0x55b   :  { %27118 = vmatmul.mubr.f32.vlgmr.msra.gmra.mrb[42].mxu1 %v30727_v9  ;;  %27899 = vmatprep.mubr.f32.mxu0 %v32385_v44  ;;  %v34361_v44 = vld [vmem:[#allocation39_spill] sm:$0xff] }
 0x55c   :  { %28702 = vmatpush3.bf16.msra.mxu1 %v34356_v21  ;;  %27124 = vmatprep.mubr.msk.f32.mxu1 %vm30068_vm1, %v34033_v48  ;;  %v34377_v21 = vld [vmem:[#allocation58_spill] sm:$0xff] }
 0x55d   :  { %28703 = vmatprep.subr.bf16.mxu1 %v34034_v14 }
 0x55e   :  { %27900 = vmatmul.mubr.f32.gmra.mrb[72].mxu0 %v32387_v24  ;;  %v34360_v24 = vld [vmem:[#allocation86_spill] sm:$0xff] }
 0x55f   :  { %27902 = vmatprep.mubr.f32.mxu0 %v32408_v4 }
 0x562   :  { %27903 = vmatmul.mubr.f32.gmra.mrb[74].mxu0 %v32421_v51 }
 0x563   :  { %27125 = vmatmul.mubr.f32.vlgmr.msra.gmra.mrb[42].mxu1 %v30702_v7  ;;  %27905 = vmatprep.mubr.f32.mxu0 %v32423_v57  ;;  %v34362_v57 = vld [vmem:[#allocation77_spill] sm:$0xff] }
 0x564   :  { %28705 = vmatpush3.bf16.msra.mxu1 %v34359_v1  ;;  %27131 = vmatprep.mubr.msk.f32.mxu1 %vm30068_vm1, %v34033_v48  ;;  %v34380_v1 = vpack.c.bf16 %v34378_v11, %v34379_v8 }
 0x565   :  { %28706 = vmatprep.subr.bf16.mxu1 %v34034_v14 }
 0x566   :  { %27906 = vmatmul.mubr.f32.gmra.mrb[76].mxu0 %v32439_v16  ;;  %v34363_v16 = vld [vmem:[#allocation89_spill] sm:$0xff] }
 0x567   :  { %27908 = vmatprep.mubr.f32.mxu0 %v32446_v13  ;;  %v34364_v13 = vld [vmem:[#allocation78_spill] sm:$0xff] }
 0x56a   :  { %27909 = vmatmul.mubr.f32.gmra.mrb[78].mxu0 %v32448_v35  ;;  %v34365_v35 = vld [vmem:[#allocation79_spill] sm:$0xff] }
 0x56b   :  { %27132 = vmatmul.mubr.f32.vlgmr.msra.gmra.mrb[42].mxu1 %v30707_v22  ;;  %v34366_v5 = vpack.c.bf16 %v34364_v13, %v34365_v35  ;;  %v34384_v35 = vld [vmem:[#allocation41_spill] sm:$0xff] }
 0x56c   :  { %28708 = vmatpush3.bf16.msra.mxu1 %v34355_v27  ;;  %27138 = vmatprep.mubr.msk.f32.mxu1 %vm30068_vm1, %v34033_v48 }
 0x56d   :  { %28709 = vmatprep.subr.bf16.mxu1 %v34034_v14 }
 0x573   :  { %27139 = vmatmul.mubr.f32.vlgmr.msra.gmra.mrb[42].mxu1 %v30712_v34 }
 0x574   :  { %28711 = vmatpush3.bf16.msra.mxu1 %v34360_v24  ;;  %27145 = vmatprep.mubr.msk.f32.mxu1 %vm30068_vm1, %v34033_v48  ;;  %v34381_v24 = vld [vmem:[#allocation44_spill] sm:$0xff] }
 0x575   :  { %28712 = vmatprep.subr.bf16.mxu1 %v34034_v14 }
 0x57a   :  { %v32897_v43 = vpop.f32.mrb[32].mxu1 }
 0x57b   :  { %v26944_v51 = vpop.f32.mrb[33].mxu1  ;;  %27146 = vmatmul.mubr.f32.vlgmr.msra.gmra.mrb[42].mxu1 %v30702_v7 }
 0x57c   :  { %28714 = vmatpush3.bf16.msra.mxu1 %v34355_v27  ;;  %27152 = vmatprep.mubr.msk.f32.mxu1 %vm30068_vm1, %v34033_v48  ;;  %v34376_v27 = vld [vmem:[#allocation24_spill] sm:$0xff] }
 0x57d   :  { %28715 = vmatprep.subr.bf16.mxu1 %v34034_v14 }
 0x583   :  { %27153 = vmatmul.mubr.f32.vlgmr.msra.gmra.mrb[42].mxu1 %v30702_v7 }
 0x584   :  { %28717 = vmatpush3.bf16.msra.mxu1 %v34362_v57  ;;  %27159 = vmatprep.mubr.msk.f32.mxu1 %vm30068_vm1, %v34033_v48 }
 0x585   :  { %28718 = vmatprep.subr.bf16.mxu1 %v34034_v14 }
 0x587   :  { %27160 = vmatmul.mubr.f32.vlgmr.msra.gmra.mrb[44].mxu1 %v30727_v9 }
 0x588   :  { %28720 = vmatpush3.bf16.msra.mxu1 %v34363_v16  ;;  %27166 = vmatprep.mubr.msk.f32.mxu1 %vm30068_vm1, %v34033_v48 }
 0x589   :  { %28721 = vmatprep.subr.bf16.mxu1 %v34034_v14 }
 0x58f   :  { %27167 = vmatmul.mubr.f32.vlgmr.msra.gmra.mrb[44].mxu1 %v30702_v7 }
 0x590   :  { %28723 = vmatpush3.bf16.msra.mxu1 %v34366_v5  ;;  %27173 = vmatprep.mubr.msk.f32.mxu1 %vm30068_vm1, %v34033_v48  ;;  %v34385_v5 = vld [vmem:[#allocation61_spill] sm:$0xff] }
 0x591   :  { %28724 = vmatprep.subr.bf16.mxu1 %v34034_v14 }
 0x597   :  { %27174 = vmatmul.mubr.f32.vlgmr.msra.gmra.mrb[44].mxu1 %v30707_v22 }
 0x598   :  { %28726 = vmatpush3.bf16.msra.mxu1 %v34362_v57  ;;  %27180 = vmatprep.mubr.msk.f32.mxu1 %vm30068_vm1, %v34033_v48 }
 0x599   :  { %28727 = vmatprep.subr.bf16.mxu1 %v34034_v14 }
 0x59f   :  { %27181 = vmatmul.mubr.f32.vlgmr.msra.gmra.mrb[44].mxu1 %v30712_v34 }
 0x5a0   :  { %28729 = vmatpush3.bf16.msra.mxu1 %v34367_v40  ;;  %27187 = vmatprep.mubr.msk.f32.mxu1 %vm30068_vm1, %v34033_v48  ;;  %v34386_v40 = vld [vmem:[#allocation26_spill] sm:$0xff] }
 0x5a1   :  { %28730 = vmatprep.subr.bf16.mxu1 %v34034_v14 }
 0x5a6   :  { %v32933_v58 = vpop.f32.mrb[34].mxu1 }
 0x5a7   :  { %v26986_v56 = vpop.f32.mrb[35].mxu1  ;;  %27188 = vmatmul.mubr.f32.vlgmr.msra.gmra.mrb[44].mxu1 %v30702_v7 }
 0x5a8   :  { %28732 = vmatpush3.bf16.msra.mxu1 %v34362_v57  ;;  %27194 = vmatprep.mubr.msk.f32.mxu1 %vm30068_vm1, %v34033_v48  ;;  %v34387_v56 = vld [vmem:[#allocation48_spill] sm:$0xff] }
 0x5a9   :  { %28733 = vmatprep.subr.bf16.mxu1 %v34034_v14 }
 0x5af   :  { %27195 = vmatmul.mubr.f32.vlgmr.msra.gmra.mrb[44].mxu1 %v30702_v7 }
 0x5b0   :  { %28735 = vmatpush3.bf16.msra.mxu1 %v34369_v49  ;;  %27201 = vmatprep.mubr.msk.f32.mxu1 %vm30068_vm1, %v34033_v48 }
 0x5b1   :  { %28736 = vmatprep.subr.bf16.mxu1 %v34034_v14 }
 0x5b3   :  { %27202 = vmatmul.mubr.f32.vlgmr.msra.gmra.mrb[46].mxu1 %v30727_v9 }
 0x5b4   :  { %28738 = vmatpush3.bf16.msra.mxu1 %v34370_v15  ;;  %27208 = vmatprep.mubr.msk.f32.mxu1 %vm30068_vm1, %v34033_v48  ;;  %v34389_v15 = vld [vmem:[#allocation30_spill] sm:$0xff] }
 0x5b5   :  { %28739 = vmatprep.subr.bf16.mxu1 %v34034_v14 }
 0x5bb   :  { %27209 = vmatmul.mubr.f32.vlgmr.msra.gmra.mrb[46].mxu1 %v30702_v7 }
 0x5bc   :  { %28741 = vmatpush3.bf16.msra.mxu1 %v34373_v39  ;;  %27215 = vmatprep.mubr.msk.f32.mxu1 %vm30068_vm1, %v34033_v48 }
 0x5bd   :  { %28742 = vmatprep.subr.bf16.mxu1 %v34034_v14 }
 0x5c3   :  { %27216 = vmatmul.mubr.f32.vlgmr.msra.gmra.mrb[46].mxu1 %v30707_v22 }
 0x5c4   :  { %28744 = vmatpush3.bf16.msra.mxu1 %v34369_v49  ;;  %27222 = vmatprep.mubr.msk.f32.mxu1 %vm30068_vm1, %v34033_v48 }
 0x5c5   :  { %28745 = vmatprep.subr.bf16.mxu1 %v34034_v14 }
 0x5cb   :  { %27223 = vmatmul.mubr.f32.vlgmr.msra.gmra.mrb[46].mxu1 %v30712_v34 }
 0x5cc   :  { %28747 = vmatpush3.bf16.msra.mxu1 %v34374_v2  ;;  %27229 = vmatprep.mubr.msk.f32.mxu1 %vm30068_vm1, %v34033_v48 }
 0x5cd   :  { %28748 = vmatprep.subr.bf16.mxu1 %v34034_v14 }
 0x5d2   :  { %v32969_v12 = vpop.f32.mrb[36].mxu1 }
 0x5d3   :  { %v27028_v37 = vpop.f32.mrb[37].mxu1  ;;  %27230 = vmatmul.mubr.f32.vlgmr.msra.gmra.mrb[46].mxu1 %v30702_v7 }
 0x5d4   :  { %28750 = vmatpush3.bf16.msra.mxu1 %v34369_v49  ;;  %27236 = vmatprep.mubr.msk.f32.mxu1 %vm30068_vm1, %v34033_v48  ;;  %v34388_v49 = vpack.c.bf16 %v34386_v40, %v34387_v56 }
 0x5d5   :  { %28775 = vmatprep.subr.bf16.mxu1 %v34034_v14 }
 0x5db   :  { %27237 = vmatmul.mubr.f32.vlgmr.msra.gmra.mrb[46].mxu1 %v30702_v7 }
 0x5dc   :  { %28777 = vmatpush3.bf16.msra.mxu1 %v34376_v27  ;;  %27411 = vmatprep.mubr.msk.f32.mxu1 %vm30068_vm1, %v34033_v48 }
 0x5dd   :  { %28778 = vmatprep.subr.bf16.mxu1 %v34034_v14 }
 0x5df   :  { %27412 = vmatmul.mubr.f32.vlgmr.msra.gmra.mrb[48].mxu1 %v30727_v9 }
 0x5e0   :  { %28780 = vmatpush3.bf16.msra.mxu1 %v34377_v21  ;;  %27418 = vmatprep.mubr.msk.f32.mxu1 %vm30068_vm1, %v34033_v48 }
 0x5e1   :  { %28781 = vmatprep.subr.bf16.mxu1 %v34034_v14 }
 0x5e7   :  { %27419 = vmatmul.mubr.f32.vlgmr.msra.gmra.mrb[48].mxu1 %v30702_v7 }
 0x5e8   :  { %28783 = vmatpush3.bf16.msra.mxu1 %v34380_v1  ;;  %27425 = vmatprep.mubr.msk.f32.mxu1 %vm30068_vm1, %v34033_v48 }
 0x5e9   :  { %28784 = vmatprep.subr.bf16.mxu1 %v34034_v14 }
 0x5ef   :  { %27426 = vmatmul.mubr.f32.vlgmr.msra.gmra.mrb[48].mxu1 %v30707_v22 }
 0x5f0   :  { %28786 = vmatpush3.bf16.msra.mxu1 %v34376_v27  ;;  %27432 = vmatprep.mubr.msk.f32.mxu1 %vm30068_vm1, %v34033_v48 }
 0x5f1   :  { %28787 = vmatprep.subr.bf16.mxu1 %v34034_v14 }
 0x5f7   :  { %27433 = vmatmul.mubr.f32.vlgmr.msra.gmra.mrb[48].mxu1 %v30712_v34 }
 0x5f8   :  { %28789 = vmatpush3.bf16.msra.mxu1 %v34381_v24  ;;  %27439 = vmatprep.mubr.msk.f32.mxu1 %vm30068_vm1, %v34033_v48 }
 0x5f9   :  { %28790 = vmatprep.subr.bf16.mxu1 %v34034_v14 }
 0x5fe   :  { %v33005_v51 = vpop.f32.mrb[38].mxu1 }
 0x5ff   :  { %34382 = vst [vmem:[#allocation69_spill] sm:$0xff] %v33005_v51  ;;  %v27070_v13 = vpop.f32.mrb[39].mxu1  ;;  %27440 = vmatmul.mubr.f32.vlgmr.msra.gmra.mrb[48].mxu1 %v30702_v7 }
 0x600   :  { %28792 = vmatpush3.bf16.msra.mxu1 %v34376_v27  ;;  %27446 = vmatprep.mubr.msk.f32.mxu1 %vm30068_vm1, %v34033_v48 }
 0x601   :  { %28793 = vmatprep.subr.bf16.mxu1 %v34034_v14 }
 0x607   :  { %27447 = vmatmul.mubr.f32.vlgmr.msra.gmra.mrb[48].mxu1 %v30702_v7 }
 0x608   :  { %28795 = vmatpush3.bf16.msra.mxu1 %v34384_v35  ;;  %27453 = vmatprep.mubr.msk.f32.mxu1 %vm30068_vm1, %v34033_v48 }
 0x609   :  { %28796 = vmatprep.subr.bf16.mxu1 %v34034_v14 }
 0x60b   :  { %27454 = vmatmul.mubr.f32.vlgmr.msra.gmra.mrb[50].mxu1 %v30727_v9 }
 0x60c   :  { %28798 = vmatpush3.bf16.msra.mxu1 %v34385_v5  ;;  %27460 = vmatprep.mubr.msk.f32.mxu1 %vm30068_vm1, %v34033_v48 }
 0x60d   :  { %28799 = vmatprep.subr.bf16.mxu1 %v34034_v14 }
 0x613   :  { %27461 = vmatmul.mubr.f32.vlgmr.msra.gmra.mrb[50].mxu1 %v30702_v7 }
 0x614   :  { %28801 = vmatpush3.bf16.msra.mxu1 %v34388_v49  ;;  %27467 = vmatprep.mubr.msk.f32.mxu1 %vm30068_vm1, %v34033_v48 }
 0x615   :  { %28802 = vmatprep.subr.bf16.mxu1 %v34034_v14 }
 0x61b   :  { %27468 = vmatmul.mubr.f32.vlgmr.msra.gmra.mrb[50].mxu1 %v30707_v22 }
 0x61c   :  { %28804 = vmatpush3.bf16.msra.mxu1 %v34384_v35  ;;  %27474 = vmatprep.mubr.msk.f32.mxu1 %vm30068_vm1, %v34033_v48 }
 0x61d   :  { %28805 = vmatprep.subr.bf16.mxu1 %v34034_v14 }
 0x621   :  { %v27889_v47 = vpop.f32.mrb[64].mxu0 }
 0x622   :  { %v20594_v6 = vand.u32 4294901760, %v27889_v47  ;;  %v20496_v39 = vpop.f32.mrb[65].mxu0 }
 0x623   :  { %27475 = vmatmul.mubr.f32.vlgmr.msra.gmra.mrb[50].mxu1 %v30712_v34  ;;  %v20591_v2 = vand.u32 4294901760, %v20496_v39 }
 0x624   :  { %28807 = vmatpush3.bf16.msra.mxu1 %v34389_v15  ;;  %27481 = vmatprep.mubr.msk.f32.mxu1 %vm30068_vm1, %v34033_v48  ;;  %v33041_v37 = vsub.f32 %v27889_v47, %v20594_v6 }
 0x625   :  { %28808 = vmatprep.subr.bf16.mxu1 %v34034_v14  ;;  %v33043_v27 = vpack.c.bf16 %v20594_v6, %v20591_v2  ;;  %v33045_v21 = vsub.f32 %v20496_v39, %v20591_v2  ;;  %v27892_v11 = vpop.f32.mrb[66].mxu0 }
 0x626   :  { %v20677_v1 = vand.u32 4294901760, %v33041_v37  ;;  %v21053_v24 = vand.u32 4294901760, %v27892_v11  ;;  %v20508_v13 = vpop.f32.mrb[67].mxu0 }
 0x627   :  { %v20670_v49 = vand.u32 4294901760, %v33045_v21  ;;  %v21050_v47 = vand.u32 4294901760, %v20508_v13 }
 0x628   :  { %v33059_v6 = vsub.f32 %v27892_v11, %v21053_v24  ;;  %v20678_v39 = vsub.f32 %v33041_v37, %v20677_v1 }
 0x629   :  { %v33063_v2 = vpack.c.bf16 %v21053_v24, %v21050_v47  ;;  %v27895_v40 = vpop.f32.mrb[68].mxu0  ;;  %v20671_v16 = vsub.f32 %v33045_v21, %v20670_v49 }
 0x62a   :  { %v33047_v8 = vpop.f32.mrb[40].mxu1  ;;  %34392 = vst [vmem:[#allocation83_spill] sm:$0xff] %v33059_v6  ;;  %v21136_v15 = vand.u32 4294901760, %v33059_v6  ;;  %v21512_v52 = vand.u32 4294901760, %v27895_v40  ;;  %v20679_v18 = vand.u32 4294901760, %v20678_v39 }
 0x62b   :  { %34390 = vst [vmem:[#allocation22_spill] sm:$0xff] %v33047_v8  ;;  %v27112_v56 = vpop.f32.mrb[41].mxu1  ;;  %27482 = vmatmul.mubr.f32.vlgmr.msra.gmra.mrb[50].mxu1 %v30702_v7  ;;  %34393 = vst [vmem:[#allocation16_spill] sm:$0xff] %v33063_v2  ;;  %v20672_v10 = vand.u32 4294901760, %v20671_v16 }
 0x62c   :  { %28810 = vmatpush3.bf16.msra.mxu1 %v34384_v35  ;;  %27488 = vmatprep.mubr.msk.f32.mxu1 %vm30068_vm1, %v34033_v48  ;;  %v33065_v56 = vsub.f32 %v20508_v13, %v21050_v47  ;;  %v20520_v35 = vpop.f32.mrb[69].mxu0  ;;  %v33072_v25 = vsub.f32 %v27895_v40, %v21512_v52  ;;  %v21137_v24 = vsub.f32 %v33059_v6, %v21136_v15 }
 0x62d   :  { %28811 = vmatprep.subr.bf16.mxu1 %v34034_v14  ;;  %v21509_v4 = vand.u32 4294901760, %v20520_v35  ;;  %v27898_v0 = vpop.f32.mrb[70].mxu0 }
 0x62e   :  { %34394 = vst [vmem:[#allocation71_spill] sm:$0xff] %v33065_v56  ;;  %v21129_v55 = vand.u32 4294901760, %v33065_v56  ;;  %34395 = vst [vmem:[#allocation35_spill] sm:$0xff] %v33072_v25  ;;  %v21595_v30 = vand.u32 4294901760, %v33072_v25  ;;  %v21971_v46 = vand.u32 4294901760, %v27898_v0  ;;  %v20532_v28 = vpop.f32.mrb[71].mxu0 }
 0x62f   :  { %v33075_v13 = vpack.c.bf16 %v21512_v52, %v21509_v4  ;;  %v33077_v47 = vsub.f32 %v20520_v35, %v21509_v4  ;;  %v21968_v11 = vand.u32 4294901760, %v20532_v28  ;;  %v34398_v52 = vld [vmem:[#allocation45_spill] sm:$0xff]  ;;  %v33091_v35 = vpack.c.bf16 %v20677_v1, %v20670_v49 }
 0x630   :  { %v21130_v62 = vsub.f32 %v33065_v56, %v21129_v55  ;;  %v21596_v4 = vsub.f32 %v33072_v25, %v21595_v30  ;;  %v33089_v16 = vsub.f32 %v27898_v0, %v21971_v46  ;;  %v21138_v20 = vand.u32 4294901760, %v21137_v24 }
 0x631   :  { %34396 = vst [vmem:[#allocation85_spill] sm:$0xff] %v33075_v13  ;;  %34397 = vst [vmem:[#allocation65_spill] sm:$0xff] %v33077_v47  ;;  %v21588_v40 = vand.u32 4294901760, %v33077_v47  ;;  %v33095_v5 = vpack.c.bf16 %v21971_v46, %v21968_v11  ;;  %v33097_v39 = vsub.f32 %v20532_v28, %v21968_v11  ;;  %v27901_v8 = vpop.f32.mrb[72].mxu0  ;;  %v33100_v25 = vpack.c.bf16 %v20679_v18, %v20672_v10 }
 0x632   :  { %34399 = vst [vmem:[#allocation28_spill] sm:$0xff] %v33089_v16  ;;  %34400 = vst [vmem:[#allocation72_spill] sm:$0xff] %v33091_v35  ;;  %v21131_v56 = vand.u32 4294901760, %v21130_v62  ;;  %v22054_v6 = vand.u32 4294901760, %v33089_v16  ;;  %v22430_v2 = vand.u32 4294901760, %v27901_v8  ;;  %v20544_v57 = vpop.f32.mrb[73].mxu0  ;;  %v33111_v62 = vpack.c.bf16 %v21136_v15, %v21129_v55 }
 0x633   :  { %27489 = vmatmul.mubr.f32.vlgmr.msra.gmra.mrb[50].mxu1 %v30702_v7  ;;  %v21589_v13 = vsub.f32 %v33077_v47, %v21588_v40  ;;  %34401 = vst [vmem:[#allocation73_spill] sm:$0xff] %v33095_v5  ;;  %34402 = vst [vmem:[#allocation38_spill] sm:$0xff] %v33097_v39  ;;  %v22047_v0 = vand.u32 4294901760, %v33097_v39  ;;  %v22427_v49 = vand.u32 4294901760, %v20544_v57  ;;  %v21597_v28 = vand.u32 4294901760, %v21596_v4 }
 0x634   :  { %28813 = vmatpush3.bf16.msra.mxu1 %v34398_v52  ;;  %27495 = vmatprep.mubr.msk.f32.mxu1 %vm30068_vm1, %v34033_v48  ;;  %v33109_v46 = vsub.f32 %v27901_v8, %v22430_v2  ;;  %34404 = vst [vmem:[#allocation31_spill] sm:$0xff] %v33111_v62  ;;  %v22055_v10 = vsub.f32 %v33089_v16, %v22054_v6 }
 0x635   :  { %28814 = vmatprep.subr.bf16.mxu1 %v34034_v14  ;;  %v21590_v18 = vand.u32 4294901760, %v21589_v13  ;;  %v33115_v11 = vpack.c.bf16 %v22430_v2, %v22427_v49  ;;  %v33117_v24 = vsub.f32 %v20544_v57, %v22427_v49  ;;  %v27904_v1 = vpop.f32.mrb[74].mxu0  ;;  %v33121_v8 = vpack.c.bf16 %v21138_v20, %v21131_v56 }
 0x636   :  { %34403 = vst [vmem:[#allocation84_spill] sm:$0xff] %v33109_v46  ;;  %v22513_v5 = vand.u32 4294901760, %v33109_v46  ;;  %v22889_v47 = vand.u32 4294901760, %v27904_v1  ;;  %v20556_v4 = vpop.f32.mrb[75].mxu0  ;;  %v33129_v57 = vpack.c.bf16 %v21595_v30, %v21588_v40  ;;  %v22056_v49 = vand.u32 4294901760, %v22055_v10  ;;  %v34412_v10 = vld [vmem:[#allocation34_spill] sm:$0xff] }
 0x637   :  { %27496 = vmatmul.mubr.f32.vlgmr.msra.gmra.mrb[52].mxu1 %v30727_v9  ;;  %34405 = vst [vmem:[#allocation75_spill] sm:$0xff] %v33115_v11  ;;  %34406 = vst [vmem:[#allocation87_spill] sm:$0xff] %v33117_v24  ;;  %v22506_v55 = vand.u32 4294901760, %v33117_v24  ;;  %v22886_v13 = vand.u32 4294901760, %v20556_v4  ;;  %v33137_v35 = vpack.c.bf16 %v21597_v28, %v21590_v18  ;;  %v33150_v28 = vpack.c.bf16 %v22054_v6, %v22047_v0 }
 0x638   :  { %28816 = vmatpush3.bf16.msra.mxu1 %v32606_v38  ;;  %27502 = vmatprep.mubr.msk.f32.mxu1 %vm30068_vm1, %v34033_v48  ;;  %v22048_v38 = vsub.f32 %v33097_v39, %v22047_v0  ;;  %34407 = vst [vmem:[#allocation74_spill] sm:$0xff] %v33121_v8  ;;  %v22514_v2 = vsub.f32 %v33109_v46, %v22513_v5 }
 0x639   :  { %28817 = vmatprep.subr.bf16.mxu1 %v34034_v14  ;;  %v33127_v11 = vsub.f32 %v27904_v1, %v22889_v47  ;;  %v22507_v39 = vsub.f32 %v33117_v24, %v22506_v55  ;;  %v33132_v16 = vpack.c.bf16 %v22889_v47, %v22886_v13  ;;  %v33134_v62 = vsub.f32 %v20556_v4, %v22886_v13  ;;  %v27907_v20 = vpop.f32.mrb[76].mxu0  ;;  %v34411_v47 = vld [vmem:[#allocation27_spill] sm:$0xff] }
 0x63a   :  { %v22049_v56 = vand.u32 4294901760, %v22048_v38  ;;  %v23348_v51 = vand.u32 4294901760, %v27907_v20  ;;  %v20568_v15 = vpop.f32.mrb[77].mxu0  ;;  %v34413_v4 = vpack.c.bf16 %v34411_v47, %v34412_v10  ;;  %v22515_v38 = vand.u32 4294901760, %v22514_v2  ;;  %34414 = vst [vmem:[#allocation77_spill] sm:$0xff] %v33150_v28 }
 0x63b   :  { %34408 = vst [vmem:[#allocation76_spill] sm:$0xff] %v33127_v11  ;;  %34409 = vst [vmem:[#allocation86_spill] sm:$0xff] %v33132_v16  ;;  %v22972_v8 = vand.u32 4294901760, %v33127_v11  ;;  %v22965_v30 = vand.u32 4294901760, %v33134_v62  ;;  %v23345_v1 = vand.u32 4294901760, %v20568_v15  ;;  %v22508_v18 = vand.u32 4294901760, %v22507_v39 }
 0x63c   :  { %34410 = vst [vmem:[#allocation39_spill] sm:$0xff] %v33134_v62  ;;  %v33148_v13 = vsub.f32 %v27907_v20, %v23348_v51  ;;  %v33160_v20 = vpack.c.bf16 %v22056_v49, %v22049_v56 }
 0x63d   :  { %v22973_v16 = vsub.f32 %v33127_v11, %v22972_v8  ;;  %v33154_v24 = vpack.c.bf16 %v23348_v51, %v23345_v1  ;;  %v33156_v40 = vsub.f32 %v20568_v15, %v23345_v1  ;;  %v27910_v46 = vpop.f32.mrb[78].mxu0  ;;  %v22966_v47 = vsub.f32 %v33134_v62, %v22965_v30 }
 0x63e   :  { %v23431_v10 = vand.u32 4294901760, %v33148_v13  ;;  %v20580_v2 = vpop.f32.mrb[79].mxu0  ;;  %34416 = vst [vmem:[#allocation78_spill] sm:$0xff] %v33160_v20  ;;  %v33167_v51 = vpack.c.bf16 %v22513_v5, %v22506_v55  ;;  %v33176_v20 = vpack.c.bf16 %v22515_v38, %v22508_v18 }
 0x63f   :  { %27503 = vmatmul.mubr.f32.vlgmr.msra.gmra.mrb[52].mxu1 %v30702_v7  ;;  %34415 = vst [vmem:[#allocation89_spill] sm:$0xff] %v33154_v24  ;;  %v23424_v6 = vand.u32 4294901760, %v33156_v40  ;;  %v23804_v0 = vand.u32 4294901760, %v20580_v2  ;;  %v22974_v15 = vand.u32 4294901760, %v22973_v16  ;;  %v22967_v28 = vand.u32 4294901760, %v22966_v47 }
 0x640   :  { %28819 = vmatpush3.bf16.msra.mxu1 %v34413_v4  ;;  %27509 = vmatprep.mubr.msk.f32.mxu1 %vm30068_vm1, %v34033_v48  ;;  %v23807_v4 = vand.u32 4294901760, %v27910_v46  ;;  %v23432_v1 = vsub.f32 %v33148_v13, %v23431_v10  ;;  %v33185_v16 = vpack.c.bf16 %v22972_v8, %v22965_v30 }
 0x641   :  { %28820 = vmatprep.subr.bf16.mxu1 %v34034_v14  ;;  %v33172_v62 = vsub.f32 %v20580_v2, %v23804_v0  ;;  %v23425_v49 = vsub.f32 %v33156_v40, %v23424_v6  ;;  %v33192_v2 = vpack.c.bf16 %v22974_v15, %v22967_v28 }
 0x642   :  { %v33165_v11 = vsub.f32 %v27910_v46, %v23807_v4  ;;  %v33170_v24 = vpack.c.bf16 %v23807_v4, %v23804_v0  ;;  %v23433_v55 = vand.u32 4294901760, %v23432_v1  ;;  %v33194_v0 = vpack.c.bf16 %v23431_v10, %v23424_v6  ;;  %v34420_v6 = vld [vmem:[#allocation36_spill] sm:$0xff] }
 0x643   :  { %v23883_v46 = vand.u32 4294901760, %v33172_v62  ;;  %v23426_v38 = vand.u32 4294901760, %v23425_v49 }
 0x644   :  { %34417 = vst [vmem:[#allocation79_spill] sm:$0xff] %v33170_v24  ;;  %v23890_v56 = vand.u32 4294901760, %v33165_v11 }
 0x645   :  { %v23884_v4 = vsub.f32 %v33172_v62, %v23883_v46  ;;  %v33196_v24 = vpack.c.bf16 %v23433_v55, %v23426_v38 }
 0x646   :  { %v33188_v47 = vpack.c.bf16 %v23890_v56, %v23883_v46  ;;  %v23891_v18 = vsub.f32 %v33165_v11, %v23890_v56  ;;  %v34423_v56 = vld [vmem:[#allocation60_spill] sm:$0xff]  ;;  %v34424_v46 = vld [vmem:[#allocation14_spill] sm:$0xff] }
 0x647   :  { %27510 = vmatmul.mubr.f32.vlgmr.msra.gmra.mrb[52].mxu1 %v30707_v22  ;;  %v23885_v39 = vand.u32 4294901760, %v23884_v4  ;;  %v34428_v4 = vld [vmem:[#allocation70_spill] sm:$0xff] }
 0x648   :  { %28822 = vmatpush3.bf16.msra.mxu1 %v34398_v52  ;;  %27516 = vmatprep.mubr.msk.f32.mxu1 %vm30068_vm1, %v34033_v48  ;;  %v23892_v5 = vand.u32 4294901760, %v23891_v18 }
 0x649   :  { %28823 = vmatprep.subr.bf16.mxu1 %v34034_v14 }
 0x64a   :  { %v33203_v8 = vpack.c.bf16 %v23892_v5, %v23885_v39  ;;  %v34425_v5 = vld [vmem:[#allocation59_spill] sm:$0xff] }
 0x64b   :  { %v34426_v55 = vpack.c.bf16 %v34424_v46, %v34425_v5  ;;  %v34433_v46 = vld [vmem:[#allocation51_spill] sm:$0xff] }
 0x64f   :  { %27517 = vmatmul.mubr.f32.vlgmr.msra.gmra.mrb[52].mxu1 %v30712_v34 }
 0x650   :  { %28825 = vmatpush3.bf16.msra.mxu1 %v32596_v26  ;;  %27523 = vmatprep.mubr.msk.f32.mxu1 %vm30068_vm1, %v34033_v48  ;;  %v34418_v26 = vld [vmem:[#allocation49_spill] sm:$0xff] }
 0x651   :  { %28826 = vmatprep.subr.bf16.mxu1 %v34034_v14 }
 0x656   :  { %v33205_v30 = vpop.f32.mrb[42].mxu1 }
 0x657   :  { %v24291_v28 = vsub.f32 %v33205_v30, %v32685_v36  ;;  %v27154_v10 = vpop.f32.mrb[43].mxu1  ;;  %27524 = vmatmul.mubr.f32.vlgmr.msra.gmra.mrb[52].mxu1 %v30702_v7  ;;  %v34468_v36 = vld [vmem:[#allocation78_spill] sm:$0xff]  ;;  %v34469_v30 = vld [vmem:[#allocation28_spill] sm:$0xff] }
 0x658   :  { %28828 = vmatpush3.bf16.msra.mxu1 %v34398_v52  ;;  %27530 = vmatprep.mubr.msk.f32.mxu1 %vm30068_vm1, %v34033_v48  ;;  %v34419_v52 = vld [vmem:[#allocation46_spill] sm:$0xff]  ;;  %v34429_v10 = vld [vmem:[#allocation92_spill] sm:$0xff] }
 0x659   :  { %28829 = vmatprep.subr.bf16.mxu1 %v34034_v14  ;;  %v34421_v39 = vpack.c.bf16 %v34419_v52, %v34420_v6  ;;  %v34431_v52 = vld [vmem:[#allocation33_spill] sm:$0xff] }
 0x65f   :  { %27531 = vmatmul.mubr.f32.vlgmr.msra.gmra.mrb[52].mxu1 %v30702_v7 }
 0x660   :  { %28831 = vmatpush3.bf16.msra.mxu1 %v34418_v26  ;;  %27537 = vmatprep.mubr.msk.f32.mxu1 %vm30068_vm1, %v34033_v48 }
 0x661   :  { %28832 = vmatprep.subr.bf16.mxu1 %v34034_v14 }
 0x663   :  { %27538 = vmatmul.mubr.f32.vlgmr.msra.gmra.mrb[54].mxu1 %v30727_v9 }
 0x664   :  { %28834 = vmatpush3.bf16.msra.mxu1 %v32626_v53  ;;  %27544 = vmatprep.mubr.msk.f32.mxu1 %vm30068_vm1, %v34033_v48  ;;  %v34422_v53 = vld [vmem:[#allocation63_spill] sm:$0xff] }
 0x665   :  { %28835 = vmatprep.subr.bf16.mxu1 %v34034_v14 }
 0x66b   :  { %27545 = vmatmul.mubr.f32.vlgmr.msra.gmra.mrb[54].mxu1 %v30702_v7 }
 0x66c   :  { %28837 = vmatpush3.bf16.msra.mxu1 %v34421_v39  ;;  %27551 = vmatprep.mubr.msk.f32.mxu1 %vm30068_vm1, %v34033_v48 }
 0x66d   :  { %28838 = vmatprep.subr.bf16.mxu1 %v34034_v14 }
 0x673   :  { %27552 = vmatmul.mubr.f32.vlgmr.msra.gmra.mrb[54].mxu1 %v30707_v22 }
 0x674   :  { %28840 = vmatpush3.bf16.msra.mxu1 %v34418_v26  ;;  %27558 = vmatprep.mubr.msk.f32.mxu1 %vm30068_vm1, %v34033_v48 }
 0x675   :  { %28841 = vmatprep.subr.bf16.mxu1 %v34034_v14 }
 0x67b   :  { %27559 = vmatmul.mubr.f32.vlgmr.msra.gmra.mrb[54].mxu1 %v30712_v34 }
 0x67c   :  { %28843 = vmatpush3.bf16.msra.mxu1 %v34422_v53  ;;  %27565 = vmatprep.mubr.msk.f32.mxu1 %vm30068_vm1, %v34033_v48  ;;  %v33315_v53 = vstv %s88_s4 }
 0x67d   :  { %28844 = vmatprep.subr.bf16.mxu1 %v34034_v14  ;;  %v24376_v5 = vadd.f32 %v34433_v46, %v33315_v53 }
 0x682   :  { %v33241_v15 = vpop.f32.mrb[44].mxu1 }
 0x683   :  { %v24292_v1 = vsub.f32 %v33241_v15, %v32764_v45  ;;  %v27196_v49 = vpop.f32.mrb[45].mxu1  ;;  %27566 = vmatmul.mubr.f32.vlgmr.msra.gmra.mrb[54].mxu1 %v30702_v7  ;;  %v34476_v45 = vld [vmem:[#allocation84_spill] sm:$0xff]  ;;  %v34477_v15 = vld [vmem:[#allocation87_spill] sm:$0xff] }
 0x684   :  { %28846 = vmatpush3.bf16.msra.mxu1 %v34418_v26  ;;  %27572 = vmatprep.mubr.msk.f32.mxu1 %vm30068_vm1, %v34033_v48  ;;  %v34430_v26 = vpack.c.bf16 %v34428_v4, %v34429_v10  ;;  %v33317_v49 = vstv %s24466_s25  ;;  %v34434_v4 = vld [vmem:[#allocation64_spill] sm:$0xff]  ;;  %v34438_v10 = vld [vmem:[#allocation54_spill] sm:$0xff] }
 0x685   :  { %28847 = vmatprep.subr.bf16.mxu1 %v34034_v14 }
 0x68b   :  { %27573 = vmatmul.mubr.f32.vlgmr.msra.gmra.mrb[54].mxu1 %v30702_v7 }
 0x68c   :  { %28849 = vmatpush3.bf16.msra.mxu1 %v34423_v56  ;;  %27579 = vmatprep.mubr.msk.f32.mxu1 %vm30068_vm1, %v34033_v48 }
 0x68d   :  { %28850 = vmatprep.subr.bf16.mxu1 %v34034_v14 }
 0x68f   :  { %27580 = vmatmul.mubr.f32.vlgmr.msra.gmra.mrb[56].mxu1 %v30727_v9 }
 0x690   :  { %28852 = vmatpush3.bf16.msra.mxu1 %v32644_v54  ;;  %27586 = vmatprep.mubr.msk.f32.mxu1 %vm30068_vm1, %v34033_v48 }
 0x691   :  { %28853 = vmatprep.subr.bf16.mxu1 %v34034_v14 }
 0x697   :  { %27587 = vmatmul.mubr.f32.vlgmr.msra.gmra.mrb[56].mxu1 %v30702_v7 }
 0x698   :  { %28855 = vmatpush3.bf16.msra.mxu1 %v34426_v55  ;;  %27593 = vmatprep.mubr.msk.f32.mxu1 %vm30068_vm1, %v34033_v48 }
 0x699   :  { %28856 = vmatprep.subr.bf16.mxu1 %v34034_v14 }
 0x69f   :  { %27594 = vmatmul.mubr.f32.vlgmr.msra.gmra.mrb[56].mxu1 %v30707_v22 }
 0x6a0   :  { %28858 = vmatpush3.bf16.msra.mxu1 %v34423_v56  ;;  %27600 = vmatprep.mubr.msk.f32.mxu1 %vm30068_vm1, %v34033_v48 }
 0x6a1   :  { %28859 = vmatprep.subr.bf16.mxu1 %v34034_v14 }
 0x6a7   :  { %27601 = vmatmul.mubr.f32.vlgmr.msra.gmra.mrb[56].mxu1 %v30712_v34 }
 0x6a8   :  { %28861 = vmatpush3.bf16.msra.mxu1 %v32634_v61  ;;  %27607 = vmatprep.mubr.msk.f32.mxu1 %vm30068_vm1, %v34033_v48  ;;  %v34427_v61 = vld [vmem:[#allocation62_spill] sm:$0xff] }
 0x6a9   :  { %28862 = vmatprep.subr.bf16.mxu1 %v34034_v14 }
 0x6ae   :  { %v33277_v54 = vpop.f32.mrb[46].mxu1 }
 0x6af   :  { %v24293_v38 = vsub.f32 %v33277_v54, %v32838_v31  ;;  %v27238_v18 = vpop.f32.mrb[47].mxu1  ;;  %27608 = vmatmul.mubr.f32.vlgmr.msra.gmra.mrb[56].mxu1 %v30702_v7  ;;  %v34482_v31 = vld [vmem:[#allocation76_spill] sm:$0xff]  ;;  %v34483_v54 = vld [vmem:[#allocation39_spill] sm:$0xff] }
 0x6b0   :  { %28864 = vmatpush3.bf16.msra.mxu1 %v34423_v56  ;;  %27614 = vmatprep.mubr.msk.f32.mxu1 %vm30068_vm1, %v34033_v48 }
 0x6b1   :  { %28865 = vmatprep.subr.bf16.mxu1 %v34034_v14 }
 0x6b7   :  { %27615 = vmatmul.mubr.f32.vlgmr.msra.gmra.mrb[56].mxu1 %v30702_v7 }
 0x6b8   :  { %28867 = vmatpush3.bf16.msra.mxu1 %v34427_v61  ;;  %27621 = vmatprep.mubr.msk.f32.mxu1 %vm30068_vm1, %v34033_v48 }
 0x6b9   :  { %28868 = vmatprep.subr.bf16.mxu1 %v34034_v14 }
 0x6bb   :  { %27622 = vmatmul.mubr.f32.vlgmr.msra.gmra.mrb[58].mxu1 %v30727_v9 }
 0x6bc   :  { %28870 = vmatpush3.bf16.msra.mxu1 %v32660_v32  ;;  %27628 = vmatprep.mubr.msk.f32.mxu1 %vm30068_vm1, %v34033_v48 }
 0x6bd   :  { %28871 = vmatprep.subr.bf16.mxu1 %v34034_v14 }
 0x6c3   :  { %27629 = vmatmul.mubr.f32.vlgmr.msra.gmra.mrb[58].mxu1 %v30702_v7 }
 0x6c4   :  { %28873 = vmatpush3.bf16.msra.mxu1 %v34430_v26  ;;  %27635 = vmatprep.mubr.msk.f32.mxu1 %vm30068_vm1, %v34033_v48  ;;  %v24377_v26 = vadd.f32 %v34438_v10, %v33315_v53  ;;  %v34453_v10 = vld [vmem:[#allocation71_spill] sm:$0xff] }
 0x6c5   :  { %28874 = vmatprep.subr.bf16.mxu1 %v34034_v14 }
 0x6cb   :  { %27636 = vmatmul.mubr.f32.vlgmr.msra.gmra.mrb[58].mxu1 %v30707_v22 }
 0x6cc   :  { %28876 = vmatpush3.bf16.msra.mxu1 %v34427_v61  ;;  %27642 = vmatprep.mubr.msk.f32.mxu1 %vm30068_vm1, %v34033_v48 }
 0x6cd   :  { %28877 = vmatprep.subr.bf16.mxu1 %v34034_v14 }
 0x6d3   :  { %27643 = vmatmul.mubr.f32.vlgmr.msra.gmra.mrb[58].mxu1 %v30712_v34 }
 0x6d4   :  { %28879 = vmatpush3.bf16.msra.mxu1 %v32654_v17  ;;  %27649 = vmatprep.mubr.msk.f32.mxu1 %vm30068_vm1, %v34033_v48  ;;  %v34432_v17 = vsub.f32 %v32897_v43, %v34361_v44  ;;  %v34435_v43 = vpack.c.bf16 %v32613_v63, %v32621_v19  ;;  %v34436_v19 = vld [vmem:[#allocation20_spill] sm:$0xff] }
 0x6d5   :  { %28880 = vmatprep.subr.bf16.mxu1 %v34034_v14 }
 0x6da   :  { %v16205_v32 = vpop.f32.mrb[48].mxu1 }
 0x6db   :  { %v24294_v6 = vsub.f32 %v16205_v32, %v34431_v52  ;;  %v27448_v39 = vpop.f32.mrb[49].mxu1  ;;  %27650 = vmatmul.mubr.f32.vlgmr.msra.gmra.mrb[58].mxu1 %v30702_v7 }
 0x6dc   :  { %28882 = vmatpush3.bf16.msra.mxu1 %v34427_v61  ;;  %27656 = vmatprep.mubr.msk.f32.mxu1 %vm30068_vm1, %v34033_v48  ;;  %v34437_v61 = vsub.f32 %v32933_v58, %v34368_v60  ;;  %v34439_v58 = vpack.c.bf16 %v32632_v42, %v32639_v41  ;;  %v34440_v42 = vld [vmem:[#allocation55_spill] sm:$0xff]  ;;  %v34442_v39 = vld [vmem:[#allocation57_spill] sm:$0xff] }
 0x6dd   :  { %v24327_v56 = vadd.f32 %v24294_v6, %v34432_v17  ;;  %28883 = vmatprep.subr.bf16.mxu1 %v34034_v14  ;;  %v34441_v6 = vsub.f32 %v32969_v12, %v34375_v29  ;;  %v24378_v17 = vadd.f32 %v34442_v39, %v33315_v53  ;;  %v34445_v29 = vld [vmem:[#allocation66_spill] sm:$0xff] }
 0x6df   :  { %v24335_v55 = vadd.f32 %v24327_v56, %v33317_v49 }
 0x6e1   :  { %v33329_v18 = vmul.f32 %v24376_v5, %v24335_v55  ;;  %v34446_v5 = vld [vmem:[#allocation69_spill] sm:$0xff] }
 0x6e2   :  { %v34447_v55 = vld [vmem:[#allocation37_spill] sm:$0xff] }
 0x6e3   :  { %27657 = vmatmul.mubr.f32.vlgmr.msra.gmra.mrb[58].mxu1 %v30702_v7  ;;  %29898 = vrcp.f32 %v33329_v18 }
 0x6e4   :  { %28885 = vmatpush3.bf16.msra.mxu1 %v34434_v4  ;;  %27663 = vmatprep.mubr.msk.f32.mxu1 %vm30068_vm1, %v34033_v48 }
 0x6e5   :  { %28886 = vmatprep.subr.bf16.mxu1 %v34034_v14 }
 0x6e7   :  { %27664 = vmatmul.mubr.f32.vlgmr.msra.gmra.mrb[60].mxu1 %v30727_v9 }
 0x6e8   :  { %28888 = vmatpush3.bf16.msra.mxu1 %v32666_v59  ;;  %27670 = vmatprep.mubr.msk.f32.mxu1 %vm30068_vm1, %v34033_v48 }
 0x6e9   :  { %28889 = vmatprep.subr.bf16.mxu1 %v34034_v14 }
 0x6ef   :  { %27671 = vmatmul.mubr.f32.vlgmr.msra.gmra.mrb[60].mxu1 %v30702_v7 }
 0x6f0   :  { %28891 = vmatpush3.bf16.msra.mxu1 %v34435_v43  ;;  %27677 = vmatprep.mubr.msk.f32.mxu1 %vm30068_vm1, %v34033_v48 }
 0x6f1   :  { %28892 = vmatprep.subr.bf16.mxu1 %v34034_v14 }
 0x6f7   :  { %27678 = vmatmul.mubr.f32.vlgmr.msra.gmra.mrb[60].mxu1 %v30707_v22 }
 0x6f8   :  { %28894 = vmatpush3.bf16.msra.mxu1 %v34434_v4  ;;  %27684 = vmatprep.mubr.msk.f32.mxu1 %vm30068_vm1, %v34033_v48 }
 0x6f9   :  { %28895 = vmatprep.subr.bf16.mxu1 %v34034_v14 }
 0x6ff   :  { %27685 = vmatmul.mubr.f32.vlgmr.msra.gmra.mrb[60].mxu1 %v30712_v34 }
 0x700   :  { %28897 = vmatpush3.bf16.msra.mxu1 %v32663_v50  ;;  %27691 = vmatprep.mubr.msk.f32.mxu1 %vm30068_vm1, %v34033_v48 }
 0x701   :  { %28898 = vmatprep.subr.bf16.mxu1 %v34034_v14 }
 0x706   :  { %v16664_v63 = vpop.f32.mrb[50].mxu1 }
 0x707   :  { %v24295_v59 = vsub.f32 %v16664_v63, %v34436_v19  ;;  %v27490_v44 = vpop.f32.mrb[51].mxu1  ;;  %27692 = vmatmul.mubr.f32.vlgmr.msra.gmra.mrb[60].mxu1 %v30702_v7  ;;  %v34449_v63 = vld [vmem:[#allocation42_spill] sm:$0xff] }
 0x708   :  { %28900 = vmatpush3.bf16.msra.mxu1 %v34434_v4  ;;  %27698 = vmatprep.mubr.msk.f32.mxu1 %vm30068_vm1, %v34033_v48  ;;  %v34448_v4 = vsub.f32 %v34446_v5, %v34447_v55  ;;  %v24379_v19 = vadd.f32 %v34449_v63, %v33315_v53  ;;  %v34465_v5 = vld [vmem:[#allocation93_spill] sm:$0xff] }
 0x709   :  { %v24328_v50 = vadd.f32 %v24295_v59, %v34437_v61  ;;  %28901 = vmatprep.subr.bf16.mxu1 %v34034_v14  ;;  %v34450_v61 = vld [vmem:[#allocation16_spill] sm:$0xff] }
 0x70b   :  { %v24336_v32 = vadd.f32 %v24328_v50, %v33317_v49  ;;  %v34452_v50 = vld [vmem:[#allocation83_spill] sm:$0xff] }
 0x70d   :  { %v33370_v52 = vmul.f32 %v24377_v26, %v24336_v32  ;;  %v34454_v26 = vpack.c.bf16 %v34452_v50, %v34453_v10  ;;  %v34455_v32 = vld [vmem:[#allocation31_spill] sm:$0xff]  ;;  %v34472_v50 = vld [vmem:[#allocation77_spill] sm:$0xff] }
 0x70f   :  { %27699 = vmatmul.mubr.f32.vlgmr.msra.gmra.mrb[60].mxu1 %v30702_v7  ;;  %29900 = vrcp.f32 %v33370_v52 }
 0x710   :  { %28903 = vmatpush3.bf16.msra.mxu1 %v32637_v23  ;;  %27705 = vmatprep.mubr.msk.f32.mxu1 %vm30068_vm1, %v34033_v48 }
 0x711   :  { %28904 = vmatprep.subr.bf16.mxu1 %v34034_v14 }
 0x713   :  { %27706 = vmatmul.mubr.f32.vlgmr.msra.gmra.mrb[62].mxu1 %v30727_v9 }
 0x714   :  { %28906 = vmatpush3.bf16.msra.mxu1 %v32677_v3  ;;  %27712 = vmatprep.mubr.msk.f32.mxu1 %vm30068_vm1, %v34033_v48 }
 0x715   :  { %28907 = vmatprep.subr.bf16.mxu1 %v34034_v14 }
 0x71b   :  { %27713 = vmatmul.mubr.f32.vlgmr.msra.gmra.mrb[62].mxu1 %v30702_v7 }
 0x71c   :  { %28909 = vmatpush3.bf16.msra.mxu1 %v34439_v58  ;;  %27719 = vmatprep.mubr.msk.f32.mxu1 %vm30068_vm1, %v34033_v48 }
 0x71d   :  { %28910 = vmatprep.subr.bf16.mxu1 %v34034_v14 }
 0x723   :  { %27720 = vmatmul.mubr.f32.vlgmr.msra.gmra.mrb[62].mxu1 %v30707_v22 }
 0x724   :  { %28912 = vmatpush3.bf16.msra.mxu1 %v32637_v23  ;;  %27726 = vmatprep.mubr.msk.f32.mxu1 %vm30068_vm1, %v34033_v48 }
 0x725   :  { %28913 = vmatprep.subr.bf16.mxu1 %v34034_v14 }
 0x72b   :  { %27727 = vmatmul.mubr.f32.vlgmr.msra.gmra.mrb[62].mxu1 %v30712_v34 }
 0x72c   :  { %28915 = vmatpush3.bf16.msra.mxu1 %v32673_v33  ;;  %27733 = vmatprep.mubr.msk.f32.mxu1 %vm30068_vm1, %v34033_v48 }
 0x72d   :  { %28916 = vmatprep.subr.bf16.mxu1 %v34034_v14 }
 0x732   :  { %v17123_v41 = vpop.f32.mrb[52].mxu1 }
 0x733   :  { %v24296_v3 = vsub.f32 %v17123_v41, %v34440_v42  ;;  %v27532_v60 = vpop.f32.mrb[53].mxu1  ;;  %27734 = vmatmul.mubr.f32.vlgmr.msra.gmra.mrb[62].mxu1 %v30702_v7  ;;  %v34456_v41 = vld [vmem:[#allocation25_spill] sm:$0xff] }
 0x734   :  { %28918 = vmatpush3.bf16.msra.mxu1 %v32637_v23  ;;  %27740 = vmatprep.mubr.msk.f32.mxu1 %vm30068_vm1, %v34033_v48  ;;  %v34443_v23 = vpack.c.bf16 %v33041_v37, %v33045_v21  ;;  %v34457_v60 = vld [vmem:[#allocation22_spill] sm:$0xff] }
 0x735   :  { %v24329_v33 = vadd.f32 %v24296_v3, %v34441_v6  ;;  %28943 = vmatprep.subr.bf16.mxu1 %v34034_v14  ;;  %v34458_v6 = vld [vmem:[#allocation43_spill] sm:$0xff] }
 0x737   :  { %v24337_v56 = vadd.f32 %v24329_v33, %v33317_v49  ;;  %v34459_v33 = vsub.f32 %v34457_v60, %v34458_v6 }
 0x739   :  { %v33411_v46 = vmul.f32 %v24378_v17, %v24337_v56  ;;  %v34460_v17 = vld [vmem:[#allocation29_spill] sm:$0xff] }
 0x73a   :  { %v24380_v56 = vadd.f32 %v34460_v17, %v33315_v53 }
 0x73b   :  { %27741 = vmatmul.mubr.f32.vlgmr.msra.gmra.mrb[62].mxu1 %v30702_v7  ;;  %29902 = vrcp.f32 %v33411_v46 }
 0x73c   :  { %28945 = vmatpush3.bf16.msra.mxu1 %v33043_v27  ;;  %27915 = vmatprep.mubr.msk.f32.mxu1 %vm30068_vm1, %v34033_v48 }
 0x73d   :  { %28946 = vmatprep.subr.bf16.mxu1 %v34034_v14 }
 0x73f   :  { %27916 = vmatmul.mubr.f32.vlgmr.msra.gmra.mrb[64].mxu1 %v30727_v9 }
 0x740   :  { %28948 = vmatpush3.bf16.msra.mxu1 %v33100_v25  ;;  %27922 = vmatprep.mubr.msk.f32.mxu1 %vm30068_vm1, %v34033_v48  ;;  %v34444_v25 = vld [vmem:[#allocation72_spill] sm:$0xff] }
 0x741   :  { %28949 = vmatprep.subr.bf16.mxu1 %v34034_v14 }
 0x747   :  { %27923 = vmatmul.mubr.f32.vlgmr.msra.gmra.mrb[64].mxu1 %v30702_v7 }
 0x748   :  { %28951 = vmatpush3.bf16.msra.mxu1 %v34443_v23  ;;  %27929 = vmatprep.mubr.msk.f32.mxu1 %vm30068_vm1, %v34033_v48 }
 0x749   :  { %28952 = vmatprep.subr.bf16.mxu1 %v34034_v14 }
 0x74f   :  { %27930 = vmatmul.mubr.f32.vlgmr.msra.gmra.mrb[64].mxu1 %v30707_v22 }
 0x750   :  { %28954 = vmatpush3.bf16.msra.mxu1 %v33043_v27  ;;  %27936 = vmatprep.mubr.msk.f32.mxu1 %vm30068_vm1, %v34033_v48 }
 0x751   :  { %28955 = vmatprep.subr.bf16.mxu1 %v34034_v14 }
 0x757   :  { %27937 = vmatmul.mubr.f32.vlgmr.msra.gmra.mrb[64].mxu1 %v30712_v34 }
 0x758   :  { %28957 = vmatpush3.bf16.msra.mxu1 %v34444_v25  ;;  %27943 = vmatprep.mubr.msk.f32.mxu1 %vm30068_vm1, %v34033_v48 }
 0x759   :  { %28958 = vmatprep.subr.bf16.mxu1 %v34034_v14 }
 0x75e   :  { %v17582_v12 = vpop.f32.mrb[54].mxu1 }
 0x75f   :  { %v24297_v37 = vsub.f32 %v17582_v12, %v34445_v29  ;;  %v27574_v21 = vpop.f32.mrb[55].mxu1  ;;  %27944 = vmatmul.mubr.f32.vlgmr.msra.gmra.mrb[64].mxu1 %v30702_v7  ;;  %v34461_v12 = vld [vmem:[#allocation85_spill] sm:$0xff]  ;;  %v34462_v29 = vld [vmem:[#allocation35_spill] sm:$0xff] }
 0x760   :  { %28960 = vmatpush3.bf16.msra.mxu1 %v33043_v27  ;;  %27950 = vmatprep.mubr.msk.f32.mxu1 %vm30068_vm1, %v34033_v48  ;;  %v34451_v27 = vld [vmem:[#allocation74_spill] sm:$0xff] }
 0x761   :  { %v24330_v43 = vadd.f32 %v24297_v37, %v34448_v4  ;;  %28961 = vmatprep.subr.bf16.mxu1 %v34034_v14  ;;  %v34463_v37 = vld [vmem:[#allocation65_spill] sm:$0xff] }
 0x762   :  { %v34464_v21 = vpack.c.bf16 %v34462_v29, %v34463_v37 }
 0x763   :  { %v24338_v59 = vadd.f32 %v24330_v43, %v33317_v49  ;;  %v34466_v43 = vld [vmem:[#allocation95_spill] sm:$0xff] }
 0x764   :  { %v24381_v63 = vadd.f32 %v34466_v43, %v33315_v53 }
 0x765   :  { %v33452_v44 = vmul.f32 %v24379_v19, %v24338_v59 }
 0x767   :  { %27951 = vmatmul.mubr.f32.vlgmr.msra.gmra.mrb[64].mxu1 %v30702_v7  ;;  %29904 = vrcp.f32 %v33452_v44 }
 0x768   :  { %28963 = vmatpush3.bf16.msra.mxu1 %v34450_v61  ;;  %27957 = vmatprep.mubr.msk.f32.mxu1 %vm30068_vm1, %v34033_v48 }
 0x769   :  { %28964 = vmatprep.subr.bf16.mxu1 %v34034_v14 }
 0x76b   :  { %27958 = vmatmul.mubr.f32.vlgmr.msra.gmra.mrb[66].mxu1 %v30727_v9 }
 0x76c   :  { %28966 = vmatpush3.bf16.msra.mxu1 %v34451_v27  ;;  %27964 = vmatprep.mubr.msk.f32.mxu1 %vm30068_vm1, %v34033_v48 }
 0x76d   :  { %28967 = vmatprep.subr.bf16.mxu1 %v34034_v14 }
 0x773   :  { %27965 = vmatmul.mubr.f32.vlgmr.msra.gmra.mrb[66].mxu1 %v30702_v7 }
 0x774   :  { %28969 = vmatpush3.bf16.msra.mxu1 %v34454_v26  ;;  %27971 = vmatprep.mubr.msk.f32.mxu1 %vm30068_vm1, %v34033_v48  ;;  %v34473_v26 = vld [vmem:[#allocation67_spill] sm:$0xff] }
 0x775   :  { %28970 = vmatprep.subr.bf16.mxu1 %v34034_v14 }
 0x77b   :  { %27972 = vmatmul.mubr.f32.vlgmr.msra.gmra.mrb[66].mxu1 %v30707_v22 }
 0x77c   :  { %28972 = vmatpush3.bf16.msra.mxu1 %v34450_v61  ;;  %27978 = vmatprep.mubr.msk.f32.mxu1 %vm30068_vm1, %v34033_v48 }
 0x77d   :  { %28973 = vmatprep.subr.bf16.mxu1 %v34034_v14 }
 0x783   :  { %27979 = vmatmul.mubr.f32.vlgmr.msra.gmra.mrb[66].mxu1 %v30712_v34 }
 0x784   :  { %28975 = vmatpush3.bf16.msra.mxu1 %v34455_v32  ;;  %27985 = vmatprep.mubr.msk.f32.mxu1 %vm30068_vm1, %v34033_v48 }
 0x785   :  { %28976 = vmatprep.subr.bf16.mxu1 %v34034_v14 }
 0x78a   :  { %v18041_v58 = vpop.f32.mrb[56].mxu1 }
 0x78b   :  { %v24298_v42 = vsub.f32 %v18041_v58, %v34456_v41  ;;  %v27616_v3 = vpop.f32.mrb[57].mxu1  ;;  %27986 = vmatmul.mubr.f32.vlgmr.msra.gmra.mrb[66].mxu1 %v30702_v7 }
 0x78c   :  { %28978 = vmatpush3.bf16.msra.mxu1 %v34450_v61  ;;  %27992 = vmatprep.mubr.msk.f32.mxu1 %vm30068_vm1, %v34033_v48  ;;  %v34467_v61 = vld [vmem:[#allocation73_spill] sm:$0xff] }
 0x78d   :  { %v24331_v39 = vadd.f32 %v24298_v42, %v34459_v33  ;;  %28979 = vmatprep.subr.bf16.mxu1 %v34034_v14  ;;  %v34474_v42 = vld [vmem:[#allocation17_spill] sm:$0xff]  ;;  %v34475_v33 = vld [vmem:[#allocation75_spill] sm:$0xff] }
 0x78e   :  { %v24382_v3 = vadd.f32 %v34474_v42, %v33315_v53 }
 0x78f   :  { %v24339_v23 = vadd.f32 %v24331_v39, %v33317_v49  ;;  %v34479_v39 = vld [vmem:[#allocation23_spill] sm:$0xff] }
 0x791   :  { %v33493_v25 = vmul.f32 %v24380_v56, %v24339_v23  ;;  %v34480_v23 = vld [vmem:[#allocation68_spill] sm:$0xff] }
 0x793   :  { %27993 = vmatmul.mubr.f32.vlgmr.msra.gmra.mrb[66].mxu1 %v30702_v7  ;;  %29906 = vrcp.f32 %v33493_v25 }
 0x794   :  { %28981 = vmatpush3.bf16.msra.mxu1 %v34461_v12  ;;  %27999 = vmatprep.mubr.msk.f32.mxu1 %vm30068_vm1, %v34033_v48 }
 0x795   :  { %28982 = vmatprep.subr.bf16.mxu1 %v34034_v14 }
 0x797   :  { %28000 = vmatmul.mubr.f32.vlgmr.msra.gmra.mrb[68].mxu1 %v30727_v9 }
 0x798   :  { %28984 = vmatpush3.bf16.msra.mxu1 %v33137_v35  ;;  %28006 = vmatprep.mubr.msk.f32.mxu1 %vm30068_vm1, %v34033_v48 }
 0x799   :  { %28985 = vmatprep.subr.bf16.mxu1 %v34034_v14 }
 0x79f   :  { %28007 = vmatmul.mubr.f32.vlgmr.msra.gmra.mrb[68].mxu1 %v30702_v7 }
 0x7a0   :  { %28987 = vmatpush3.bf16.msra.mxu1 %v34464_v21  ;;  %28013 = vmatprep.mubr.msk.f32.mxu1 %vm30068_vm1, %v34033_v48  ;;  %v34481_v21 = vld [vmem:[#allocation86_spill] sm:$0xff] }
 0x7a1   :  { %28988 = vmatprep.subr.bf16.mxu1 %v34034_v14 }
 0x7a7   :  { %28014 = vmatmul.mubr.f32.vlgmr.msra.gmra.mrb[68].mxu1 %v30707_v22 }
 0x7a8   :  { %28990 = vmatpush3.bf16.msra.mxu1 %v34461_v12  ;;  %28020 = vmatprep.mubr.msk.f32.mxu1 %vm30068_vm1, %v34033_v48 }
 0x7a9   :  { %28991 = vmatprep.subr.bf16.mxu1 %v34034_v14 }
 0x7af   :  { %28021 = vmatmul.mubr.f32.vlgmr.msra.gmra.mrb[68].mxu1 %v30712_v34 }
 0x7b0   :  { %28993 = vmatpush3.bf16.msra.mxu1 %v33129_v57  ;;  %28027 = vmatprep.mubr.msk.f32.mxu1 %vm30068_vm1, %v34033_v48 }
 0x7b1   :  { %28994 = vmatprep.subr.bf16.mxu1 %v34034_v14 }
 0x7b6   :  { %v18500_v35 = vpop.f32.mrb[58].mxu1 }
 0x7b7   :  { %v24299_v55 = vsub.f32 %v18500_v35, %v34465_v5  ;;  %v27658_v4 = vpop.f32.mrb[59].mxu1  ;;  %28028 = vmatmul.mubr.f32.vlgmr.msra.gmra.mrb[68].mxu1 %v30702_v7  ;;  %v34485_v35 = vld [vmem:[#allocation50_spill] sm:$0xff] }
 0x7b8   :  { %28996 = vmatpush3.bf16.msra.mxu1 %v34461_v12  ;;  %28034 = vmatprep.mubr.msk.f32.mxu1 %vm30068_vm1, %v34033_v48  ;;  %v24383_v12 = vadd.f32 %v34480_v23, %v33315_v53  ;;  %v24343_v5 = vmul.f32 2.0, %v34485_v35 }
 0x7b9   :  { %v24332_v57 = vadd.f32 %v24299_v55, %v24291_v28  ;;  %28997 = vmatprep.subr.bf16.mxu1 %v34034_v14  ;;  %v34470_v28 = vld [vmem:[#allocation38_spill] sm:$0xff] }
 0x7ba   :  { %v34471_v27 = vpack.c.bf16 %v34469_v30, %v34470_v28 }
 0x7bb   :  { %v24340_v19 = vadd.f32 %v24332_v57, %v33317_v49  ;;  %v24352_v57 = vadd.f32 %v33315_v53, %v24343_v5 }
 0x7bd   :  { %v33534_v59 = vmul.f32 %v24381_v63, %v24340_v19  ;;  %v29899_v63 = vpop.eup %29898 }
 0x7bf   :  { %28035 = vmatmul.mubr.f32.vlgmr.msra.gmra.mrb[68].mxu1 %v30702_v7  ;;  %29908 = vrcp.f32 %v33534_v59 }
 0x7c0   :  { %28999 = vmatpush3.bf16.msra.mxu1 %v34467_v61  ;;  %28041 = vmatprep.mubr.msk.f32.mxu1 %vm30068_vm1, %v34033_v48 }
 0x7c1   :  { %29000 = vmatprep.subr.bf16.mxu1 %v34034_v14 }
 0x7c3   :  { %28042 = vmatmul.mubr.f32.vlgmr.msra.gmra.mrb[70].mxu1 %v30727_v9 }
 0x7c4   :  { %29002 = vmatpush3.bf16.msra.mxu1 %v34468_v36  ;;  %28048 = vmatprep.mubr.msk.f32.mxu1 %vm30068_vm1, %v34033_v48  ;;  %v34487_v36 = vpack.c.bf16 %v33148_v13, %v33156_v40  ;;  %v34488_v40 = vld [vmem:[#allocation53_spill] sm:$0xff] }
 0x7c5   :  { %29003 = vmatprep.subr.bf16.mxu1 %v34034_v14  ;;  %v24344_v13 = vmul.f32 2.0, %v34488_v40 }
 0x7cb   :  { %28049 = vmatmul.mubr.f32.vlgmr.msra.gmra.mrb[70].mxu1 %v30702_v7 }
 0x7cc   :  { %29005 = vmatpush3.bf16.msra.mxu1 %v34471_v27  ;;  %28055 = vmatprep.mubr.msk.f32.mxu1 %vm30068_vm1, %v34033_v48  ;;  %v24353_v27 = vadd.f32 %v33315_v53, %v24344_v13 }
 0x7cd   :  { %29006 = vmatprep.subr.bf16.mxu1 %v34034_v14 }
 0x7d3   :  { %28056 = vmatmul.mubr.f32.vlgmr.msra.gmra.mrb[70].mxu1 %v30707_v22 }
 0x7d4   :  { %29008 = vmatpush3.bf16.msra.mxu1 %v34467_v61  ;;  %28062 = vmatprep.mubr.msk.f32.mxu1 %vm30068_vm1, %v34033_v48 }
 0x7d5   :  { %29009 = vmatprep.subr.bf16.mxu1 %v34034_v14 }
 0x7db   :  { %28063 = vmatmul.mubr.f32.vlgmr.msra.gmra.mrb[70].mxu1 %v30712_v34 }
 0x7dc   :  { %29011 = vmatpush3.bf16.msra.mxu1 %v34472_v50  ;;  %28069 = vmatprep.mubr.msk.f32.mxu1 %vm30068_vm1, %v34033_v48 }
 0x7dd   :  { %29012 = vmatprep.subr.bf16.mxu1 %v34034_v14 }
 0x7e2   :  { %v18959_v10 = vpop.f32.mrb[60].mxu1 }
 0x7e3   :  { %v24300_v32 = vsub.f32 %v18959_v10, %v34473_v26  ;;  %v27700_v58 = vpop.f32.mrb[61].mxu1  ;;  %28070 = vmatmul.mubr.f32.vlgmr.msra.gmra.mrb[70].mxu1 %v30702_v7  ;;  %v29901_v10 = vpop.eup %29900 }
 0x7e4   :  { %29014 = vmatpush3.bf16.msra.mxu1 %v34467_v61  ;;  %28076 = vmatprep.mubr.msk.f32.mxu1 %vm30068_vm1, %v34033_v48  ;;  %v34486_v61 = vld [vmem:[#allocation89_spill] sm:$0xff]  ;;  %v29903_v46 = vpop.eup %29902 }
 0x7e5   :  { %v24333_v41 = vadd.f32 %v24300_v32, %v24292_v1  ;;  %29015 = vmatprep.subr.bf16.mxu1 %v34034_v14  ;;  %v34478_v1 = vpack.c.bf16 %v34476_v45, %v34477_v15  ;;  %v34489_v32 = vld [vmem:[#allocation79_spill] sm:$0xff] }
 0x7e7   :  { %v24341_v60 = vadd.f32 %v24333_v41, %v33317_v49 }
 0x7e9   :  { %v33575_v6 = vmul.f32 %v24382_v3, %v24341_v60  ;;  %v34490_v3 = vpack.c.bf16 %v33165_v11, %v33172_v62 }
 0x7eb   :  { %28077 = vmatmul.mubr.f32.vlgmr.msra.gmra.mrb[70].mxu1 %v30702_v7  ;;  %29910 = vrcp.f32 %v33575_v6 }
 0x7ec   :  { %29017 = vmatpush3.bf16.msra.mxu1 %v34475_v33  ;;  %28083 = vmatprep.mubr.msk.f32.mxu1 %vm30068_vm1, %v34033_v48 }
 0x7ed   :  { %29018 = vmatprep.subr.bf16.mxu1 %v34034_v14 }
 0x7ef   :  { %28084 = vmatmul.mubr.f32.vlgmr.msra.gmra.mrb[72].mxu1 %v30727_v9 }
 0x7f0   :  { %29020 = vmatpush3.bf16.msra.mxu1 %v33176_v20  ;;  %28090 = vmatprep.mubr.msk.f32.mxu1 %vm30068_vm1, %v34033_v48 }
 0x7f1   :  { %29021 = vmatprep.subr.bf16.mxu1 %v34034_v14 }
 0x7f7   :  { %28091 = vmatmul.mubr.f32.vlgmr.msra.gmra.mrb[72].mxu1 %v30702_v7 }
 0x7f8   :  { %29023 = vmatpush3.bf16.msra.mxu1 %v34478_v1  ;;  %28097 = vmatprep.mubr.msk.f32.mxu1 %vm30068_vm1, %v34033_v48 }
 0x7f9   :  { %29024 = vmatprep.subr.bf16.mxu1 %v34034_v14 }
 0x7ff   :  { %28098 = vmatmul.mubr.f32.vlgmr.msra.gmra.mrb[72].mxu1 %v30707_v22 }
 0x800   :  { %29026 = vmatpush3.bf16.msra.mxu1 %v34475_v33  ;;  %28104 = vmatprep.mubr.msk.f32.mxu1 %vm30068_vm1, %v34033_v48 }
 0x801   :  { %29027 = vmatprep.subr.bf16.mxu1 %v34034_v14 }
 0x807   :  { %28105 = vmatmul.mubr.f32.vlgmr.msra.gmra.mrb[72].mxu1 %v30712_v34 }
 0x808   :  { %29029 = vmatpush3.bf16.msra.mxu1 %v33167_v51  ;;  %28111 = vmatprep.mubr.msk.f32.mxu1 %vm30068_vm1, %v34033_v48 }
 0x809   :  { %29030 = vmatprep.subr.bf16.mxu1 %v34034_v14 }
 0x80e   :  { %v19418_v20 = vpop.f32.mrb[62].mxu1 }
 0x80f   :  { %v24301_v17 = vsub.f32 %v19418_v20, %v34479_v39  ;;  %v27742_v56 = vpop.f32.mrb[63].mxu1  ;;  %28112 = vmatmul.mubr.f32.vlgmr.msra.gmra.mrb[72].mxu1 %v30702_v7  ;;  %v34492_v20 = vld [vmem:[#allocation19_spill] sm:$0xff] }
 0x810   :  { %29032 = vmatpush3.bf16.msra.mxu1 %v34475_v33  ;;  %28118 = vmatprep.mubr.msk.f32.mxu1 %vm30068_vm1, %v34033_v48  ;;  %v24346_v39 = vmul.f32 2.0, %v34492_v20 }
 0x811   :  { %v24334_v51 = vadd.f32 %v24301_v17, %v24293_v38  ;;  %29033 = vmatprep.subr.bf16.mxu1 %v34034_v14  ;;  %v34484_v38 = vpack.c.bf16 %v34482_v31, %v34483_v54 }
 0x812   :  { %v24355_v23 = vadd.f32 %v33315_v53, %v24346_v39 }
 0x813   :  { %v24342_v29 = vadd.f32 %v24334_v51, %v33317_v49 }
 0x815   :  { %v33616_v37 = vmul.f32 %v24383_v12, %v24342_v29 }
 0x817   :  { %28119 = vmatmul.mubr.f32.vlgmr.msra.gmra.mrb[72].mxu1 %v30702_v7  ;;  %29912 = vrcp.f32 %v33616_v37 }
 0x818   :  { %29035 = vmatpush3.bf16.msra.mxu1 %v34481_v21  ;;  %28125 = vmatprep.mubr.msk.f32.mxu1 %vm30068_vm1, %v34033_v48 }
 0x819   :  { %29036 = vmatprep.subr.bf16.mxu1 %v34034_v14 }
 0x81b   :  { %28126 = vmatmul.mubr.f32.vlgmr.msra.gmra.mrb[74].mxu1 %v30727_v9 }
 0x81c   :  { %29038 = vmatpush3.bf16.msra.mxu1 %v33192_v2  ;;  %28132 = vmatprep.mubr.msk.f32.mxu1 %vm30068_vm1, %v34033_v48 }
 0x81d   :  { %29039 = vmatprep.subr.bf16.mxu1 %v34034_v14 }
 0x823   :  { %28133 = vmatmul.mubr.f32.vlgmr.msra.gmra.mrb[74].mxu1 %v30702_v7 }
 0x824   :  { %29041 = vmatpush3.bf16.msra.mxu1 %v34484_v38  ;;  %28139 = vmatprep.mubr.msk.f32.mxu1 %vm30068_vm1, %v34033_v48  ;;  %v34493_v38 = vld [vmem:[#allocation40_spill] sm:$0xff] }
 0x825   :  { %29042 = vmatprep.subr.bf16.mxu1 %v34034_v14 }
 0x82b   :  { %28140 = vmatmul.mubr.f32.vlgmr.msra.gmra.mrb[74].mxu1 %v30707_v22 }
 0x82c   :  { %29044 = vmatpush3.bf16.msra.mxu1 %v34481_v21  ;;  %28146 = vmatprep.mubr.msk.f32.mxu1 %vm30068_vm1, %v34033_v48 }
 0x82d   :  { %29045 = vmatprep.subr.bf16.mxu1 %v34034_v14 }
 0x833   :  { %28147 = vmatmul.mubr.f32.vlgmr.msra.gmra.mrb[74].mxu1 %v30712_v34 }
 0x834   :  { %29047 = vmatpush3.bf16.msra.mxu1 %v33185_v16  ;;  %28153 = vmatprep.mubr.msk.f32.mxu1 %vm30068_vm1, %v34033_v48 }
 0x835   :  { %29048 = vmatprep.subr.bf16.mxu1 %v34034_v14 }
 0x83a   :  { %v21045_v2 = vpop.f32.mrb[64].mxu1 }
 0x83b   :  { %v24302_v55 = vsub.f32 %v21045_v2, %v34485_v35  ;;  %v27952_v4 = vpop.f32.mrb[65].mxu1  ;;  %28154 = vmatmul.mubr.f32.vlgmr.msra.gmra.mrb[74].mxu1 %v30702_v7  ;;  %v24347_v2 = vmul.f32 2.0, %v34493_v38 }
 0x83c   :  { %29050 = vmatpush3.bf16.msra.mxu1 %v34481_v21  ;;  %28160 = vmatprep.mubr.msk.f32.mxu1 %vm30068_vm1, %v34033_v48  ;;  %v29905_v21 = vpop.eup %29904 }
 0x83d   :  { %v24310_v16 = vmul.f32 2.0, %v24302_v55  ;;  %29051 = vmatprep.subr.bf16.mxu1 %v34034_v14  ;;  %v24356_v4 = vadd.f32 %v33315_v53, %v24347_v2 }
 0x83f   :  { %v24319_v18 = vadd.f32 %v33317_v49, %v24310_v16 }
 0x841   :  { %v24360_v43 = vmul.f32 %v24352_v57, %v24319_v18  ;;  %v29907_v18 = vpop.eup %29906 }
 0x843   :  { %v24393_v19 = vmul.f32 %v29899_v63, %v24360_v43  ;;  %28161 = vmatmul.mubr.f32.vlgmr.msra.gmra.mrb[74].mxu1 %v30702_v7 }
 0x844   :  { %29053 = vmatpush3.bf16.msra.mxu1 %v34486_v61  ;;  %28167 = vmatprep.mubr.msk.f32.mxu1 %vm30068_vm1, %v34033_v48 }
 0x845   :  { %29054 = vmatprep.subr.bf16.mxu1 %v34034_v14  ;;  %v24416_v58 = vsel %vm24415_vm2, %v24393_v19, 0.0 }
 0x847   :  { %28168 = vmatmul.mubr.f32.vlgmr.msra.gmra.mrb[76].mxu1 %v30727_v9 }
 0x848   :  { %29056 = vmatpush3.bf16.msra.mxu1 %v33196_v24  ;;  %28174 = vmatprep.mubr.msk.f32.mxu1 %vm30068_vm1, %v34033_v48 }
 0x849   :  { %29057 = vmatprep.subr.bf16.mxu1 %v34034_v14 }
 0x84f   :  { %28175 = vmatmul.mubr.f32.vlgmr.msra.gmra.mrb[76].mxu1 %v30702_v7 }
 0x850   :  { %29059 = vmatpush3.bf16.msra.mxu1 %v34487_v36  ;;  %28181 = vmatprep.mubr.msk.f32.mxu1 %vm30068_vm1, %v34033_v48 }
 0x851   :  { %29060 = vmatprep.subr.bf16.mxu1 %v34034_v14 }
 0x857   :  { %28182 = vmatmul.mubr.f32.vlgmr.msra.gmra.mrb[76].mxu1 %v30707_v22 }
 0x858   :  { %29062 = vmatpush3.bf16.msra.mxu1 %v34486_v61  ;;  %28188 = vmatprep.mubr.msk.f32.mxu1 %vm30068_vm1, %v34033_v48 }
 0x859   :  { %29063 = vmatprep.subr.bf16.mxu1 %v34034_v14 }
 0x85f   :  { %28189 = vmatmul.mubr.f32.vlgmr.msra.gmra.mrb[76].mxu1 %v30712_v34 }
 0x860   :  { %29065 = vmatpush3.bf16.msra.mxu1 %v33194_v0  ;;  %28195 = vmatprep.mubr.msk.f32.mxu1 %vm30068_vm1, %v34033_v48 }
 0x861   :  { %29066 = vmatprep.subr.bf16.mxu1 %v34034_v14 }
 0x866   :  { %v21504_v24 = vpop.f32.mrb[66].mxu1 }
 0x867   :  { %v24303_v30 = vsub.f32 %v21504_v24, %v34488_v40  ;;  %v27994_v28 = vpop.f32.mrb[67].mxu1  ;;  %28196 = vmatmul.mubr.f32.vlgmr.msra.gmra.mrb[76].mxu1 %v30702_v7 }
 0x868   :  { %29068 = vmatpush3.bf16.msra.mxu1 %v34486_v61  ;;  %28202 = vmatprep.mubr.msk.f32.mxu1 %vm30068_vm1, %v34033_v48  ;;  %v34494_v61 = vld [vmem:[#allocation94_spill] sm:$0xff] }
 0x869   :  { %v24311_v0 = vmul.f32 2.0, %v24303_v30  ;;  %29069 = vmatprep.subr.bf16.mxu1 %v34034_v14  ;;  %v24348_v36 = vmul.f32 2.0, %v34494_v61 }
 0x86b   :  { %v24320_v52 = vadd.f32 %v33317_v49, %v24311_v0  ;;  %v24357_v30 = vadd.f32 %v33315_v53, %v24348_v36 }
 0x86d   :  { %v24361_v50 = vmul.f32 %v24353_v27, %v24320_v52  ;;  %v29909_v27 = vpop.eup %29908 }
 0x86f   :  { %v24395_v26 = vmul.f32 %v29901_v10, %v24361_v50  ;;  %28203 = vmatmul.mubr.f32.vlgmr.msra.gmra.mrb[76].mxu1 %v30702_v7 }
 0x870   :  { %29071 = vmatpush3.bf16.msra.mxu1 %v34489_v32  ;;  %28209 = vmatprep.mubr.msk.f32.mxu1 %vm30068_vm1, %v34033_v48 }
 0x871   :  { %v24417_v41 = vsel %vm24415_vm2, %v24395_v26, 0.0  ;;  %29072 = vmatprep.subr.bf16.mxu1 %v34034_v14  ;;  %v34495_v26 = vld [vmem:[#allocation18_spill] sm:$0xff] }
 0x872   :  { %v24418_v42 = vadd.f32 %v24417_v41, %v24416_v58 }
 0x873   :  { %28210 = vmatmul.mubr.f32.vlgmr.msra.gmra.mrb[78].mxu1 %v30727_v9 }
 0x874   :  { %29074 = vmatpush3.bf16.msra.mxu1 %v33203_v8  ;;  %28216 = vmatprep.mubr.msk.f32.mxu1 %vm30068_vm1, %v34033_v48 }
 0x875   :  { %29075 = vmatprep.subr.bf16.mxu1 %v34034_v14 }
 0x87b   :  { %28217 = vmatmul.mubr.f32.vlgmr.msra.gmra.mrb[78].mxu1 %v30702_v7 }
 0x87c   :  { %29077 = vmatpush3.bf16.msra.mxu1 %v34490_v3  ;;  %28223 = vmatprep.mubr.msk.f32.mxu1 %vm30068_vm1, %v34033_v48 }
 0x87d   :  { %29078 = vmatprep.subr.bf16.mxu1 %v34034_v14 }
 0x883   :  { %28224 = vmatmul.mubr.f32.vlgmr.msra.gmra.mrb[78].mxu1 %v30707_v22  ;;  %v34491_v22 = vld [vmem:[#allocation56_spill] sm:$0xff] }
 0x884   :  { %29080 = vmatpush3.bf16.msra.mxu1 %v34489_v32  ;;  %28230 = vmatprep.mubr.msk.f32.mxu1 %vm30068_vm1, %v34033_v48  ;;  %v24345_v62 = vmul.f32 2.0, %v34491_v22 }
 0x885   :  { %29081 = vmatprep.subr.bf16.mxu1 %v34034_v14 }
 0x88b   :  { %28231 = vmatmul.mubr.f32.vlgmr.msra.gmra.mrb[78].mxu1 %v30712_v34 }
 0x88c   :  { %29083 = vmatpush3.bf16.msra.mxu1 %v33188_v47  ;;  %28237 = vmatprep.mubr.msk.f32.mxu1 %vm30068_vm1, %v34033_v48  ;;  %v24354_v47 = vadd.f32 %v33315_v53, %v24345_v62  ;;  %v29911_v62 = vpop.eup %29910 }
 0x88d   :  { %29084 = vmatprep.subr.bf16.mxu1 %v34034_v14 }
 0x892   :  { %v21963_v9 = vpop.f32.mrb[68].mxu1 }
 0x893   :  { %v24304_v11 = vsub.f32 %v21963_v9, %v34491_v22  ;;  %v28036_v8 = vpop.f32.mrb[69].mxu1  ;;  %28238 = vmatmul.mubr.f32.vlgmr.msra.gmra.mrb[78].mxu1 %v30702_v7 }
 0x894   :  { %29086 = vmatpush3.bf16.msra.mxu1 %v34489_v32  ;;  %28244 = vmatprep.mubr.msk.f32.mxu1 %vm30068_vm1, %v34033_v48  ;;  %v24349_v32 = vmul.f32 2.0, %v34495_v26 }
 0x895   :  { %v24312_v34 = vmul.f32 2.0, %v24304_v11 }
 0x896   :  { %v24358_v3 = vadd.f32 %v33315_v53, %v24349_v32 }
 0x897   :  { %v24321_v14 = vadd.f32 %v33317_v49, %v24312_v34 }
 0x899   :  { %v24362_v60 = vmul.f32 %v24354_v47, %v24321_v14  ;;  %v34496_v47 = vld [vmem:[#allocation15_spill] sm:$0xff] }
 0x89a   :  { %v24350_v14 = vmul.f32 2.0, %v34496_v47 }
 0x89b   :  { %v24397_v33 = vmul.f32 %v29903_v46, %v24362_v60  ;;  %28245 = vmatmul.mubr.f32.vlgmr.msra.gmra.mrb[78].mxu1 %v30702_v7 }
 0x89d   :  { %v24419_v45 = vsel %vm24415_vm2, %v24397_v33, 0.0 }
 0x89e   :  { %v24420_v15 = vadd.f32 %v24419_v45, %v24418_v42  ;;  %v24359_v45 = vadd.f32 %v33315_v53, %v24350_v14 }
 0x8be   :  { %v22422_v1 = vpop.f32.mrb[70].mxu1 }
 0x8bf   :  { %v24305_v17 = vsub.f32 %v22422_v1, %v34492_v20  ;;  %v28078_v56 = vpop.f32.mrb[71].mxu1  ;;  %v29913_v20 = vpop.eup %29912 }
 0x8c1   :  { %v24313_v51 = vmul.f32 2.0, %v24305_v17 }
 0x8c3   :  { %v24322_v12 = vadd.f32 %v33317_v49, %v24313_v51 }
 0x8c5   :  { %v24363_v29 = vmul.f32 %v24355_v23, %v24322_v12 }
 0x8c7   :  { %v24399_v31 = vmul.f32 %v29905_v21, %v24363_v29 }
 0x8c9   :  { %v24421_v7 = vsel %vm24415_vm2, %v24399_v31, 0.0 }
 0x8ca   :  { %v24422_v54 = vadd.f32 %v24421_v7, %v24420_v15 }
 0x8ea   :  { %v22881_v44 = vpop.f32.mrb[72].mxu1 }
 0x8eb   :  { %v24306_v35 = vsub.f32 %v22881_v44, %v34493_v38  ;;  %v28120_v5 = vpop.f32.mrb[73].mxu1 }
 0x8ed   :  { %v24314_v55 = vmul.f32 2.0, %v24306_v35 }
 0x8ef   :  { %v24323_v16 = vadd.f32 %v33317_v49, %v24314_v55 }
 0x8f1   :  { %v24364_v57 = vmul.f32 %v24356_v4, %v24323_v16 }
 0x8f3   :  { %v24401_v43 = vmul.f32 %v29907_v18, %v24364_v57 }
 0x8f5   :  { %v24423_v63 = vsel %vm24415_vm2, %v24401_v43, 0.0 }
 0x8f6   :  { %v24424_v19 = vadd.f32 %v24423_v63, %v24422_v54 }
 0x916   :  { %v23340_v25 = vpop.f32.mrb[74].mxu1 }
 0x917   :  { %v24307_v24 = vsub.f32 %v23340_v25, %v34494_v61  ;;  %v28162_v40 = vpop.f32.mrb[75].mxu1 }
 0x919   :  { %v24315_v13 = vmul.f32 2.0, %v24307_v24 }
 0x91b   :  { %v24324_v28 = vadd.f32 %v33317_v49, %v24315_v13 }
 0x91d   :  { %v24365_v0 = vmul.f32 %v24357_v30, %v24324_v28 }
 0x91f   :  { %v24403_v52 = vmul.f32 %v29909_v27, %v24365_v0 }
 0x921   :  { %v24425_v50 = vsel %vm24415_vm2, %v24403_v52, 0.0 }
 0x922   :  { %v24426_v10 = vadd.f32 %v24425_v50, %v24424_v19 }
 0x942   :  { %v23799_v59 = vpop.f32.mrb[76].mxu1 }
 0x943   :  { %v24308_v58 = vsub.f32 %v23799_v59, %v34495_v26  ;;  %v28204_v41 = vpop.f32.mrb[77].mxu1 }
 0x945   :  { %v24316_v42 = vmul.f32 2.0, %v24308_v58 }
 0x947   :  { %v24325_v9 = vadd.f32 %v33317_v49, %v24316_v42 }
 0x949   :  { %v24366_v22 = vmul.f32 %v24358_v3, %v24325_v9 }
 0x94b   :  { %v24405_v11 = vmul.f32 %v29911_v62, %v24366_v22 }
 0x94d   :  { %v24427_v8 = vsel %vm24415_vm2, %v24405_v11, 0.0 }
 0x94e   :  { %v24428_v34 = vadd.f32 %v24427_v8, %v24426_v10 }
 0x96e   :  { %v24258_v6 = vpop.f32.mrb[78].mxu1 }
 0x96f   :  { %v24309_v60 = vsub.f32 %v24258_v6, %v34496_v47  ;;  %v28246_v46 = vpop.f32.mrb[79].mxu1 }
 0x971   :  { %v24317_v33 = vmul.f32 2.0, %v24309_v60 }
 0x973   :  { %v24326_v15 = vadd.f32 %v33317_v49, %v24317_v33  ;;  %v24414_v49 = vld [vmem:[#allocation9] sm:$0x1] }
 0x975   :  { %v24367_v1 = vmul.f32 %v24359_v45, %v24326_v15 }
 0x977   :  { %v24407_v39 = vmul.f32 %v29913_v20, %v24367_v1 }
 0x979   :  { %v24429_v17 = vsel %vm24415_vm2, %v24407_v39, 0.0 }
 0x97a   :  { %v24430_v56 = vadd.f32 %v24429_v17, %v24428_v34 }
 0x97c   :  { %24431 = vadd.xlane.f32.xlu0 %v24430_v56 }
 0xa09   :  { %v24432_v37 = vpop.xlane.xlu0 %24431 }
 0xa0a   :  { %v24433_v51 = vrot.slane %v24432_v37, 4 }
 0xa0c   :  { %v24434_v23 = vadd.f32 %v24433_v51, %v24432_v37 }
 0xa0e   :  { %v24435_v12 = vrot.slane %v24434_v23, 2 }
 0xa10   :  { %v24436_v29 = vadd.f32 %v24435_v12, %v24434_v23 }
 0xa12   :  { %v24437_v21 = vrot.slane %v24436_v29, 1 }
 0xa14   :  { %v24438_v53 = vadd.f32 %v24437_v21, %v24436_v29 }
 0xa16   :  { %29887 = vpush %v24438_v53 }
 0xa47   :  { %s29888_s26 = spop %29887 }
 0xa48   :  { %v24440_v31 = vstv %s29888_s26 }
 0xa49   :  { %v24441_v7 = vadd.f32 %v24440_v31, %v24414_v49 }
 0xa4b   :  { %24443 = vst.msk [vmem:[#allocation9] sm:$0x1] %vm24412_vm3, %v24441_v7 }
 0xa52   :  { %v24447_v54 = vld [vmem:[#allocation9] sm:$0x1] }
 0xa53   :  { %v24448_v44 = vmul.f32 0.0034722222, %v24447_v54 }
 0xa55   :  { %24449 = vst.msk [vmem:[#allocation9] sm:$0x1] %vm24412_vm3, %v24448_v44 }
 0xa56   :  { %30043 = shalt.err (!%p30040_p11)
}
 0xa57   :  { %s30044_s8 = scalar_lea.hbm %s33783_s5, 16 }
 0xa58   :  { %p30045_p12 = scmp.ne.s32.totalorder %s33783_s5, %s30044_s8  ;;  %p30048_p13 = scmp.lt.u32.totalorder %s30044_s8, %s33783_s5 }
 0xa5a   :  { %p30050_p0 = pnand %p30048_p13, %p30045_p12 }
 0xa5c   :  { %30053 = shalt.err (!%p30050_p0)
}
 0xa5d   :  { %24459 = dma.vmem_to_hbm [thread:$0]  %s24457_s28, 16, %s33783_s5, [#allocation6]  }
 0xa5e   :  { %30060 = dma.done.wait [#allocation6], 16  }
 0xa5f   :  { %30061 = vsyncadd [#allocation6], 4294967280 }
 0xa60   :  { %24463 = vsyncpa [#allocation5], 1 }
 0xa61   :  { %24464 = vsyncpa [#allocation8], 1 }
 0xa62   :  { %24465 = vsyncpa [#allocation6], 1 }

</bundles_post_ra>
